<compile_context>
chip_gen: v7x
topology: tpu7x:2x2x1
jax: 0.10.0
libtpu: 0.0.40
codegen_flags: <defaults>
</compile_context>

<pallas_src>
import jax
import jax.numpy as jnp
from jax import lax
from jax.experimental import pallas as pl
from jax.experimental.pallas import tpu as pltpu

BN_EPS = 1e-5


def _round_up(x, m):
    return ((x + m - 1) // m) * m


# ---------------------------------------------------------------------------
# Pallas kernels
# ---------------------------------------------------------------------------
def _conv_bn_relu_pool_kernel(pk_ref, w_ref, s_ref, b_ref, o_ref):
    """Fused 3x3 conv (im2col matmul) + folded BN + ReLU + 2x2 max-pool.

    pk_ref : (4, t, 9*Cin) im2col patches for a tile of t pooled pixels,
             leading axis = the 4 max-pool phases
    w_ref  : (9*Cin, Cout) conv weight, tap-major / channel-minor
    s_ref  : (1, Cout)     folded BN scale = gamma / sqrt(var + eps)
    b_ref  : (1, Cout)     folded BN bias  = (conv_bias - mean) * scale + beta
    o_ref  : (t, Cout)     pooled output tile, rows ordered (b, h', w')
    """
    w = w_ref[...]
    s = s_ref[...]
    b = b_ref[...]

    def phase(p):
        a = jnp.dot(pk_ref[p], w, preferred_element_type=jnp.float32)
        return jnp.maximum(a * s + b, 0.0)

    m = jnp.maximum(jnp.maximum(phase(0), phase(1)),
                    jnp.maximum(phase(2), phase(3)))
    o_ref[...] = m.astype(o_ref.dtype)


def _mlp_head_kernel(x_ref, w1_ref, s1_ref, b1_ref, w2_ref, s2_ref, b2_ref,
                     w3_ref, b3_ref, o_ref, acc_ref):
    """fc1 (K-tiled, accumulated) + BN + ReLU -> fc2 + BN + ReLU -> fc3."""
    k = pl.program_id(0)

    @pl.when(k == 0)
    def _():
        acc_ref[...] = jnp.zeros_like(acc_ref)

    acc_ref[...] += jnp.dot(x_ref[...], w1_ref[...],
                            preferred_element_type=jnp.float32)

    @pl.when(k == pl.num_programs(0) - 1)
    def _():
        h = jnp.maximum(acc_ref[...] * s1_ref[...] + b1_ref[...], 0.0)
        h = jnp.dot(h, w2_ref[...], preferred_element_type=jnp.float32)
        h = jnp.maximum(h * s2_ref[...] + b2_ref[...], 0.0)
        out = jnp.dot(h, w3_ref[...],
                      preferred_element_type=jnp.float32) + b3_ref[...]
        o_ref[...] = out.astype(o_ref.dtype)


# ---------------------------------------------------------------------------
# Wrappers (XLA-side layout plumbing + pallas_call)
# ---------------------------------------------------------------------------
def conv_bn_relu_pool(x_nhwc, w9, scale, bias, *, row_tile=512):
    """x_nhwc: (B, H, W, Cin) -> (B, H//2, W//2, Cout)."""
    B, H, W, Cin = x_nhwc.shape
    K, Cout = w9.shape
    Ho, Wo = H // 2, W // 2            # MaxPool2d(2) floors odd dims
    bp = B * Ho * Wo

    t = min(row_tile, _round_up(bp, 8))
    bp_pad = _round_up(bp, t)

    # im2col: zero-pad + 9 shifted views, feature order = (dy, dx, c_in).
    xpad = jnp.pad(x_nhwc, ((0, 0), (1, 1), (1, 1), (0, 0)))
    cols = [xpad[:, dy:dy + H, dx:dx + W, :]
            for dy in range(3) for dx in range(3)]
    patches = jnp.concatenate(cols, axis=-1)                    # (B, H, W, 9*Cin)
    # Group output pixels by the 4 max-pool phases (handles odd H/W by
    # dropping the trailing row/col, matching PyTorch's floor pooling).
    phases = [patches[:, i:2 * Ho:2, j:2 * Wo:2, :]
              for i in (0, 1) for j in (0, 1)]
    pk = jnp.stack(phases, axis=0).reshape(4, bp, K)            # (4, bp, 9*Cin)
    if bp_pad != bp:
        pk = jnp.pad(pk, ((0, 0), (0, bp_pad - bp), (0, 0)))

    out2d = pl.pallas_call(
        _conv_bn_relu_pool_kernel,
        out_shape=jax.ShapeDtypeStruct((bp_pad, Cout), x_nhwc.dtype),
        grid=(bp_pad // t,),
        in_specs=[
            pl.BlockSpec((4, t, K), lambda i: (0, i, 0)),
            pl.BlockSpec((K, Cout), lambda i: (0, 0)),
            pl.BlockSpec((1, Cout), lambda i: (0, 0)),
            pl.BlockSpec((1, Cout), lambda i: (0, 0)),
        ],
        out_specs=pl.BlockSpec((t, Cout), lambda i: (i, 0)),
        compiler_params=pltpu.CompilerParams(
            dimension_semantics=("parallel",)),
    )(pk, w9, scale, bias)
    return out2d[:bp].reshape(B, Ho, Wo, Cout)


def mlp_head(xf, w1, s1, b1, w2, s2, b2, w3, b3, *, k_tile=2048):
    """xf: (B, F) -> (B, num_classes)."""
    B, F = xf.shape
    H1, H2, NC = w1.shape[1], w2.shape[1], w3.shape[1]

    tk = min(k_tile, _round_up(F, 128))
    F_pad = _round_up(F, tk)
    if F_pad != F:
        xf = jnp.pad(xf, ((0, 0), (0, F_pad - F)))
        w1 = jnp.pad(w1, ((0, F_pad - F), (0, 0)))

    return pl.pallas_call(
        _mlp_head_kernel,
        out_shape=jax.ShapeDtypeStruct((B, NC), xf.dtype),
        grid=(F_pad // tk,),
        in_specs=[
            pl.BlockSpec((B, tk), lambda k: (0, k)),
            pl.BlockSpec((tk, H1), lambda k: (k, 0)),
            pl.BlockSpec((1, H1), lambda k: (0, 0)),
            pl.BlockSpec((1, H1), lambda k: (0, 0)),
            pl.BlockSpec((H1, H2), lambda k: (0, 0)),
            pl.BlockSpec((1, H2), lambda k: (0, 0)),
            pl.BlockSpec((1, H2), lambda k: (0, 0)),
            pl.BlockSpec((H2, NC), lambda k: (0, 0)),
            pl.BlockSpec((1, NC), lambda k: (0, 0)),
        ],
        out_specs=pl.BlockSpec((B, NC), lambda k: (0, 0)),
        scratch_shapes=[pltpu.VMEM((B, H1), jnp.float32)],
        compiler_params=pltpu.CompilerParams(
            dimension_semantics=("arbitrary",)),
    )(xf, w1, s1, b1, w2, s2, b2, w3, b3)


def audiocnn_pallas(x_nchw, params):
    x = jnp.transpose(x_nchw, (0, 2, 3, 1)).astype(jnp.float32)     # NHWC
    for layer in params["conv_layers"]:
        x = conv_bn_relu_pool(x, layer["w9"], layer["scale"], layer["bias"])
    B = x.shape[0]
    # PyTorch flattens NCHW -> (B, C*H*W); mirror that ordering exactly.
    xf = jnp.transpose(x, (0, 3, 1, 2)).reshape(B, -1)
    h = params["head"]
    return mlp_head(xf, h["w1"], h["s1"], h["b1"],
                    h["w2"], h["s2"], h["b2"], h["w3"], h["b3"])


# ---------------------------------------------------------------------------
# Parameter folding (conv/fc bias + BatchNorm running stats -> scale, bias)
# ---------------------------------------------------------------------------
def fold_conv_bn(w_torch, b_conv, gamma, beta, mean, var):
    cout, cin = w_torch.shape[0], w_torch.shape[1]
    w9 = jnp.transpose(w_torch, (2, 3, 1, 0)).reshape(9 * cin, cout)
    s = gamma / jnp.sqrt(var + BN_EPS)
    t = (b_conv - mean) * s + beta
    return w9, s.reshape(1, cout), t.reshape(1, cout)


def fold_fc_bn(w_torch, b_fc, gamma, beta, mean, var):
    out = w_torch.shape[0]
    s = gamma / jnp.sqrt(var + BN_EPS)
    t = (b_fc - mean) * s + beta
    return w_torch.T, s.reshape(1, out), t.reshape(1, out)


# ---------------------------------------------------------------------------
# Pure-JAX reference (mirrors the PyTorch eval-mode forward exactly)
# ---------------------------------------------------------------------------
def audiocnn_reference(x_nchw, raw):
    x = jnp.transpose(x_nchw, (0, 2, 3, 1)).astype(jnp.float32)
    for (w, b, g, be, m, v) in raw["conv"]:
        w_hwio = jnp.transpose(w, (2, 3, 1, 0))
        y = lax.conv_general_dilated(x, w_hwio, (1, 1), "SAME",
                                     dimension_numbers=("NHWC", "HWIO", "NHWC"))
        y = y + b
        y = (y - m) / jnp.sqrt(v + BN_EPS) * g + be
        y = jnp.maximum(y, 0.0)
        y = lax.reduce_window(y, -jnp.inf, lax.max,
                              (1, 2, 2, 1), (1, 2, 2, 1), "VALID")
        x = y
    B = x.shape[0]
    xf = jnp.transpose(x, (0, 3, 1, 2)).reshape(B, -1)
    (w1, b1, g1, be1, m1, v1) = raw["fc1"]
    h = xf @ w1.T + b1
    h = jnp.maximum((h - m1) / jnp.sqrt(v1 + BN_EPS) * g1 + be1, 0.0)
    (w2, b2, g2, be2, m2, v2) = raw["fc2"]
    h = h @ w2.T + b2
    h = jnp.maximum((h - m2) / jnp.sqrt(v2 + BN_EPS) * g2 + be2, 0.0)
    (w3, b3) = raw["fc3"]
    return h @ w3.T + b3


if __name__ == "__main__":
    # Small shapes consistent with the module: NCHW input with 1 channel.
    # (original is (B, 1, 128, 313); 32x32 keeps every pool even and fast.)
    B, Cin, H, W = 2, 1, 32, 32
    num_classes = 1

    key = jax.random.PRNGKey(0)
    chans = [Cin, 32, 64, 128, 256]

    raw_conv = []
    for li in range(4):
        key, k1, k2, k3, k4, k5, k6 = jax.random.split(key, 7)
        ci, co = chans[li], chans[li + 1]
        w = jax.random.normal(k1, (co, ci, 3, 3), jnp.float32) * 0.1
        b = jax.random.normal(k2, (co,), jnp.float32) * 0.1
        g = 1.0 + 0.1 * jax.random.normal(k3, (co,), jnp.float32)
        be = 0.1 * jax.random.normal(k4, (co,), jnp.float32)
        m = 0.1 * jax.random.normal(k5, (co,), jnp.float32)
        v = jax.random.uniform(k6, (co,), jnp.float32, minval=0.5, maxval=1.5)
        raw_conv.append((w, b, g, be, m, v))

    F = 256 * (H // 16) * (W // 16)   # flattened_size after 4 pools

    def make_fc_bn(key, fin, fout, wscale):
        key, k1, k2, k3, k4, k5, k6 = jax.random.split(key, 7)
        w = jax.random.normal(k1, (fout, fin), jnp.float32) * wscale
        b = jax.random.normal(k2, (fout,), jnp.float32) * 0.1
        g = 1.0 + 0.1 * jax.random.normal(k3, (fout,), jnp.float32)
        be = 0.1 * jax.random.normal(k4, (fout,), jnp.float32)
        m = 0.1 * jax.random.normal(k5, (fout,), jnp.float32)
        v = jax.random.uniform(k6, (fout,), jnp.float32, minval=0.5, maxval=1.5)
        return key, (w, b, g, be, m, v)

    key, fc1 = make_fc_bn(key, F, 512, 0.03)
    key, fc2 = make_fc_bn(key, 512, 128, 0.05)
    key, kw3, kb3 = jax.random.split(key, 3)
    w3 = jax.random.normal(kw3, (num_classes, 128), jnp.float32) * 0.1
    b3 = jax.random.normal(kb3, (num_classes,), jnp.float32) * 0.1

    key, kx = jax.random.split(key)
    x = jax.random.normal(kx, (B, Cin, H, W), jnp.float32)

    # Fold BN + biases for the Pallas path.
    conv_layers = []
    for (w, b, g, be, m, v) in raw_conv:
        w9, s, t = fold_conv_bn(w, b, g, be, m, v)
        conv_layers.append({"w9": w9, "scale": s, "bias": t})
    w1t, s1, t1 = fold_fc_bn(*fc1)
    w2t, s2, t2 = fold_fc_bn(*fc2)
    params = {
        "conv_layers": conv_layers,
        "head": {"w1": w1t, "s1": s1, "b1": t1,
                 "w2": w2t, "s2": s2, "b2": t2,
                 "w3": w3.T, "b3": b3.reshape(1, num_classes)},
    }

    out = audiocnn_pallas(x, params)
    out = jax.block_until_ready(out)

    raw = {"conv": raw_conv, "fc1": fc1, "fc2": fc2, "fc3": (w3, b3)}
    ref = audiocnn_reference(x, raw)

    assert out.shape == (B, num_classes)
    assert jnp.allclose(out, ref, atol=2e-2, rtol=2e-2), (
        f"mismatch vs reference: max abs err = "
        f"{float(jnp.max(jnp.abs(out - ref)))}")
    print("KERNEL_OK")
</pallas_src>

<mosaic_0001>
module attributes {stable_mosaic.version = 11 : i64} {
  func.func @_conv_bn_relu_pool_kernel(%arg0: i32, %arg1: memref<4x512x9xf32, #tpu.memory_space<vmem>>, %arg2: memref<9x32xf32, #tpu.memory_space<vmem>>, %arg3: memref<1x32xf32, #tpu.memory_space<vmem>>, %arg4: memref<1x32xf32, #tpu.memory_space<vmem>>, %arg5: memref<512x32xf32, #tpu.memory_space<vmem>>) attributes {dimension_semantics = [#tpu.dimension_semantics<parallel>], iteration_bounds = array<i64: 1>, scalar_prefetch = 0 : i64, scratch_operands = 0 : i64, tpu.core_type = #tpu.core_type<tc>, window_params = [{transform_indices = @transform_0, window_bounds = array<i64: 4, 512, 9>}, {pipeline_mode = #tpu.pipeline_mode<synchronous>, transform_indices = @transform_1, window_bounds = array<i64: 9, 32>}, {pipeline_mode = #tpu.pipeline_mode<synchronous>, transform_indices = @transform_2, window_bounds = array<i64: 1, 32>}, {pipeline_mode = #tpu.pipeline_mode<synchronous>, transform_indices = @transform_3, window_bounds = array<i64: 1, 32>}, {transform_indices = @transform_4, window_bounds = array<i64: 512, 32>}]} {
    %c0 = arith.constant 0 : index
    %c0_0 = arith.constant 0 : index
    %0 = vector.load %arg2[%c0, %c0_0] : memref<9x32xf32, #tpu.memory_space<vmem>>, vector<9x32xf32>
    %c0_1 = arith.constant 0 : index
    %c0_2 = arith.constant 0 : index
    %1 = vector.load %arg3[%c0_1, %c0_2] : memref<1x32xf32, #tpu.memory_space<vmem>>, vector<1x32xf32>
    %c0_3 = arith.constant 0 : index
    %c0_4 = arith.constant 0 : index
    %2 = vector.load %arg4[%c0_3, %c0_4] : memref<1x32xf32, #tpu.memory_space<vmem>>, vector<1x32xf32>
    %c0_5 = arith.constant 0 : index
    %c0_6 = arith.constant 0 : index
    %c0_7 = arith.constant 0 : index
    %3 = vector.load %arg1[%c0_5, %c0_6, %c0_7] : memref<4x512x9xf32, #tpu.memory_space<vmem>>, vector<1x512x9xf32>
    %4 = vector.shape_cast %3 : vector<1x512x9xf32> to vector<512x9xf32>
    %cst = arith.constant dense<0.000000e+00> : vector<512x32xf32>
    %5 = tpu.matmul %4, %0, %cst {dimension_numbers = #tpu.dot_dimension_numbers<[1], [0], [0], [1], [0, 0, 1, 1], [], []>} : vector<512x9xf32>, vector<9x32xf32>, vector<512x32xf32> -> vector<512x32xf32>
    %6 = vector.broadcast %1 : vector<1x32xf32> to vector<512x32xf32>
    %7 = arith.mulf %5, %6 : vector<512x32xf32>
    %8 = vector.broadcast %2 : vector<1x32xf32> to vector<512x32xf32>
    %9 = arith.addf %7, %8 : vector<512x32xf32>
    %cst_8 = arith.constant 0.000000e+00 : f32
    %10 = vector.broadcast %cst_8 : f32 to vector<512x32xf32>
    %11 = arith.maximumf %9, %10 : vector<512x32xf32>
    %c1 = arith.constant 1 : index
    %c0_9 = arith.constant 0 : index
    %c0_10 = arith.constant 0 : index
    %12 = vector.load %arg1[%c1, %c0_9, %c0_10] : memref<4x512x9xf32, #tpu.memory_space<vmem>>, vector<1x512x9xf32>
    %13 = vector.shape_cast %12 : vector<1x512x9xf32> to vector<512x9xf32>
    %cst_11 = arith.constant dense<0.000000e+00> : vector<512x32xf32>
    %14 = tpu.matmul %13, %0, %cst_11 {dimension_numbers = #tpu.dot_dimension_numbers<[1], [0], [0], [1], [0, 0, 1, 1], [], []>} : vector<512x9xf32>, vector<9x32xf32>, vector<512x32xf32> -> vector<512x32xf32>
    %15 = vector.broadcast %1 : vector<1x32xf32> to vector<512x32xf32>
    %16 = arith.mulf %14, %15 : vector<512x32xf32>
    %17 = vector.broadcast %2 : vector<1x32xf32> to vector<512x32xf32>
    %18 = arith.addf %16, %17 : vector<512x32xf32>
    %cst_12 = arith.constant 0.000000e+00 : f32
    %19 = vector.broadcast %cst_12 : f32 to vector<512x32xf32>
    %20 = arith.maximumf %18, %19 : vector<512x32xf32>
    %21 = arith.maximumf %11, %20 : vector<512x32xf32>
    %c2 = arith.constant 2 : index
    %c0_13 = arith.constant 0 : index
    %c0_14 = arith.constant 0 : index
    %22 = vector.load %arg1[%c2, %c0_13, %c0_14] : memref<4x512x9xf32, #tpu.memory_space<vmem>>, vector<1x512x9xf32>
    %23 = vector.shape_cast %22 : vector<1x512x9xf32> to vector<512x9xf32>
    %cst_15 = arith.constant dense<0.000000e+00> : vector<512x32xf32>
    %24 = tpu.matmul %23, %0, %cst_15 {dimension_numbers = #tpu.dot_dimension_numbers<[1], [0], [0], [1], [0, 0, 1, 1], [], []>} : vector<512x9xf32>, vector<9x32xf32>, vector<512x32xf32> -> vector<512x32xf32>
    %25 = vector.broadcast %1 : vector<1x32xf32> to vector<512x32xf32>
    %26 = arith.mulf %24, %25 : vector<512x32xf32>
    %27 = vector.broadcast %2 : vector<1x32xf32> to vector<512x32xf32>
    %28 = arith.addf %26, %27 : vector<512x32xf32>
    %cst_16 = arith.constant 0.000000e+00 : f32
    %29 = vector.broadcast %cst_16 : f32 to vector<512x32xf32>
    %30 = arith.maximumf %28, %29 : vector<512x32xf32>
    %c3 = arith.constant 3 : index
    %c0_17 = arith.constant 0 : index
    %c0_18 = arith.constant 0 : index
    %31 = vector.load %arg1[%c3, %c0_17, %c0_18] : memref<4x512x9xf32, #tpu.memory_space<vmem>>, vector<1x512x9xf32>
    %32 = vector.shape_cast %31 : vector<1x512x9xf32> to vector<512x9xf32>
    %cst_19 = arith.constant dense<0.000000e+00> : vector<512x32xf32>
    %33 = tpu.matmul %32, %0, %cst_19 {dimension_numbers = #tpu.dot_dimension_numbers<[1], [0], [0], [1], [0, 0, 1, 1], [], []>} : vector<512x9xf32>, vector<9x32xf32>, vector<512x32xf32> -> vector<512x32xf32>
    %34 = vector.broadcast %1 : vector<1x32xf32> to vector<512x32xf32>
    %35 = arith.mulf %33, %34 : vector<512x32xf32>
    %36 = vector.broadcast %2 : vector<1x32xf32> to vector<512x32xf32>
    %37 = arith.addf %35, %36 : vector<512x32xf32>
    %cst_20 = arith.constant 0.000000e+00 : f32
    %38 = vector.broadcast %cst_20 : f32 to vector<512x32xf32>
    %39 = arith.maximumf %37, %38 : vector<512x32xf32>
    %40 = arith.maximumf %30, %39 : vector<512x32xf32>
    %41 = arith.maximumf %21, %40 : vector<512x32xf32>
    %c0_21 = arith.constant 0 : index
    %c0_22 = arith.constant 0 : index
    %42 = vector.load %arg5[%c0_21, %c0_22] : memref<512x32xf32, #tpu.memory_space<vmem>>, vector<512x32xf32>
    tpu.vector_store %arg5[%c0_21, %c0_22], %41 {strides = array<i32>} : memref<512x32xf32, #tpu.memory_space<vmem>>, vector<512x32xf32>,
    return
  }
  func.func @transform_0(%arg0: i32) -> (i32, i32, i32) {
    %c0_i32 = arith.constant 0 : i32
    %c0_i32_0 = arith.constant 0 : i32
    %c0_i32_1 = arith.constant 0 : i32
    return %c0_i32, %arg0, %c0_i32_0 : i32, i32, i32
  }
  func.func @transform_1(%arg0: i32) -> (i32, i32) {
    %c0_i32 = arith.constant 0 : i32
    %c0_i32_0 = arith.constant 0 : i32
    %c0_i32_1 = arith.constant 0 : i32
    return %c0_i32, %c0_i32_0 : i32, i32
  }
  func.func @transform_2(%arg0: i32) -> (i32, i32) {
    %c0_i32 = arith.constant 0 : i32
    %c0_i32_0 = arith.constant 0 : i32
    %c0_i32_1 = arith.constant 0 : i32
    return %c0_i32, %c0_i32_0 : i32, i32
  }
  func.func @transform_3(%arg0: i32) -> (i32, i32) {
    %c0_i32 = arith.constant 0 : i32
    %c0_i32_0 = arith.constant 0 : i32
    %c0_i32_1 = arith.constant 0 : i32
    return %c0_i32, %c0_i32_0 : i32, i32
  }
  func.func @transform_4(%arg0: i32) -> (i32, i32) {
    %c0_i32 = arith.constant 0 : i32
    %c0_i32_0 = arith.constant 0 : i32
    return %arg0, %c0_i32 : i32, i32
  }
}

</mosaic_0001>

<bundles_post_ra>
// kernel: tpu_custom_call.1
= control target key start
LH: loop header
LB: loop body
LE: loop exit
PB: predicated region body
PF: predicated region fallthrough
CT: control target
= control target key end

     0   :  { %vm278_vm0 = vcmask 1040384   ;;  %vm85_vm1 = vcmask 72704   ;;  %vm4781_vm2 = vmmov 1   ;;  %vm3565_vm4 = vcmask 261120   ;;  %s6847_s1 = inlined_call_operand.vmem [shape: f32[9,32], index: 1, kind: input, shape index: {}]   ;;  %s6848_s0 = inlined_call_operand.vmem [shape: f32[4,512,9], index: 0, kind: input, shape index: {}]   ;;  %s6849_s2 = inlined_call_operand.vmem [shape: f32[1,32], index: 2, kind: input, shape index: {}]   ;;  %s6850_s3 = inlined_call_operand.vmem [shape: f32[1,32], index: 3, kind: input, shape index: {}]   ;;  %s6851_s4 = inlined_call_operand.vmem [shape: f32[512,32], index: 4, kind: output, shape index: {}]  }
   0x1   :  { %v17_v0 = vld [vmem:[%s6847_s1] sm:$0xff]  ;;  %v18_v1 = vld [vmem:[%s6847_s1 + $0x8] sm:$0x1]  ;;  %vm4813_vm3 = vmpackc.low %vm278_vm0, %vm4781_vm2 }
   0x2   :  { %v4752_v3 = vpack.c.bf16 %v18_v1, %v17_v0  ;;  %v21_v4 = vld [vmem:[%s6848_s0] sm:$0xff]  ;;  %v22_v6 = vld [vmem:[%s6848_s0 + $0x8] sm:$0xff]  ;;  %v23_v8 = vld [vmem:[%s6848_s0 + $0x10] sm:$0xff] }
   0x3   :  { %v3701_v5 = vld [vmem:[%s6848_s0 + $0x200] sm:$0xff]  ;;  %4356 = vmatprep.mubr.msk.f32.mxu0 %vm85_vm1, %v21_v4  ;;  %v3702_v7 = vld [vmem:[%s6848_s0 + $0x208] sm:$0xff]  ;;  %v3703_v9 = vld [vmem:[%s6848_s0 + $0x210] sm:$0xff] }
   0x4   :  { %4456 = vmatprep.mubr.msk.f32.mxu1 %vm85_vm1, %v3701_v5  ;;  %4754 = vmatprep.subr.msk.bf16.mxu0 %vm4813_vm3, %v4752_v3  ;;  %v24_v10 = vld [vmem:[%s6848_s0 + $0x18] sm:$0xff]  ;;  %v25_v12 = vld [vmem:[%s6848_s0 + $0x20] sm:$0xff]  ;;  %v26_v14 = vld [vmem:[%s6848_s0 + $0x28] sm:$0xff] }
   0x5   :  { %4760 = vmatprep.subr.msk.bf16.mxu1 %vm4813_vm3, %v4752_v3  ;;  %4757 = vmatpush3.bf16.msk.msra.mxu0 %vm4813_vm3, %v4752_v3  ;;  %v3704_v11 = vld [vmem:[%s6848_s0 + $0x218] sm:$0xff]  ;;  %v3705_v13 = vld [vmem:[%s6848_s0 + $0x220] sm:$0xff]  ;;  %v3706_v15 = vld [vmem:[%s6848_s0 + $0x228] sm:$0xff] }
   0x6   :  { %4763 = vmatpush3.bf16.msk.msra.mxu1 %vm4813_vm3, %v4752_v3  ;;  %4766 = vmatprep.subr.msk.bf16.mxu0 %vm4813_vm3, %v4752_v3  ;;  %v27_v16 = vld [vmem:[%s6848_s0 + $0x30] sm:$0xff]  ;;  %v28_v18 = vld [vmem:[%s6848_s0 + $0x38] sm:$0xff]  ;;  %v29_v20 = vld [vmem:[%s6848_s0 + $0x40] sm:$0xff] }
   0x7   :  { %4772 = vmatprep.subr.msk.bf16.mxu1 %vm4813_vm3, %v4752_v3  ;;  %v3707_v17 = vld [vmem:[%s6848_s0 + $0x230] sm:$0xff]  ;;  %v3708_v19 = vld [vmem:[%s6848_s0 + $0x238] sm:$0xff]  ;;  %v3709_v21 = vld [vmem:[%s6848_s0 + $0x240] sm:$0xff] }
   0x8   :  { %4357 = vmatmul.mubr.msk.f32.vlgmr.msra.gmra.mrb[0].mxu0 %vm85_vm1, %v22_v6  ;;  %v30_v22 = vld [vmem:[%s6848_s0 + $0x48] sm:$0xff]  ;;  %v31_v24 = vld [vmem:[%s6848_s0 + $0x50] sm:$0xff]  ;;  %v32_v26 = vld [vmem:[%s6848_s0 + $0x58] sm:$0xff] }
   0x9   :  { %4457 = vmatmul.mubr.msk.f32.vlgmr.msra.gmra.mrb[0].mxu1 %vm85_vm1, %v3702_v7  ;;  %4769 = vmatpush3.bf16.msk.msra.mxu0 %vm4813_vm3, %v4752_v3  ;;  %v3710_v23 = vld [vmem:[%s6848_s0 + $0x248] sm:$0xff]  ;;  %v3711_v25 = vld [vmem:[%s6848_s0 + $0x250] sm:$0xff]  ;;  %v3712_v27 = vld [vmem:[%s6848_s0 + $0x258] sm:$0xff] }
   0xa   :  { %4775 = vmatpush3.bf16.msk.msra.mxu1 %vm4813_vm3, %v4752_v3  ;;  %4359 = vmatprep.mubr.msk.f32.mxu0 %vm85_vm1, %v23_v8  ;;  %v33_v28 = vld [vmem:[%s6848_s0 + $0x60] sm:$0xff]  ;;  %v34_v30 = vld [vmem:[%s6848_s0 + $0x68] sm:$0xff]  ;;  %v35_v32 = vld [vmem:[%s6848_s0 + $0x70] sm:$0xff] }
   0xb   :  { %4459 = vmatprep.mubr.msk.f32.mxu1 %vm85_vm1, %v3703_v9  ;;  %v3713_v29 = vld [vmem:[%s6848_s0 + $0x260] sm:$0xff]  ;;  %v3714_v31 = vld [vmem:[%s6848_s0 + $0x268] sm:$0xff]  ;;  %v3715_v33 = vld [vmem:[%s6848_s0 + $0x270] sm:$0xff] }
   0xc   :  { %4360 = vmatmul.mubr.msk.f32.gmra.mrb[2].mxu0 %vm85_vm1, %v24_v10  ;;  %v36_v34 = vld [vmem:[%s6848_s0 + $0x78] sm:$0xff]  ;;  %v37_v36 = vld [vmem:[%s6848_s0 + $0x80] sm:$0xff]  ;;  %v38_v38 = vld [vmem:[%s6848_s0 + $0x88] sm:$0xff] }
   0xd   :  { %4460 = vmatmul.mubr.msk.f32.gmra.mrb[2].mxu1 %vm85_vm1, %v3704_v11  ;;  %4362 = vmatprep.mubr.msk.f32.mxu0 %vm85_vm1, %v25_v12  ;;  %v3716_v35 = vld [vmem:[%s6848_s0 + $0x278] sm:$0xff]  ;;  %v3717_v37 = vld [vmem:[%s6848_s0 + $0x280] sm:$0xff]  ;;  %v3718_v39 = vld [vmem:[%s6848_s0 + $0x288] sm:$0xff] }
   0xe   :  { %4462 = vmatprep.mubr.msk.f32.mxu1 %vm85_vm1, %v3705_v13  ;;  %v39_v40 = vld [vmem:[%s6848_s0 + $0x90] sm:$0xff]  ;;  %v40_v42 = vld [vmem:[%s6848_s0 + $0x98] sm:$0xff]  ;;  %v41_v44 = vld [vmem:[%s6848_s0 + $0xa0] sm:$0xff] }
   0xf   :  { %v3719_v41 = vld [vmem:[%s6848_s0 + $0x290] sm:$0xff]  ;;  %v3720_v43 = vld [vmem:[%s6848_s0 + $0x298] sm:$0xff]  ;;  %v3721_v45 = vld [vmem:[%s6848_s0 + $0x2a0] sm:$0xff] }
  0x10   :  { %4363 = vmatmul.mubr.msk.f32.gmra.mrb[4].mxu0 %vm85_vm1, %v26_v14  ;;  %v42_v46 = vld [vmem:[%s6848_s0 + $0xa8] sm:$0xff]  ;;  %v43_v48 = vld [vmem:[%s6848_s0 + $0xb0] sm:$0xff]  ;;  %v44_v50 = vld [vmem:[%s6848_s0 + $0xb8] sm:$0xff] }
  0x11   :  { %4463 = vmatmul.mubr.msk.f32.gmra.mrb[4].mxu1 %vm85_vm1, %v3706_v15  ;;  %4365 = vmatprep.mubr.msk.f32.mxu0 %vm85_vm1, %v27_v16  ;;  %v3722_v47 = vld [vmem:[%s6848_s0 + $0x2a8] sm:$0xff]  ;;  %v3723_v49 = vld [vmem:[%s6848_s0 + $0x2b0] sm:$0xff]  ;;  %v3724_v51 = vld [vmem:[%s6848_s0 + $0x2b8] sm:$0xff] }
  0x12   :  { %4465 = vmatprep.mubr.msk.f32.mxu1 %vm85_vm1, %v3707_v17  ;;  %v45_v52 = vld [vmem:[%s6848_s0 + $0xc0] sm:$0xff]  ;;  %v46_v54 = vld [vmem:[%s6848_s0 + $0xc8] sm:$0xff]  ;;  %v47_v56 = vld [vmem:[%s6848_s0 + $0xd0] sm:$0xff] }
  0x13   :  { %v3725_v53 = vld [vmem:[%s6848_s0 + $0x2c0] sm:$0xff]  ;;  %v3726_v55 = vld [vmem:[%s6848_s0 + $0x2c8] sm:$0xff]  ;;  %v3727_v57 = vld [vmem:[%s6848_s0 + $0x2d0] sm:$0xff] }
  0x14   :  { %4366 = vmatmul.mubr.msk.f32.gmra.mrb[6].mxu0 %vm85_vm1, %v28_v18  ;;  %v48_v58 = vld [vmem:[%s6848_s0 + $0xd8] sm:$0xff]  ;;  %v49_v60 = vld [vmem:[%s6848_s0 + $0xe0] sm:$0xff]  ;;  %v50_v62 = vld [vmem:[%s6848_s0 + $0xe8] sm:$0xff] }
  0x15   :  { %4466 = vmatmul.mubr.msk.f32.gmra.mrb[6].mxu1 %vm85_vm1, %v3708_v19  ;;  %4368 = vmatprep.mubr.msk.f32.mxu0 %vm85_vm1, %v29_v20  ;;  %v3728_v59 = vld [vmem:[%s6848_s0 + $0x2d8] sm:$0xff]  ;;  %v3729_v61 = vld [vmem:[%s6848_s0 + $0x2e0] sm:$0xff]  ;;  %v3730_v63 = vld [vmem:[%s6848_s0 + $0x2e8] sm:$0xff] }
  0x16   :  { %4468 = vmatprep.mubr.msk.f32.mxu1 %vm85_vm1, %v3709_v21  ;;  %v51_v0 = vld [vmem:[%s6848_s0 + $0xf0] sm:$0xff]  ;;  %v52_v2 = vld [vmem:[%s6848_s0 + $0xf8] sm:$0xff]  ;;  %v53_v4 = vld [vmem:[%s6848_s0 + $0x100] sm:$0xff] }
  0x17   :  { %v3731_v1 = vld [vmem:[%s6848_s0 + $0x2f0] sm:$0xff]  ;;  %v3732_v3 = vld [vmem:[%s6848_s0 + $0x2f8] sm:$0xff]  ;;  %v3733_v5 = vld [vmem:[%s6848_s0 + $0x300] sm:$0xff] }
  0x18   :  { %4369 = vmatmul.mubr.msk.f32.gmra.mrb[8].mxu0 %vm85_vm1, %v30_v22  ;;  %v54_v6 = vld [vmem:[%s6848_s0 + $0x108] sm:$0xff]  ;;  %v55_v8 = vld [vmem:[%s6848_s0 + $0x110] sm:$0xff]  ;;  %v56_v10 = vld [vmem:[%s6848_s0 + $0x118] sm:$0xff] }
  0x19   :  { %4469 = vmatmul.mubr.msk.f32.gmra.mrb[8].mxu1 %vm85_vm1, %v3710_v23  ;;  %4371 = vmatprep.mubr.msk.f32.mxu0 %vm85_vm1, %v31_v24  ;;  %v3734_v7 = vld [vmem:[%s6848_s0 + $0x308] sm:$0xff]  ;;  %v3735_v9 = vld [vmem:[%s6848_s0 + $0x310] sm:$0xff]  ;;  %v3736_v11 = vld [vmem:[%s6848_s0 + $0x318] sm:$0xff] }
  0x1a   :  { %4471 = vmatprep.mubr.msk.f32.mxu1 %vm85_vm1, %v3711_v25  ;;  %v57_v12 = vld [vmem:[%s6848_s0 + $0x120] sm:$0xff]  ;;  %v58_v14 = vld [vmem:[%s6848_s0 + $0x128] sm:$0xff]  ;;  %v59_v16 = vld [vmem:[%s6848_s0 + $0x130] sm:$0xff] }
  0x1b   :  { %v3737_v13 = vld [vmem:[%s6848_s0 + $0x320] sm:$0xff]  ;;  %v3738_v15 = vld [vmem:[%s6848_s0 + $0x328] sm:$0xff]  ;;  %v3739_v17 = vld [vmem:[%s6848_s0 + $0x330] sm:$0xff] }
  0x1c   :  { %4372 = vmatmul.mubr.msk.f32.gmra.mrb[10].mxu0 %vm85_vm1, %v32_v26  ;;  %v60_v18 = vld [vmem:[%s6848_s0 + $0x138] sm:$0xff]  ;;  %v61_v20 = vld [vmem:[%s6848_s0 + $0x140] sm:$0xff]  ;;  %v62_v22 = vld [vmem:[%s6848_s0 + $0x148] sm:$0xff] }
  0x1d   :  { %4472 = vmatmul.mubr.msk.f32.gmra.mrb[10].mxu1 %vm85_vm1, %v3712_v27  ;;  %4374 = vmatprep.mubr.msk.f32.mxu0 %vm85_vm1, %v33_v28  ;;  %v3740_v19 = vld [vmem:[%s6848_s0 + $0x338] sm:$0xff]  ;;  %v3741_v21 = vld [vmem:[%s6848_s0 + $0x340] sm:$0xff]  ;;  %v3742_v23 = vld [vmem:[%s6848_s0 + $0x348] sm:$0xff] }
  0x1e   :  { %4474 = vmatprep.mubr.msk.f32.mxu1 %vm85_vm1, %v3713_v29  ;;  %v63_v24 = vld [vmem:[%s6848_s0 + $0x150] sm:$0xff]  ;;  %v64_v26 = vld [vmem:[%s6848_s0 + $0x158] sm:$0xff]  ;;  %v65_v28 = vld [vmem:[%s6848_s0 + $0x160] sm:$0xff] }
  0x1f   :  { %v3743_v25 = vld [vmem:[%s6848_s0 + $0x350] sm:$0xff]  ;;  %v3744_v27 = vld [vmem:[%s6848_s0 + $0x358] sm:$0xff]  ;;  %v3745_v29 = vld [vmem:[%s6848_s0 + $0x360] sm:$0xff] }
  0x20   :  { %4375 = vmatmul.mubr.msk.f32.gmra.mrb[12].mxu0 %vm85_vm1, %v34_v30  ;;  %v66_v30 = vld [vmem:[%s6848_s0 + $0x168] sm:$0xff] }
  0x21   :  { %4475 = vmatmul.mubr.msk.f32.gmra.mrb[12].mxu1 %vm85_vm1, %v3714_v31  ;;  %4377 = vmatprep.mubr.msk.f32.mxu0 %vm85_vm1, %v35_v32  ;;  %v3746_v31 = vld [vmem:[%s6848_s0 + $0x368] sm:$0xff]  ;;  %v67_v32 = vld [vmem:[%s6848_s0 + $0x170] sm:$0xff] }
  0x22   :  { %4477 = vmatprep.mubr.msk.f32.mxu1 %vm85_vm1, %v3715_v33  ;;  %v3747_v33 = vld [vmem:[%s6848_s0 + $0x370] sm:$0xff] }
  0x24   :  { %4378 = vmatmul.mubr.msk.f32.gmra.mrb[14].mxu0 %vm85_vm1, %v36_v34  ;;  %v68_v34 = vld [vmem:[%s6848_s0 + $0x178] sm:$0xff] }
  0x25   :  { %4478 = vmatmul.mubr.msk.f32.gmra.mrb[14].mxu1 %vm85_vm1, %v3716_v35  ;;  %4380 = vmatprep.mubr.msk.f32.mxu0 %vm85_vm1, %v37_v36  ;;  %v3748_v35 = vld [vmem:[%s6848_s0 + $0x378] sm:$0xff]  ;;  %v69_v36 = vld [vmem:[%s6848_s0 + $0x180] sm:$0xff] }
  0x26   :  { %4480 = vmatprep.mubr.msk.f32.mxu1 %vm85_vm1, %v3717_v37  ;;  %v3749_v37 = vld [vmem:[%s6848_s0 + $0x380] sm:$0xff] }
  0x28   :  { %4381 = vmatmul.mubr.msk.f32.gmra.mrb[16].mxu0 %vm85_vm1, %v38_v38  ;;  %v70_v38 = vld [vmem:[%s6848_s0 + $0x188] sm:$0xff] }
  0x29   :  { %4481 = vmatmul.mubr.msk.f32.gmra.mrb[16].mxu1 %vm85_vm1, %v3718_v39  ;;  %4383 = vmatprep.mubr.msk.f32.mxu0 %vm85_vm1, %v39_v40  ;;  %v3750_v39 = vld [vmem:[%s6848_s0 + $0x388] sm:$0xff]  ;;  %v71_v40 = vld [vmem:[%s6848_s0 + $0x190] sm:$0xff] }
  0x2a   :  { %4483 = vmatprep.mubr.msk.f32.mxu1 %vm85_vm1, %v3719_v41  ;;  %v3751_v41 = vld [vmem:[%s6848_s0 + $0x390] sm:$0xff] }
  0x2c   :  { %4384 = vmatmul.mubr.msk.f32.gmra.mrb[18].mxu0 %vm85_vm1, %v40_v42  ;;  %v72_v42 = vld [vmem:[%s6848_s0 + $0x198] sm:$0xff] }
  0x2d   :  { %4484 = vmatmul.mubr.msk.f32.gmra.mrb[18].mxu1 %vm85_vm1, %v3720_v43  ;;  %4386 = vmatprep.mubr.msk.f32.mxu0 %vm85_vm1, %v41_v44  ;;  %v3752_v43 = vld [vmem:[%s6848_s0 + $0x398] sm:$0xff]  ;;  %v73_v44 = vld [vmem:[%s6848_s0 + $0x1a0] sm:$0xff] }
  0x2e   :  { %4486 = vmatprep.mubr.msk.f32.mxu1 %vm85_vm1, %v3721_v45  ;;  %v3753_v45 = vld [vmem:[%s6848_s0 + $0x3a0] sm:$0xff] }
  0x30   :  { %4387 = vmatmul.mubr.msk.f32.gmra.mrb[20].mxu0 %vm85_vm1, %v42_v46  ;;  %v74_v46 = vld [vmem:[%s6848_s0 + $0x1a8] sm:$0xff] }
  0x31   :  { %4487 = vmatmul.mubr.msk.f32.gmra.mrb[20].mxu1 %vm85_vm1, %v3722_v47  ;;  %4389 = vmatprep.mubr.msk.f32.mxu0 %vm85_vm1, %v43_v48  ;;  %v3754_v47 = vld [vmem:[%s6848_s0 + $0x3a8] sm:$0xff]  ;;  %v75_v48 = vld [vmem:[%s6848_s0 + $0x1b0] sm:$0xff] }
  0x32   :  { %4489 = vmatprep.mubr.msk.f32.mxu1 %vm85_vm1, %v3723_v49  ;;  %v3755_v49 = vld [vmem:[%s6848_s0 + $0x3b0] sm:$0xff] }
  0x34   :  { %4390 = vmatmul.mubr.msk.f32.gmra.mrb[22].mxu0 %vm85_vm1, %v44_v50  ;;  %v76_v50 = vld [vmem:[%s6848_s0 + $0x1b8] sm:$0xff] }
  0x35   :  { %4490 = vmatmul.mubr.msk.f32.gmra.mrb[22].mxu1 %vm85_vm1, %v3724_v51  ;;  %4392 = vmatprep.mubr.msk.f32.mxu0 %vm85_vm1, %v45_v52  ;;  %v3756_v51 = vld [vmem:[%s6848_s0 + $0x3b8] sm:$0xff]  ;;  %v77_v52 = vld [vmem:[%s6848_s0 + $0x1c0] sm:$0xff] }
  0x36   :  { %4492 = vmatprep.mubr.msk.f32.mxu1 %vm85_vm1, %v3725_v53  ;;  %v3757_v53 = vld [vmem:[%s6848_s0 + $0x3c0] sm:$0xff] }
  0x38   :  { %4393 = vmatmul.mubr.msk.f32.gmra.mrb[24].mxu0 %vm85_vm1, %v46_v54  ;;  %v78_v54 = vld [vmem:[%s6848_s0 + $0x1c8] sm:$0xff] }
  0x39   :  { %4493 = vmatmul.mubr.msk.f32.gmra.mrb[24].mxu1 %vm85_vm1, %v3726_v55  ;;  %4395 = vmatprep.mubr.msk.f32.mxu0 %vm85_vm1, %v47_v56  ;;  %v3758_v55 = vld [vmem:[%s6848_s0 + $0x3c8] sm:$0xff]  ;;  %v79_v56 = vld [vmem:[%s6848_s0 + $0x1d0] sm:$0xff] }
  0x3a   :  { %4495 = vmatprep.mubr.msk.f32.mxu1 %vm85_vm1, %v3727_v57  ;;  %v3759_v57 = vld [vmem:[%s6848_s0 + $0x3d0] sm:$0xff] }
  0x3c   :  { %4396 = vmatmul.mubr.msk.f32.gmra.mrb[26].mxu0 %vm85_vm1, %v48_v58  ;;  %v80_v58 = vld [vmem:[%s6848_s0 + $0x1d8] sm:$0xff] }
  0x3d   :  { %4496 = vmatmul.mubr.msk.f32.gmra.mrb[26].mxu1 %vm85_vm1, %v3728_v59  ;;  %4398 = vmatprep.mubr.msk.f32.mxu0 %vm85_vm1, %v49_v60  ;;  %v3760_v59 = vld [vmem:[%s6848_s0 + $0x3d8] sm:$0xff]  ;;  %v81_v60 = vld [vmem:[%s6848_s0 + $0x1e0] sm:$0xff] }
  0x3e   :  { %4498 = vmatprep.mubr.msk.f32.mxu1 %vm85_vm1, %v3729_v61  ;;  %v3761_v61 = vld [vmem:[%s6848_s0 + $0x3e0] sm:$0xff] }
  0x40   :  { %4399 = vmatmul.mubr.msk.f32.gmra.mrb[28].mxu0 %vm85_vm1, %v50_v62  ;;  %v82_v62 = vld [vmem:[%s6848_s0 + $0x1e8] sm:$0xff] }
  0x41   :  { %4499 = vmatmul.mubr.msk.f32.gmra.mrb[28].mxu1 %vm85_vm1, %v3730_v63  ;;  %4401 = vmatprep.mubr.msk.f32.mxu0 %vm85_vm1, %v51_v0  ;;  %v3762_v63 = vld [vmem:[%s6848_s0 + $0x3e8] sm:$0xff]  ;;  %v83_v0 = vld [vmem:[%s6848_s0 + $0x1f0] sm:$0xff] }
  0x42   :  { %4501 = vmatprep.mubr.msk.f32.mxu1 %vm85_vm1, %v3731_v1  ;;  %v3763_v1 = vld [vmem:[%s6848_s0 + $0x3f0] sm:$0xff] }
  0x44   :  { %4402 = vmatmul.mubr.msk.f32.gmra.mrb[30].mxu0 %vm85_vm1, %v52_v2  ;;  %v84_v2 = vld [vmem:[%s6848_s0 + $0x1f8] sm:$0xff] }
  0x45   :  { %4502 = vmatmul.mubr.msk.f32.gmra.mrb[30].mxu1 %vm85_vm1, %v3732_v3  ;;  %4404 = vmatprep.mubr.msk.f32.mxu0 %vm85_vm1, %v53_v4  ;;  %v3764_v3 = vld [vmem:[%s6848_s0 + $0x3f8] sm:$0xff]  ;;  %v3830_v4 = vld [vmem:[%s6848_s0 + $0x400] sm:$0xff] }
  0x46   :  { %4504 = vmatprep.mubr.msk.f32.mxu1 %vm85_vm1, %v3733_v5  ;;  %v3959_v5 = vld [vmem:[%s6848_s0 + $0x600] sm:$0xff] }
  0x48   :  { %4405 = vmatmul.mubr.msk.f32.gmra.mrb[32].mxu0 %vm85_vm1, %v54_v6  ;;  %v3831_v6 = vld [vmem:[%s6848_s0 + $0x408] sm:$0xff] }
  0x49   :  { %4505 = vmatmul.mubr.msk.f32.gmra.mrb[32].mxu1 %vm85_vm1, %v3734_v7  ;;  %4407 = vmatprep.mubr.msk.f32.mxu0 %vm85_vm1, %v55_v8  ;;  %v3960_v7 = vld [vmem:[%s6848_s0 + $0x608] sm:$0xff]  ;;  %v3832_v8 = vld [vmem:[%s6848_s0 + $0x410] sm:$0xff] }
  0x4a   :  { %4507 = vmatprep.mubr.msk.f32.mxu1 %vm85_vm1, %v3735_v9  ;;  %v3961_v9 = vld [vmem:[%s6848_s0 + $0x610] sm:$0xff] }
  0x4c   :  { %4408 = vmatmul.mubr.msk.f32.gmra.mrb[34].mxu0 %vm85_vm1, %v56_v10  ;;  %v3833_v10 = vld [vmem:[%s6848_s0 + $0x418] sm:$0xff] }
  0x4d   :  { %4508 = vmatmul.mubr.msk.f32.gmra.mrb[34].mxu1 %vm85_vm1, %v3736_v11  ;;  %4410 = vmatprep.mubr.msk.f32.mxu0 %vm85_vm1, %v57_v12  ;;  %v3962_v11 = vld [vmem:[%s6848_s0 + $0x618] sm:$0xff]  ;;  %v3834_v12 = vld [vmem:[%s6848_s0 + $0x420] sm:$0xff] }
  0x4e   :  { %4510 = vmatprep.mubr.msk.f32.mxu1 %vm85_vm1, %v3737_v13  ;;  %v3963_v13 = vld [vmem:[%s6848_s0 + $0x620] sm:$0xff] }
  0x50   :  { %4411 = vmatmul.mubr.msk.f32.gmra.mrb[36].mxu0 %vm85_vm1, %v58_v14  ;;  %v3835_v14 = vld [vmem:[%s6848_s0 + $0x428] sm:$0xff] }
  0x51   :  { %4511 = vmatmul.mubr.msk.f32.gmra.mrb[36].mxu1 %vm85_vm1, %v3738_v15  ;;  %4413 = vmatprep.mubr.msk.f32.mxu0 %vm85_vm1, %v59_v16  ;;  %v3964_v15 = vld [vmem:[%s6848_s0 + $0x628] sm:$0xff]  ;;  %v3836_v16 = vld [vmem:[%s6848_s0 + $0x430] sm:$0xff] }
  0x52   :  { %4513 = vmatprep.mubr.msk.f32.mxu1 %vm85_vm1, %v3739_v17  ;;  %v3965_v17 = vld [vmem:[%s6848_s0 + $0x630] sm:$0xff] }
  0x54   :  { %4414 = vmatmul.mubr.msk.f32.gmra.mrb[38].mxu0 %vm85_vm1, %v60_v18  ;;  %v3837_v18 = vld [vmem:[%s6848_s0 + $0x438] sm:$0xff] }
  0x55   :  { %4514 = vmatmul.mubr.msk.f32.gmra.mrb[38].mxu1 %vm85_vm1, %v3740_v19  ;;  %4416 = vmatprep.mubr.msk.f32.mxu0 %vm85_vm1, %v61_v20  ;;  %v3966_v19 = vld [vmem:[%s6848_s0 + $0x638] sm:$0xff]  ;;  %v3838_v20 = vld [vmem:[%s6848_s0 + $0x440] sm:$0xff] }
  0x56   :  { %4516 = vmatprep.mubr.msk.f32.mxu1 %vm85_vm1, %v3741_v21  ;;  %v3967_v21 = vld [vmem:[%s6848_s0 + $0x640] sm:$0xff] }
  0x58   :  { %4417 = vmatmul.mubr.msk.f32.gmra.mrb[40].mxu0 %vm85_vm1, %v62_v22  ;;  %v3839_v22 = vld [vmem:[%s6848_s0 + $0x448] sm:$0xff] }
  0x59   :  { %4517 = vmatmul.mubr.msk.f32.gmra.mrb[40].mxu1 %vm85_vm1, %v3742_v23  ;;  %4419 = vmatprep.mubr.msk.f32.mxu0 %vm85_vm1, %v63_v24  ;;  %v3968_v23 = vld [vmem:[%s6848_s0 + $0x648] sm:$0xff]  ;;  %v3840_v24 = vld [vmem:[%s6848_s0 + $0x450] sm:$0xff] }
  0x5a   :  { %4519 = vmatprep.mubr.msk.f32.mxu1 %vm85_vm1, %v3743_v25  ;;  %v3969_v25 = vld [vmem:[%s6848_s0 + $0x650] sm:$0xff] }
  0x5c   :  { %4420 = vmatmul.mubr.msk.f32.gmra.mrb[42].mxu0 %vm85_vm1, %v64_v26  ;;  %v3841_v26 = vld [vmem:[%s6848_s0 + $0x458] sm:$0xff] }
  0x5d   :  { %4520 = vmatmul.mubr.msk.f32.gmra.mrb[42].mxu1 %vm85_vm1, %v3744_v27  ;;  %4422 = vmatprep.mubr.msk.f32.mxu0 %vm85_vm1, %v65_v28  ;;  %v3970_v27 = vld [vmem:[%s6848_s0 + $0x658] sm:$0xff]  ;;  %v3842_v28 = vld [vmem:[%s6848_s0 + $0x460] sm:$0xff] }
  0x5e   :  { %4522 = vmatprep.mubr.msk.f32.mxu1 %vm85_vm1, %v3745_v29  ;;  %v3971_v29 = vld [vmem:[%s6848_s0 + $0x660] sm:$0xff] }
  0x60   :  { %4423 = vmatmul.mubr.msk.f32.gmra.mrb[44].mxu0 %vm85_vm1, %v66_v30  ;;  %v3843_v30 = vld [vmem:[%s6848_s0 + $0x468] sm:$0xff] }
  0x61   :  { %4523 = vmatmul.mubr.msk.f32.gmra.mrb[44].mxu1 %vm85_vm1, %v3746_v31  ;;  %4425 = vmatprep.mubr.msk.f32.mxu0 %vm85_vm1, %v67_v32  ;;  %v3972_v31 = vld [vmem:[%s6848_s0 + $0x668] sm:$0xff]  ;;  %v3844_v32 = vld [vmem:[%s6848_s0 + $0x470] sm:$0xff] }
  0x62   :  { %4525 = vmatprep.mubr.msk.f32.mxu1 %vm85_vm1, %v3747_v33  ;;  %v3973_v33 = vld [vmem:[%s6848_s0 + $0x670] sm:$0xff] }
  0x64   :  { %4426 = vmatmul.mubr.msk.f32.gmra.mrb[46].mxu0 %vm85_vm1, %v68_v34  ;;  %v3845_v34 = vld [vmem:[%s6848_s0 + $0x478] sm:$0xff] }
  0x65   :  { %4526 = vmatmul.mubr.msk.f32.gmra.mrb[46].mxu1 %vm85_vm1, %v3748_v35  ;;  %4428 = vmatprep.mubr.msk.f32.mxu0 %vm85_vm1, %v69_v36  ;;  %v3974_v35 = vld [vmem:[%s6848_s0 + $0x678] sm:$0xff]  ;;  %v3846_v36 = vld [vmem:[%s6848_s0 + $0x480] sm:$0xff] }
  0x66   :  { %4528 = vmatprep.mubr.msk.f32.mxu1 %vm85_vm1, %v3749_v37  ;;  %v3975_v37 = vld [vmem:[%s6848_s0 + $0x680] sm:$0xff] }
  0x68   :  { %4429 = vmatmul.mubr.msk.f32.gmra.mrb[48].mxu0 %vm85_vm1, %v70_v38  ;;  %v3847_v38 = vld [vmem:[%s6848_s0 + $0x488] sm:$0xff] }
  0x69   :  { %4529 = vmatmul.mubr.msk.f32.gmra.mrb[48].mxu1 %vm85_vm1, %v3750_v39  ;;  %4431 = vmatprep.mubr.msk.f32.mxu0 %vm85_vm1, %v71_v40  ;;  %v3976_v39 = vld [vmem:[%s6848_s0 + $0x688] sm:$0xff]  ;;  %v3848_v40 = vld [vmem:[%s6848_s0 + $0x490] sm:$0xff] }
  0x6a   :  { %4531 = vmatprep.mubr.msk.f32.mxu1 %vm85_vm1, %v3751_v41  ;;  %v3977_v41 = vld [vmem:[%s6848_s0 + $0x690] sm:$0xff] }
  0x6c   :  { %4432 = vmatmul.mubr.msk.f32.gmra.mrb[50].mxu0 %vm85_vm1, %v72_v42  ;;  %v3849_v42 = vld [vmem:[%s6848_s0 + $0x498] sm:$0xff] }
  0x6d   :  { %4532 = vmatmul.mubr.msk.f32.gmra.mrb[50].mxu1 %vm85_vm1, %v3752_v43  ;;  %4434 = vmatprep.mubr.msk.f32.mxu0 %vm85_vm1, %v73_v44  ;;  %v3978_v43 = vld [vmem:[%s6848_s0 + $0x698] sm:$0xff]  ;;  %v3850_v44 = vld [vmem:[%s6848_s0 + $0x4a0] sm:$0xff] }
  0x6e   :  { %4534 = vmatprep.mubr.msk.f32.mxu1 %vm85_vm1, %v3753_v45  ;;  %v3979_v45 = vld [vmem:[%s6848_s0 + $0x6a0] sm:$0xff] }
  0x70   :  { %4435 = vmatmul.mubr.msk.f32.gmra.mrb[52].mxu0 %vm85_vm1, %v74_v46  ;;  %v3851_v46 = vld [vmem:[%s6848_s0 + $0x4a8] sm:$0xff] }
  0x71   :  { %4535 = vmatmul.mubr.msk.f32.gmra.mrb[52].mxu1 %vm85_vm1, %v3754_v47  ;;  %4437 = vmatprep.mubr.msk.f32.mxu0 %vm85_vm1, %v75_v48  ;;  %v3980_v47 = vld [vmem:[%s6848_s0 + $0x6a8] sm:$0xff]  ;;  %v3852_v48 = vld [vmem:[%s6848_s0 + $0x4b0] sm:$0xff] }
  0x72   :  { %4537 = vmatprep.mubr.msk.f32.mxu1 %vm85_vm1, %v3755_v49  ;;  %v3981_v49 = vld [vmem:[%s6848_s0 + $0x6b0] sm:$0xff] }
  0x74   :  { %4438 = vmatmul.mubr.msk.f32.gmra.mrb[54].mxu0 %vm85_vm1, %v76_v50  ;;  %v3853_v50 = vld [vmem:[%s6848_s0 + $0x4b8] sm:$0xff] }
  0x75   :  { %4538 = vmatmul.mubr.msk.f32.gmra.mrb[54].mxu1 %vm85_vm1, %v3756_v51  ;;  %4440 = vmatprep.mubr.msk.f32.mxu0 %vm85_vm1, %v77_v52  ;;  %v3982_v51 = vld [vmem:[%s6848_s0 + $0x6b8] sm:$0xff]  ;;  %v3854_v52 = vld [vmem:[%s6848_s0 + $0x4c0] sm:$0xff] }
  0x76   :  { %4540 = vmatprep.mubr.msk.f32.mxu1 %vm85_vm1, %v3757_v53  ;;  %v3983_v53 = vld [vmem:[%s6848_s0 + $0x6c0] sm:$0xff] }
  0x78   :  { %4441 = vmatmul.mubr.msk.f32.gmra.mrb[56].mxu0 %vm85_vm1, %v78_v54  ;;  %v3855_v54 = vld [vmem:[%s6848_s0 + $0x4c8] sm:$0xff] }
  0x79   :  { %4541 = vmatmul.mubr.msk.f32.gmra.mrb[56].mxu1 %vm85_vm1, %v3758_v55  ;;  %4443 = vmatprep.mubr.msk.f32.mxu0 %vm85_vm1, %v79_v56  ;;  %v3984_v55 = vld [vmem:[%s6848_s0 + $0x6c8] sm:$0xff]  ;;  %v3856_v56 = vld [vmem:[%s6848_s0 + $0x4d0] sm:$0xff] }
  0x7a   :  { %4543 = vmatprep.mubr.msk.f32.mxu1 %vm85_vm1, %v3759_v57  ;;  %v3985_v57 = vld [vmem:[%s6848_s0 + $0x6d0] sm:$0xff] }
  0x7c   :  { %4444 = vmatmul.mubr.msk.f32.gmra.mrb[58].mxu0 %vm85_vm1, %v80_v58  ;;  %v3857_v58 = vld [vmem:[%s6848_s0 + $0x4d8] sm:$0xff] }
  0x7d   :  { %4544 = vmatmul.mubr.msk.f32.gmra.mrb[58].mxu1 %vm85_vm1, %v3760_v59  ;;  %4446 = vmatprep.mubr.msk.f32.mxu0 %vm85_vm1, %v81_v60  ;;  %v3986_v59 = vld [vmem:[%s6848_s0 + $0x6d8] sm:$0xff]  ;;  %v3858_v60 = vld [vmem:[%s6848_s0 + $0x4e0] sm:$0xff] }
  0x7e   :  { %4546 = vmatprep.mubr.msk.f32.mxu1 %vm85_vm1, %v3761_v61  ;;  %v3987_v61 = vld [vmem:[%s6848_s0 + $0x6e0] sm:$0xff] }
  0x80   :  { %4447 = vmatmul.mubr.msk.f32.gmra.mrb[60].mxu0 %vm85_vm1, %v82_v62  ;;  %v3859_v62 = vld [vmem:[%s6848_s0 + $0x4e8] sm:$0xff] }
  0x81   :  { %4547 = vmatmul.mubr.msk.f32.gmra.mrb[60].mxu1 %vm85_vm1, %v3762_v63  ;;  %4449 = vmatprep.mubr.msk.f32.mxu0 %vm85_vm1, %v83_v0  ;;  %v3988_v63 = vld [vmem:[%s6848_s0 + $0x6e8] sm:$0xff]  ;;  %v3860_v0 = vld [vmem:[%s6848_s0 + $0x4f0] sm:$0xff] }
  0x82   :  { %4549 = vmatprep.mubr.msk.f32.mxu1 %vm85_vm1, %v3763_v1  ;;  %v3989_v1 = vld [vmem:[%s6848_s0 + $0x6f0] sm:$0xff] }
  0x84   :  { %4450 = vmatmul.mubr.msk.f32.gmra.mrb[62].mxu0 %vm85_vm1, %v84_v2  ;;  %v3861_v2 = vld [vmem:[%s6848_s0 + $0x4f8] sm:$0xff] }
  0x85   :  { %4550 = vmatmul.mubr.msk.f32.gmra.mrb[62].mxu1 %vm85_vm1, %v3764_v3  ;;  %4556 = vmatprep.mubr.msk.f32.mxu0 %vm85_vm1, %v3830_v4  ;;  %v3990_v3 = vld [vmem:[%s6848_s0 + $0x6f8] sm:$0xff]  ;;  %v3862_v4 = vld [vmem:[%s6848_s0 + $0x500] sm:$0xff] }
  0x86   :  { %4656 = vmatprep.mubr.msk.f32.mxu1 %vm85_vm1, %v3959_v5  ;;  %v3991_v5 = vld [vmem:[%s6848_s0 + $0x700] sm:$0xff] }
  0x88   :  { %4557 = vmatmul.mubr.msk.f32.vlgmr.msra.gmra.mrb[64].mxu0 %vm85_vm1, %v3831_v6  ;;  %v3863_v6 = vld [vmem:[%s6848_s0 + $0x508] sm:$0xff] }
  0x89   :  { %4657 = vmatmul.mubr.msk.f32.vlgmr.msra.gmra.mrb[64].mxu1 %vm85_vm1, %v3960_v7  ;;  %4559 = vmatprep.mubr.msk.f32.mxu0 %vm85_vm1, %v3832_v8  ;;  %v3992_v7 = vld [vmem:[%s6848_s0 + $0x708] sm:$0xff]  ;;  %v3864_v8 = vld [vmem:[%s6848_s0 + $0x510] sm:$0xff] }
  0x8a   :  { %4659 = vmatprep.mubr.msk.f32.mxu1 %vm85_vm1, %v3961_v9  ;;  %v3993_v9 = vld [vmem:[%s6848_s0 + $0x710] sm:$0xff] }
  0x8c   :  { %4560 = vmatmul.mubr.msk.f32.gmra.mrb[66].mxu0 %vm85_vm1, %v3833_v10  ;;  %v3865_v10 = vld [vmem:[%s6848_s0 + $0x518] sm:$0xff] }
  0x8d   :  { %4660 = vmatmul.mubr.msk.f32.gmra.mrb[66].mxu1 %vm85_vm1, %v3962_v11  ;;  %4562 = vmatprep.mubr.msk.f32.mxu0 %vm85_vm1, %v3834_v12  ;;  %v3994_v11 = vld [vmem:[%s6848_s0 + $0x718] sm:$0xff]  ;;  %v3866_v12 = vld [vmem:[%s6848_s0 + $0x520] sm:$0xff] }
  0x8e   :  { %4662 = vmatprep.mubr.msk.f32.mxu1 %vm85_vm1, %v3963_v13  ;;  %v3995_v13 = vld [vmem:[%s6848_s0 + $0x720] sm:$0xff] }
  0x90   :  { %4563 = vmatmul.mubr.msk.f32.gmra.mrb[68].mxu0 %vm85_vm1, %v3835_v14  ;;  %v3867_v14 = vld [vmem:[%s6848_s0 + $0x528] sm:$0xff] }
  0x91   :  { %4663 = vmatmul.mubr.msk.f32.gmra.mrb[68].mxu1 %vm85_vm1, %v3964_v15  ;;  %4565 = vmatprep.mubr.msk.f32.mxu0 %vm85_vm1, %v3836_v16  ;;  %v3996_v15 = vld [vmem:[%s6848_s0 + $0x728] sm:$0xff]  ;;  %v3868_v16 = vld [vmem:[%s6848_s0 + $0x530] sm:$0xff] }
  0x92   :  { %4665 = vmatprep.mubr.msk.f32.mxu1 %vm85_vm1, %v3965_v17  ;;  %v3997_v17 = vld [vmem:[%s6848_s0 + $0x730] sm:$0xff] }
  0x94   :  { %4566 = vmatmul.mubr.msk.f32.gmra.mrb[70].mxu0 %vm85_vm1, %v3837_v18  ;;  %v3869_v18 = vld [vmem:[%s6848_s0 + $0x538] sm:$0xff] }
  0x95   :  { %4666 = vmatmul.mubr.msk.f32.gmra.mrb[70].mxu1 %vm85_vm1, %v3966_v19  ;;  %4568 = vmatprep.mubr.msk.f32.mxu0 %vm85_vm1, %v3838_v20  ;;  %v3998_v19 = vld [vmem:[%s6848_s0 + $0x738] sm:$0xff]  ;;  %v3870_v20 = vld [vmem:[%s6848_s0 + $0x540] sm:$0xff] }
  0x96   :  { %4668 = vmatprep.mubr.msk.f32.mxu1 %vm85_vm1, %v3967_v21  ;;  %v3999_v21 = vld [vmem:[%s6848_s0 + $0x740] sm:$0xff] }
  0x98   :  { %4569 = vmatmul.mubr.msk.f32.gmra.mrb[72].mxu0 %vm85_vm1, %v3839_v22  ;;  %v3871_v22 = vld [vmem:[%s6848_s0 + $0x548] sm:$0xff] }
  0x99   :  { %4669 = vmatmul.mubr.msk.f32.gmra.mrb[72].mxu1 %vm85_vm1, %v3968_v23  ;;  %4571 = vmatprep.mubr.msk.f32.mxu0 %vm85_vm1, %v3840_v24  ;;  %v4000_v23 = vld [vmem:[%s6848_s0 + $0x748] sm:$0xff]  ;;  %v3872_v24 = vld [vmem:[%s6848_s0 + $0x550] sm:$0xff] }
  0x9a   :  { %4671 = vmatprep.mubr.msk.f32.mxu1 %vm85_vm1, %v3969_v25  ;;  %v4001_v25 = vld [vmem:[%s6848_s0 + $0x750] sm:$0xff] }
  0x9c   :  { %4572 = vmatmul.mubr.msk.f32.gmra.mrb[74].mxu0 %vm85_vm1, %v3841_v26  ;;  %v5690_v26 = vld [vmem:[%s6849_s2] ss:$0 sm:$0xff] }
  0x9d   :  { %4672 = vmatmul.mubr.msk.f32.gmra.mrb[74].mxu1 %vm85_vm1, %v3970_v27  ;;  %4574 = vmatprep.mubr.msk.f32.mxu0 %vm85_vm1, %v3842_v28  ;;  %v3873_v27 = vld [vmem:[%s6848_s0 + $0x558] sm:$0xff] }
  0x9e   :  { %4674 = vmatprep.mubr.msk.f32.mxu1 %vm85_vm1, %v3971_v29  ;;  %v4002_v28 = vld [vmem:[%s6848_s0 + $0x758] sm:$0xff]  ;;  %v3874_v29 = vld [vmem:[%s6848_s0 + $0x560] sm:$0xff] }
  0xa0   :  { %4575 = vmatmul.mubr.msk.f32.gmra.mrb[76].mxu0 %vm85_vm1, %v3843_v30  ;;  %v4003_v30 = vld [vmem:[%s6848_s0 + $0x760] sm:$0xff] }
  0xa1   :  { %4675 = vmatmul.mubr.msk.f32.gmra.mrb[76].mxu1 %vm85_vm1, %v3972_v31  ;;  %4577 = vmatprep.mubr.msk.f32.mxu0 %vm85_vm1, %v3844_v32  ;;  %v5709_v31 = vld [vmem:[%s6850_s3] ss:$0 sm:$0xff] }
  0xa2   :  { %4677 = vmatprep.mubr.msk.f32.mxu1 %vm85_vm1, %v3973_v33 }
  0xa4   :  { %4578 = vmatmul.mubr.msk.f32.gmra.mrb[78].mxu0 %vm85_vm1, %v3845_v34 }
  0xa5   :  { %4678 = vmatmul.mubr.msk.f32.gmra.mrb[78].mxu1 %vm85_vm1, %v3974_v35  ;;  %4580 = vmatprep.mubr.msk.f32.mxu0 %vm85_vm1, %v3846_v36 }
  0xa6   :  { %4680 = vmatprep.mubr.msk.f32.mxu1 %vm85_vm1, %v3975_v37 }
  0xa8   :  { %4581 = vmatmul.mubr.msk.f32.gmra.mrb[80].mxu0 %vm85_vm1, %v3847_v38 }
  0xa9   :  { %4681 = vmatmul.mubr.msk.f32.gmra.mrb[80].mxu1 %vm85_vm1, %v3976_v39  ;;  %4583 = vmatprep.mubr.msk.f32.mxu0 %vm85_vm1, %v3848_v40  ;;  %v3875_v40 = vld [vmem:[%s6848_s0 + $0x568] sm:$0xff] }
  0xaa   :  { %4683 = vmatprep.mubr.msk.f32.mxu1 %vm85_vm1, %v3977_v41  ;;  %v4004_v41 = vld [vmem:[%s6848_s0 + $0x768] sm:$0xff] }
  0xac   :  { %4584 = vmatmul.mubr.msk.f32.gmra.mrb[82].mxu0 %vm85_vm1, %v3849_v42 }
  0xad   :  { %4684 = vmatmul.mubr.msk.f32.gmra.mrb[82].mxu1 %vm85_vm1, %v3978_v43  ;;  %4586 = vmatprep.mubr.msk.f32.mxu0 %vm85_vm1, %v3850_v44  ;;  %v3876_v44 = vld [vmem:[%s6848_s0 + $0x570] sm:$0xff] }
  0xae   :  { %4686 = vmatprep.mubr.msk.f32.mxu1 %vm85_vm1, %v3979_v45  ;;  %v4005_v45 = vld [vmem:[%s6848_s0 + $0x770] sm:$0xff] }
  0xb0   :  { %4587 = vmatmul.mubr.msk.f32.gmra.mrb[84].mxu0 %vm85_vm1, %v3851_v46 }
  0xb1   :  { %4687 = vmatmul.mubr.msk.f32.gmra.mrb[84].mxu1 %vm85_vm1, %v3980_v47  ;;  %4589 = vmatprep.mubr.msk.f32.mxu0 %vm85_vm1, %v3852_v48 }
  0xb2   :  { %4689 = vmatprep.mubr.msk.f32.mxu1 %vm85_vm1, %v3981_v49 }
  0xb4   :  { %4590 = vmatmul.mubr.msk.f32.gmra.mrb[86].mxu0 %vm85_vm1, %v3853_v50 }
  0xb5   :  { %4690 = vmatmul.mubr.msk.f32.gmra.mrb[86].mxu1 %vm85_vm1, %v3982_v51  ;;  %4592 = vmatprep.mubr.msk.f32.mxu0 %vm85_vm1, %v3854_v52 }
  0xb6   :  { %4692 = vmatprep.mubr.msk.f32.mxu1 %vm85_vm1, %v3983_v53 }
  0xb8   :  { %4593 = vmatmul.mubr.msk.f32.gmra.mrb[88].mxu0 %vm85_vm1, %v3855_v54 }
  0xb9   :  { %4693 = vmatmul.mubr.msk.f32.gmra.mrb[88].mxu1 %vm85_vm1, %v3984_v55  ;;  %4595 = vmatprep.mubr.msk.f32.mxu0 %vm85_vm1, %v3856_v56 }
  0xba   :  { %4695 = vmatprep.mubr.msk.f32.mxu1 %vm85_vm1, %v3985_v57 }
  0xbc   :  { %4596 = vmatmul.mubr.msk.f32.gmra.mrb[90].mxu0 %vm85_vm1, %v3857_v58 }
  0xbd   :  { %4696 = vmatmul.mubr.msk.f32.gmra.mrb[90].mxu1 %vm85_vm1, %v3986_v59  ;;  %4598 = vmatprep.mubr.msk.f32.mxu0 %vm85_vm1, %v3858_v60  ;;  %v3877_v60 = vld [vmem:[%s6848_s0 + $0x578] sm:$0xff] }
  0xbe   :  { %4698 = vmatprep.mubr.msk.f32.mxu1 %vm85_vm1, %v3987_v61  ;;  %v4006_v61 = vld [vmem:[%s6848_s0 + $0x778] sm:$0xff] }
  0xc0   :  { %4599 = vmatmul.mubr.msk.f32.gmra.mrb[92].mxu0 %vm85_vm1, %v3859_v62 }
  0xc1   :  { %4699 = vmatmul.mubr.msk.f32.gmra.mrb[92].mxu1 %vm85_vm1, %v3988_v63  ;;  %4601 = vmatprep.mubr.msk.f32.mxu0 %vm85_vm1, %v3860_v0 }
  0xc2   :  { %4701 = vmatprep.mubr.msk.f32.mxu1 %vm85_vm1, %v3989_v1  ;;  %v3878_v1 = vld [vmem:[%s6848_s0 + $0x580] sm:$0xff] }
  0xc4   :  { %4602 = vmatmul.mubr.msk.f32.gmra.mrb[94].mxu0 %vm85_vm1, %v3861_v2  ;;  %v4007_v2 = vld [vmem:[%s6848_s0 + $0x780] sm:$0xff] }
  0xc5   :  { %4702 = vmatmul.mubr.msk.f32.gmra.mrb[94].mxu1 %vm85_vm1, %v3990_v3  ;;  %4604 = vmatprep.mubr.msk.f32.mxu0 %vm85_vm1, %v3862_v4 }
  0xc6   :  { %4704 = vmatprep.mubr.msk.f32.mxu1 %vm85_vm1, %v3991_v5 }
  0xc8   :  { %4605 = vmatmul.mubr.msk.f32.gmra.mrb[96].mxu0 %vm85_vm1, %v3863_v6 }
  0xc9   :  { %4705 = vmatmul.mubr.msk.f32.gmra.mrb[96].mxu1 %vm85_vm1, %v3992_v7  ;;  %4607 = vmatprep.mubr.msk.f32.mxu0 %vm85_vm1, %v3864_v8 }
  0xca   :  { %4707 = vmatprep.mubr.msk.f32.mxu1 %vm85_vm1, %v3993_v9 }
  0xcc   :  { %4608 = vmatmul.mubr.msk.f32.gmra.mrb[98].mxu0 %vm85_vm1, %v3865_v10 }
  0xcd   :  { %4708 = vmatmul.mubr.msk.f32.gmra.mrb[98].mxu1 %vm85_vm1, %v3994_v11  ;;  %4610 = vmatprep.mubr.msk.f32.mxu0 %vm85_vm1, %v3866_v12 }
  0xce   :  { %4710 = vmatprep.mubr.msk.f32.mxu1 %vm85_vm1, %v3995_v13 }
  0xd0   :  { %4611 = vmatmul.mubr.msk.f32.gmra.mrb[100].mxu0 %vm85_vm1, %v3867_v14 }
  0xd1   :  { %4711 = vmatmul.mubr.msk.f32.gmra.mrb[100].mxu1 %vm85_vm1, %v3996_v15  ;;  %4613 = vmatprep.mubr.msk.f32.mxu0 %vm85_vm1, %v3868_v16 }
  0xd2   :  { %4713 = vmatprep.mubr.msk.f32.mxu1 %vm85_vm1, %v3997_v17 }
  0xd4   :  { %4614 = vmatmul.mubr.msk.f32.gmra.mrb[102].mxu0 %vm85_vm1, %v3869_v18  ;;  %v3879_v18 = vld [vmem:[%s6848_s0 + $0x588] sm:$0xff] }
  0xd5   :  { %4714 = vmatmul.mubr.msk.f32.gmra.mrb[102].mxu1 %vm85_vm1, %v3998_v19  ;;  %4616 = vmatprep.mubr.msk.f32.mxu0 %vm85_vm1, %v3870_v20  ;;  %v4008_v19 = vld [vmem:[%s6848_s0 + $0x788] sm:$0xff] }
  0xd6   :  { %4716 = vmatprep.mubr.msk.f32.mxu1 %vm85_vm1, %v3999_v21 }
  0xd8   :  { %4617 = vmatmul.mubr.msk.f32.gmra.mrb[104].mxu0 %vm85_vm1, %v3871_v22 }
  0xd9   :  { %4717 = vmatmul.mubr.msk.f32.gmra.mrb[104].mxu1 %vm85_vm1, %v4000_v23  ;;  %4619 = vmatprep.mubr.msk.f32.mxu0 %vm85_vm1, %v3872_v24  ;;  %v3880_v23 = vld [vmem:[%s6848_s0 + $0x590] sm:$0xff] }
  0xda   :  { %4719 = vmatprep.mubr.msk.f32.mxu1 %vm85_vm1, %v4001_v25  ;;  %v4009_v24 = vld [vmem:[%s6848_s0 + $0x790] sm:$0xff] }
  0xdb   :  { %v4358_v32 = vpop.f32.mrb[0].mxu0 }
  0xdc   :  { %v4458_v33 = vpop.f32.mrb[0].mxu1  ;;  %v674_v34 = vmul.f32 %v4358_v32, %v5690_v26  ;;  %v348_v36 = vpop.f32.mrb[1].mxu0  ;;  %4620 = vmatmul.mubr.msk.f32.gmra.mrb[106].mxu0 %vm85_vm1, %v3873_v27 }
  0xdd   :  { %v1514_v35 = vmul.f32 %v4458_v33, %v5690_v26  ;;  %v1194_v37 = vpop.f32.mrb[1].mxu1  ;;  %4720 = vmatmul.mubr.msk.f32.gmra.mrb[106].mxu1 %vm85_vm1, %v4002_v28  ;;  %v673_v38 = vmul.f32 %v5690_v26, %v348_v36  ;;  %4622 = vmatprep.mubr.msk.f32.mxu0 %vm85_vm1, %v3874_v29 }
  0xde   :  { %v1513_v39 = vmul.f32 %v5690_v26, %v1194_v37  ;;  %4722 = vmatprep.mubr.msk.f32.mxu1 %vm85_vm1, %v4003_v30  ;;  %v744_v42 = vadd.f32 %v5709_v31, %v674_v34 }
  0xdf   :  { %v1578_v43 = vadd.f32 %v5709_v31, %v1514_v35  ;;  %v743_v46 = vadd.f32 %v5709_v31, %v673_v38  ;;  %v4361_v48 = vpop.f32.mrb[2].mxu0 }
  0xe0   :  { %v1577_v47 = vadd.f32 %v5709_v31, %v1513_v39  ;;  %v4461_v49 = vpop.f32.mrb[2].mxu1  ;;  %v808_v50 = vmax.f32 %v744_v42, 0.0  ;;  %v676_v52 = vmul.f32 %v4361_v48, %v5690_v26  ;;  %v358_v54 = vpop.f32.mrb[3].mxu0  ;;  %4623 = vmatmul.mubr.msk.f32.gmra.mrb[108].mxu0 %vm85_vm1, %v3875_v40  ;;  %v3881_v42 = vld [vmem:[%s6848_s0 + $0x598] sm:$0xff]  ;;  %v4011_v48 = vld [vmem:[%s6848_s0 + $0x7a0] sm:$0xff] }
  0xe1   :  { %v1642_v51 = vmax.f32 %v1578_v43, 0.0  ;;  %v1516_v53 = vmul.f32 %v4461_v49, %v5690_v26  ;;  %v1204_v55 = vpop.f32.mrb[3].mxu1  ;;  %4723 = vmatmul.mubr.msk.f32.gmra.mrb[108].mxu1 %vm85_vm1, %v4004_v41  ;;  %v807_v56 = vmax.f32 %v743_v46, 0.0  ;;  %v675_v58 = vmul.f32 %v5690_v26, %v358_v54  ;;  %4625 = vmatprep.mubr.msk.f32.mxu0 %vm85_vm1, %v3876_v44  ;;  %v4010_v43 = vld [vmem:[%s6848_s0 + $0x798] sm:$0xff] }
  0xe2   :  { %v1641_v57 = vmax.f32 %v1577_v47, 0.0  ;;  %v1515_v59 = vmul.f32 %v5690_v26, %v1204_v55  ;;  %4725 = vmatprep.mubr.msk.f32.mxu1 %vm85_vm1, %v4005_v45  ;;  %v746_v63 = vadd.f32 %v5709_v31, %v676_v52  ;;  %v3882_v47 = vld [vmem:[%s6848_s0 + $0x5a0] sm:$0xff] }
  0xe3   :  { %v5749_v62 = vmax.f32 %v808_v50, %v1642_v51  ;;  %v1580_v0 = vadd.f32 %v5709_v31, %v1516_v53  ;;  %v745_v4 = vadd.f32 %v5709_v31, %v675_v58  ;;  %v4364_v6 = vpop.f32.mrb[4].mxu0 }
  0xe4   :  { %v5759_v3 = vmax.f32 %v807_v56, %v1641_v57  ;;  %v1579_v5 = vadd.f32 %v5709_v31, %v1515_v59  ;;  %v4464_v7 = vpop.f32.mrb[4].mxu1  ;;  %v810_v8 = vmax.f32 %v746_v63, 0.0  ;;  %v678_v10 = vmul.f32 %v4364_v6, %v5690_v26  ;;  %v368_v12 = vpop.f32.mrb[5].mxu0  ;;  %4626 = vmatmul.mubr.msk.f32.gmra.mrb[110].mxu0 %vm85_vm1, %v3877_v60 }
  0xe5   :  { %v1644_v9 = vmax.f32 %v1580_v0, 0.0  ;;  %v1518_v11 = vmul.f32 %v4464_v7, %v5690_v26  ;;  %v1214_v13 = vpop.f32.mrb[5].mxu1  ;;  %4726 = vmatmul.mubr.msk.f32.gmra.mrb[110].mxu1 %vm85_vm1, %v4006_v61  ;;  %v809_v14 = vmax.f32 %v745_v4, 0.0  ;;  %v677_v16 = vmul.f32 %v5690_v26, %v368_v12  ;;  %4628 = vmatprep.mubr.msk.f32.mxu0 %vm85_vm1, %v3878_v1  ;;  %v3883_v1 = vld [vmem:[%s6848_s0 + $0x5a8] sm:$0xff]  ;;  %v3884_v7 = vld [vmem:[%s6848_s0 + $0x5b0] sm:$0xff] }
  0xe6   :  { %v1643_v15 = vmax.f32 %v1579_v5, 0.0  ;;  %v1517_v17 = vmul.f32 %v5690_v26, %v1214_v13  ;;  %4728 = vmatprep.mubr.msk.f32.mxu1 %vm85_vm1, %v4007_v2  ;;  %v748_v21 = vadd.f32 %v5709_v31, %v678_v10  ;;  %v4012_v2 = vld [vmem:[%s6848_s0 + $0x7a8] sm:$0xff] }
  0xe7   :  { %v5777_v20 = vmax.f32 %v810_v8, %v1644_v9  ;;  %v1582_v22 = vadd.f32 %v5709_v31, %v1518_v11  ;;  %v747_v27 = vadd.f32 %v5709_v31, %v677_v16  ;;  %v4367_v29 = vpop.f32.mrb[6].mxu0  ;;  %v4013_v8 = vld [vmem:[%s6848_s0 + $0x7b0] sm:$0xff] }
  0xe8   :  { %v5787_v25 = vmax.f32 %v809_v14, %v1643_v15  ;;  %v1581_v28 = vadd.f32 %v5709_v31, %v1517_v17  ;;  %v4467_v30 = vpop.f32.mrb[6].mxu1  ;;  %v812_v32 = vmax.f32 %v748_v21, 0.0  ;;  %v680_v34 = vmul.f32 %v4367_v29, %v5690_v26  ;;  %v378_v36 = vpop.f32.mrb[7].mxu0  ;;  %4629 = vmatmul.mubr.msk.f32.gmra.mrb[112].mxu0 %vm85_vm1, %v3879_v18 }
  0xe9   :  { %v1646_v33 = vmax.f32 %v1582_v22, 0.0  ;;  %v1520_v35 = vmul.f32 %v4467_v30, %v5690_v26  ;;  %v1224_v37 = vpop.f32.mrb[7].mxu1  ;;  %4729 = vmatmul.mubr.msk.f32.gmra.mrb[112].mxu1 %vm85_vm1, %v4008_v19  ;;  %v811_v38 = vmax.f32 %v747_v27, 0.0  ;;  %v679_v40 = vmul.f32 %v5690_v26, %v378_v36  ;;  %4631 = vmatprep.mubr.msk.f32.mxu0 %vm85_vm1, %v3880_v23  ;;  %v3885_v27 = vld [vmem:[%s6848_s0 + $0x5b8] sm:$0xff] }
  0xea   :  { %v1645_v39 = vmax.f32 %v1581_v28, 0.0  ;;  %v1519_v41 = vmul.f32 %v5690_v26, %v1224_v37  ;;  %4731 = vmatprep.mubr.msk.f32.mxu1 %vm85_vm1, %v4009_v24  ;;  %v750_v45 = vadd.f32 %v5709_v31, %v680_v34  ;;  %v4014_v28 = vld [vmem:[%s6848_s0 + $0x7b8] sm:$0xff]  ;;  %v4015_v34 = vld [vmem:[%s6848_s0 + $0x7c0] sm:$0xff] }
  0xeb   :  { %v5805_v44 = vmax.f32 %v812_v32, %v1646_v33  ;;  %v1584_v46 = vadd.f32 %v5709_v31, %v1520_v35  ;;  %v749_v50 = vadd.f32 %v5709_v31, %v679_v40  ;;  %v4370_v52 = vpop.f32.mrb[8].mxu0  ;;  %v3886_v33 = vld [vmem:[%s6848_s0 + $0x5c0] sm:$0xff] }
  0xec   :  { %v5815_v49 = vmax.f32 %v811_v38, %v1645_v39  ;;  %v1583_v51 = vadd.f32 %v5709_v31, %v1519_v41  ;;  %v4470_v53 = vpop.f32.mrb[8].mxu1  ;;  %v814_v54 = vmax.f32 %v750_v45, 0.0  ;;  %v682_v56 = vmul.f32 %v4370_v52, %v5690_v26  ;;  %v388_v58 = vpop.f32.mrb[9].mxu0  ;;  %4632 = vmatmul.mubr.msk.f32.gmra.mrb[114].mxu0 %vm85_vm1, %v3881_v42  ;;  %v3887_v52 = vld [vmem:[%s6848_s0 + $0x5c8] sm:$0xff] }
  0xed   :  { %v1648_v55 = vmax.f32 %v1584_v46, 0.0  ;;  %v1522_v57 = vmul.f32 %v4470_v53, %v5690_v26  ;;  %v1234_v59 = vpop.f32.mrb[9].mxu1  ;;  %4732 = vmatmul.mubr.msk.f32.gmra.mrb[114].mxu1 %vm85_vm1, %v4010_v43  ;;  %v813_v60 = vmax.f32 %v749_v50, 0.0  ;;  %v681_v63 = vmul.f32 %v5690_v26, %v388_v58  ;;  %4634 = vmatprep.mubr.msk.f32.mxu0 %vm85_vm1, %v3882_v47  ;;  %v4016_v53 = vld [vmem:[%s6848_s0 + $0x7c8] sm:$0xff]  ;;  %v4017_v58 = vld [vmem:[%s6848_s0 + $0x7d0] sm:$0xff] }
  0xee   :  { %v1647_v61 = vmax.f32 %v1583_v51, 0.0  ;;  %v1521_v0 = vmul.f32 %v5690_v26, %v1234_v59  ;;  %4734 = vmatprep.mubr.msk.f32.mxu1 %vm85_vm1, %v4011_v48  ;;  %v752_v5 = vadd.f32 %v5709_v31, %v682_v56 }
  0xef   :  { %v5833_v4 = vmax.f32 %v814_v54, %v1648_v55  ;;  %v1586_v6 = vadd.f32 %v5709_v31, %v1522_v57  ;;  %v751_v10 = vadd.f32 %v5709_v31, %v681_v63  ;;  %v4373_v12 = vpop.f32.mrb[10].mxu0  ;;  %v3888_v57 = vld [vmem:[%s6848_s0 + $0x5d0] sm:$0xff] }
  0xf0   :  { %v5843_v9 = vmax.f32 %v813_v60, %v1647_v61  ;;  %v1585_v11 = vadd.f32 %v5709_v31, %v1521_v0  ;;  %v4473_v13 = vpop.f32.mrb[10].mxu1  ;;  %v816_v14 = vmax.f32 %v752_v5, 0.0  ;;  %v684_v16 = vmul.f32 %v4373_v12, %v5690_v26  ;;  %v398_v18 = vpop.f32.mrb[11].mxu0  ;;  %4635 = vmatmul.mubr.msk.f32.gmra.mrb[116].mxu0 %vm85_vm1, %v3883_v1 }
  0xf1   :  { %v1650_v15 = vmax.f32 %v1586_v6, 0.0  ;;  %v1524_v17 = vmul.f32 %v4473_v13, %v5690_v26  ;;  %v1244_v19 = vpop.f32.mrb[11].mxu1  ;;  %4735 = vmatmul.mubr.msk.f32.gmra.mrb[116].mxu1 %vm85_vm1, %v4012_v2  ;;  %v815_v21 = vmax.f32 %v751_v10, 0.0  ;;  %v683_v23 = vmul.f32 %v5690_v26, %v398_v18  ;;  %4637 = vmatprep.mubr.msk.f32.mxu0 %vm85_vm1, %v3884_v7 }
  0xf2   :  { %v1649_v22 = vmax.f32 %v1585_v11, 0.0  ;;  %v1523_v24 = vmul.f32 %v5690_v26, %v1244_v19  ;;  %4737 = vmatprep.mubr.msk.f32.mxu1 %vm85_vm1, %v4013_v8  ;;  %v754_v30 = vadd.f32 %v5709_v31, %v684_v16  ;;  %v3890_v19 = vld [vmem:[%s6848_s0 + $0x5e0] sm:$0xff] }
  0xf3   :  { %v5861_v29 = vmax.f32 %v816_v14, %v1650_v15  ;;  %v1588_v32 = vadd.f32 %v5709_v31, %v1524_v17  ;;  %v753_v36 = vadd.f32 %v5709_v31, %v683_v23  ;;  %v4376_v38 = vpop.f32.mrb[12].mxu0  ;;  %v3889_v14 = vld [vmem:[%s6848_s0 + $0x5d8] sm:$0xff] }
  0xf4   :  { %v5871_v35 = vmax.f32 %v815_v21, %v1649_v22  ;;  %v1587_v37 = vadd.f32 %v5709_v31, %v1523_v24  ;;  %v4476_v39 = vpop.f32.mrb[12].mxu1  ;;  %v818_v40 = vmax.f32 %v754_v30, 0.0  ;;  %v686_v42 = vmul.f32 %v4376_v38, %v5690_v26  ;;  %v408_v45 = vpop.f32.mrb[13].mxu0  ;;  %4638 = vmatmul.mubr.msk.f32.gmra.mrb[118].mxu0 %vm85_vm1, %v3885_v27  ;;  %v4018_v15 = vld [vmem:[%s6848_s0 + $0x7d8] sm:$0xff]  ;;  %v4019_v21 = vld [vmem:[%s6848_s0 + $0x7e0] sm:$0xff] }
  0xf5   :  { %v1652_v41 = vmax.f32 %v1588_v32, 0.0  ;;  %v1526_v43 = vmul.f32 %v4476_v39, %v5690_v26  ;;  %v1254_v46 = vpop.f32.mrb[13].mxu1  ;;  %4738 = vmatmul.mubr.msk.f32.gmra.mrb[118].mxu1 %vm85_vm1, %v4014_v28  ;;  %v817_v47 = vmax.f32 %v753_v36, 0.0  ;;  %v685_v50 = vmul.f32 %v5690_v26, %v408_v45  ;;  %4640 = vmatprep.mubr.msk.f32.mxu0 %vm85_vm1, %v3886_v33 }
  0xf6   :  { %v1651_v48 = vmax.f32 %v1587_v37, 0.0  ;;  %v1525_v51 = vmul.f32 %v5690_v26, %v1254_v46  ;;  %4740 = vmatprep.mubr.msk.f32.mxu1 %vm85_vm1, %v4015_v34  ;;  %v756_v55 = vadd.f32 %v5709_v31, %v686_v42  ;;  %v3891_v42 = vld [vmem:[%s6848_s0 + $0x5e8] sm:$0xff] }
  0xf7   :  { %v5889_v54 = vmax.f32 %v818_v40, %v1652_v41  ;;  %v1590_v56 = vadd.f32 %v5709_v31, %v1526_v43  ;;  %v755_v60 = vadd.f32 %v5709_v31, %v685_v50  ;;  %v4379_v63 = vpop.f32.mrb[14].mxu0  ;;  %v4020_v43 = vld [vmem:[%s6848_s0 + $0x7e8] sm:$0xff]  ;;  %v4021_v50 = vld [vmem:[%s6848_s0 + $0x7f0] sm:$0xff] }
  0xf8   :  { %v5899_v59 = vmax.f32 %v817_v47, %v1651_v48  ;;  %v1589_v61 = vadd.f32 %v5709_v31, %v1525_v51  ;;  %v4479_v0 = vpop.f32.mrb[14].mxu1  ;;  %v820_v1 = vmax.f32 %v756_v55, 0.0  ;;  %v688_v5 = vmul.f32 %v4379_v63, %v5690_v26  ;;  %v418_v7 = vpop.f32.mrb[15].mxu0  ;;  %4641 = vmatmul.mubr.msk.f32.gmra.mrb[120].mxu0 %vm85_vm1, %v3887_v52  ;;  %v3892_v48 = vld [vmem:[%s6848_s0 + $0x5f0] sm:$0xff] }
  0xf9   :  { %v1654_v2 = vmax.f32 %v1590_v56, 0.0  ;;  %v1528_v6 = vmul.f32 %v4479_v0, %v5690_v26  ;;  %v1264_v8 = vpop.f32.mrb[15].mxu1  ;;  %4741 = vmatmul.mubr.msk.f32.gmra.mrb[120].mxu1 %vm85_vm1, %v4016_v53  ;;  %v819_v10 = vmax.f32 %v755_v60, 0.0  ;;  %v687_v12 = vmul.f32 %v5690_v26, %v418_v7  ;;  %4643 = vmatprep.mubr.msk.f32.mxu0 %vm85_vm1, %v3888_v57  ;;  %v3893_v7 = vld [vmem:[%s6848_s0 + $0x5f8] sm:$0xff] }
  0xfa   :  { %v1653_v11 = vmax.f32 %v1589_v61, 0.0  ;;  %v1527_v13 = vmul.f32 %v5690_v26, %v1264_v8  ;;  %4743 = vmatprep.mubr.msk.f32.mxu1 %vm85_vm1, %v4017_v58  ;;  %v758_v17 = vadd.f32 %v5709_v31, %v688_v5  ;;  %v4022_v8 = vld [vmem:[%s6848_s0 + $0x7f8] sm:$0xff] }
  0xfb   :  { %v5917_v16 = vmax.f32 %v820_v1, %v1654_v2  ;;  %v1592_v18 = vadd.f32 %v5709_v31, %v1528_v6  ;;  %v757_v23 = vadd.f32 %v5709_v31, %v687_v12  ;;  %v4382_v27 = vpop.f32.mrb[16].mxu0 }
  0xfc   :  { %v5927_v22 = vmax.f32 %v819_v10, %v1653_v11  ;;  %v1591_v24 = vadd.f32 %v5709_v31, %v1527_v13  ;;  %v4482_v28 = vpop.f32.mrb[16].mxu1  ;;  %v822_v30 = vmax.f32 %v758_v17, 0.0  ;;  %v690_v33 = vmul.f32 %v4382_v27, %v5690_v26  ;;  %v428_v36 = vpop.f32.mrb[17].mxu0  ;;  %4644 = vmatmul.mubr.msk.f32.gmra.mrb[122].mxu0 %vm85_vm1, %v3889_v14 }
  0xfd   :  { %v1656_v32 = vmax.f32 %v1592_v18, 0.0  ;;  %v1530_v34 = vmul.f32 %v4482_v28, %v5690_v26  ;;  %v1274_v37 = vpop.f32.mrb[17].mxu1  ;;  %4744 = vmatmul.mubr.msk.f32.gmra.mrb[122].mxu1 %vm85_vm1, %v4018_v15  ;;  %v821_v38 = vmax.f32 %v757_v23, 0.0  ;;  %v689_v40 = vmul.f32 %v5690_v26, %v428_v36  ;;  %4646 = vmatprep.mubr.msk.f32.mxu0 %vm85_vm1, %v3890_v19 }
  0xfe   :  { %v1655_v39 = vmax.f32 %v1591_v24, 0.0  ;;  %v1529_v41 = vmul.f32 %v5690_v26, %v1274_v37  ;;  %4746 = vmatprep.mubr.msk.f32.mxu1 %vm85_vm1, %v4019_v21  ;;  %v760_v46 = vadd.f32 %v5709_v31, %v690_v33 }
  0xff   :  { %v5945_v45 = vmax.f32 %v822_v30, %v1656_v32  ;;  %v1594_v47 = vadd.f32 %v5709_v31, %v1530_v34  ;;  %v759_v52 = vadd.f32 %v5709_v31, %v689_v40  ;;  %v4385_v55 = vpop.f32.mrb[18].mxu0 }
 0x100   :  { %v5955_v51 = vmax.f32 %v821_v38, %v1655_v39  ;;  %v1593_v53 = vadd.f32 %v5709_v31, %v1529_v41  ;;  %v4485_v56 = vpop.f32.mrb[18].mxu1  ;;  %v824_v57 = vmax.f32 %v760_v46, 0.0  ;;  %v692_v60 = vmul.f32 %v4385_v55, %v5690_v26  ;;  %v438_v63 = vpop.f32.mrb[19].mxu0  ;;  %4647 = vmatmul.mubr.msk.f32.gmra.mrb[124].mxu0 %vm85_vm1, %v3891_v42 }
 0x101   :  { %v1658_v58 = vmax.f32 %v1594_v47, 0.0  ;;  %v1532_v61 = vmul.f32 %v4485_v56, %v5690_v26  ;;  %v1284_v0 = vpop.f32.mrb[19].mxu1  ;;  %4747 = vmatmul.mubr.msk.f32.gmra.mrb[124].mxu1 %vm85_vm1, %v4020_v43  ;;  %v823_v1 = vmax.f32 %v759_v52, 0.0  ;;  %v691_v5 = vmul.f32 %v5690_v26, %v438_v63  ;;  %4649 = vmatprep.mubr.msk.f32.mxu0 %vm85_vm1, %v3892_v48 }
 0x102   :  { %v1657_v2 = vmax.f32 %v1593_v53, 0.0  ;;  %v1531_v6 = vmul.f32 %v5690_v26, %v1284_v0  ;;  %4749 = vmatprep.mubr.msk.f32.mxu1 %vm85_vm1, %v4021_v50  ;;  %v762_v11 = vadd.f32 %v5709_v31, %v692_v60 }
 0x103   :  { %v5973_v10 = vmax.f32 %v824_v57, %v1658_v58  ;;  %v1596_v12 = vadd.f32 %v5709_v31, %v1532_v61  ;;  %v761_v14 = vadd.f32 %v5709_v31, %v691_v5  ;;  %v4388_v17 = vpop.f32.mrb[20].mxu0 }
 0x104   :  { %v5977_v13 = vmax.f32 %v823_v1, %v1657_v2  ;;  %v1595_v15 = vadd.f32 %v5709_v31, %v1531_v6  ;;  %v4488_v18 = vpop.f32.mrb[20].mxu1  ;;  %v826_v19 = vmax.f32 %v762_v11, 0.0  ;;  %v694_v23 = vmul.f32 %v4388_v17, %v5690_v26  ;;  %v448_v27 = vpop.f32.mrb[21].mxu0  ;;  %4650 = vmatmul.mubr.msk.f32.gmra.mrb[126].mxu0 %vm85_vm1, %v3893_v7 }
 0x105   :  { %v1660_v21 = vmax.f32 %v1596_v12, 0.0  ;;  %v1534_v24 = vmul.f32 %v4488_v18, %v5690_v26  ;;  %v1294_v28 = vpop.f32.mrb[21].mxu1  ;;  %4750 = vmatmul.mubr.msk.f32.gmra.mrb[126].mxu1 %vm85_vm1, %v4022_v8  ;;  %v825_v30 = vmax.f32 %v761_v14, 0.0  ;;  %v693_v33 = vmul.f32 %v5690_v26, %v448_v27 }
 0x106   :  { %v1659_v32 = vmax.f32 %v1595_v15, 0.0  ;;  %v1533_v34 = vmul.f32 %v5690_v26, %v1294_v28  ;;  %v764_v37 = vadd.f32 %v5709_v31, %v694_v23 }
 0x107   :  { %v5987_v36 = vmax.f32 %v826_v19, %v1660_v21  ;;  %v1598_v38 = vadd.f32 %v5709_v31, %v1534_v24  ;;  %v763_v40 = vadd.f32 %v5709_v31, %v693_v33  ;;  %v4391_v42 = vpop.f32.mrb[22].mxu0 }
 0x108   :  { %v5991_v39 = vmax.f32 %v825_v30, %v1659_v32  ;;  %v1597_v41 = vadd.f32 %v5709_v31, %v1533_v34  ;;  %v4491_v43 = vpop.f32.mrb[22].mxu1  ;;  %v828_v46 = vmax.f32 %v764_v37, 0.0  ;;  %v696_v48 = vmul.f32 %v4391_v42, %v5690_v26  ;;  %v458_v52 = vpop.f32.mrb[23].mxu0 }
 0x109   :  { %v1662_v47 = vmax.f32 %v1598_v38, 0.0  ;;  %v1536_v50 = vmul.f32 %v4491_v43, %v5690_v26  ;;  %v1304_v53 = vpop.f32.mrb[23].mxu1  ;;  %v827_v55 = vmax.f32 %v763_v40, 0.0  ;;  %v695_v57 = vmul.f32 %v5690_v26, %v458_v52 }
 0x10a   :  { %v1661_v56 = vmax.f32 %v1597_v41, 0.0  ;;  %v1535_v58 = vmul.f32 %v5690_v26, %v1304_v53  ;;  %v766_v61 = vadd.f32 %v5709_v31, %v696_v48 }
 0x10b   :  { %v5999_v60 = vmax.f32 %v828_v46, %v1662_v47  ;;  %v1600_v63 = vadd.f32 %v5709_v31, %v1536_v50  ;;  %v765_v1 = vadd.f32 %v5709_v31, %v695_v57  ;;  %v4394_v5 = vpop.f32.mrb[24].mxu0 }
 0x10c   :  { %v6003_v0 = vmax.f32 %v827_v55, %v1661_v56  ;;  %v1599_v2 = vadd.f32 %v5709_v31, %v1535_v58  ;;  %v4494_v6 = vpop.f32.mrb[24].mxu1  ;;  %v830_v7 = vmax.f32 %v766_v61, 0.0  ;;  %v698_v11 = vmul.f32 %v4394_v5, %v5690_v26  ;;  %v468_v14 = vpop.f32.mrb[25].mxu0 }
 0x10d   :  { %v1664_v8 = vmax.f32 %v1600_v63, 0.0  ;;  %v1538_v12 = vmul.f32 %v4494_v6, %v5690_v26  ;;  %v1314_v15 = vpop.f32.mrb[25].mxu1  ;;  %v829_v17 = vmax.f32 %v765_v1, 0.0  ;;  %v697_v19 = vmul.f32 %v5690_v26, %v468_v14 }
 0x10e   :  { %v1663_v18 = vmax.f32 %v1599_v2, 0.0  ;;  %v1537_v21 = vmul.f32 %v5690_v26, %v1314_v15  ;;  %v768_v24 = vadd.f32 %v5709_v31, %v698_v11 }
 0x10f   :  { %v6011_v23 = vmax.f32 %v830_v7, %v1664_v8  ;;  %v1602_v27 = vadd.f32 %v5709_v31, %v1538_v12  ;;  %v767_v30 = vadd.f32 %v5709_v31, %v697_v19  ;;  %v4397_v33 = vpop.f32.mrb[26].mxu0 }
 0x110   :  { %v6015_v28 = vmax.f32 %v829_v17, %v1663_v18  ;;  %v1601_v32 = vadd.f32 %v5709_v31, %v1537_v21  ;;  %v4497_v34 = vpop.f32.mrb[26].mxu1  ;;  %v832_v37 = vmax.f32 %v768_v24, 0.0  ;;  %v700_v40 = vmul.f32 %v4397_v33, %v5690_v26  ;;  %v478_v42 = vpop.f32.mrb[27].mxu0 }
 0x111   :  { %v1666_v38 = vmax.f32 %v1602_v27, 0.0  ;;  %v1540_v41 = vmul.f32 %v4497_v34, %v5690_v26  ;;  %v1324_v43 = vpop.f32.mrb[27].mxu1  ;;  %v831_v46 = vmax.f32 %v767_v30, 0.0  ;;  %v699_v48 = vmul.f32 %v5690_v26, %v478_v42 }
 0x112   :  { %v1665_v47 = vmax.f32 %v1601_v32, 0.0  ;;  %v1539_v50 = vmul.f32 %v5690_v26, %v1324_v43  ;;  %v770_v53 = vadd.f32 %v5709_v31, %v700_v40 }
 0x113   :  { %v6023_v52 = vmax.f32 %v832_v37, %v1666_v38  ;;  %v1604_v55 = vadd.f32 %v5709_v31, %v1540_v41  ;;  %v769_v57 = vadd.f32 %v5709_v31, %v699_v48  ;;  %v4400_v61 = vpop.f32.mrb[28].mxu0 }
 0x114   :  { %v6027_v56 = vmax.f32 %v831_v46, %v1665_v47  ;;  %v1603_v58 = vadd.f32 %v5709_v31, %v1539_v50  ;;  %v4500_v63 = vpop.f32.mrb[28].mxu1  ;;  %v834_v1 = vmax.f32 %v770_v53, 0.0  ;;  %v702_v5 = vmul.f32 %v4400_v61, %v5690_v26  ;;  %v488_v7 = vpop.f32.mrb[29].mxu0 }
 0x115   :  { %v1668_v2 = vmax.f32 %v1604_v55, 0.0  ;;  %v1542_v6 = vmul.f32 %v4500_v63, %v5690_v26  ;;  %v1334_v8 = vpop.f32.mrb[29].mxu1  ;;  %v833_v11 = vmax.f32 %v769_v57, 0.0  ;;  %v701_v14 = vmul.f32 %v5690_v26, %v488_v7 }
 0x116   :  { %v1667_v12 = vmax.f32 %v1603_v58, 0.0  ;;  %v1541_v15 = vmul.f32 %v5690_v26, %v1334_v8  ;;  %v772_v18 = vadd.f32 %v5709_v31, %v702_v5 }
 0x117   :  { %v6035_v17 = vmax.f32 %v834_v1, %v1668_v2  ;;  %v1606_v19 = vadd.f32 %v5709_v31, %v1542_v6  ;;  %v771_v24 = vadd.f32 %v5709_v31, %v701_v14  ;;  %v4403_v30 = vpop.f32.mrb[30].mxu0 }
 0x118   :  { %v6039_v21 = vmax.f32 %v833_v11, %v1667_v12  ;;  %v1605_v27 = vadd.f32 %v5709_v31, %v1541_v15  ;;  %v4503_v32 = vpop.f32.mrb[30].mxu1  ;;  %v836_v33 = vmax.f32 %v772_v18, 0.0  ;;  %v704_v37 = vmul.f32 %v4403_v30, %v5690_v26  ;;  %v498_v40 = vpop.f32.mrb[31].mxu0 }
 0x119   :  { %v1670_v34 = vmax.f32 %v1606_v19, 0.0  ;;  %v1544_v38 = vmul.f32 %v4503_v32, %v5690_v26  ;;  %v1344_v41 = vpop.f32.mrb[31].mxu1  ;;  %v835_v42 = vmax.f32 %v771_v24, 0.0  ;;  %v703_v46 = vmul.f32 %v5690_v26, %v498_v40 }
 0x11a   :  { %v1669_v43 = vmax.f32 %v1605_v27, 0.0  ;;  %v1543_v47 = vmul.f32 %v5690_v26, %v1344_v41  ;;  %v774_v50 = vadd.f32 %v5709_v31, %v704_v37 }
 0x11b   :  { %v6047_v48 = vmax.f32 %v836_v33, %v1670_v34  ;;  %v1608_v53 = vadd.f32 %v5709_v31, %v1544_v38  ;;  %v773_v57 = vadd.f32 %v5709_v31, %v703_v46  ;;  %v4406_v61 = vpop.f32.mrb[32].mxu0 }
 0x11c   :  { %v6051_v55 = vmax.f32 %v835_v42, %v1669_v43  ;;  %v1607_v58 = vadd.f32 %v5709_v31, %v1543_v47  ;;  %v4506_v63 = vpop.f32.mrb[32].mxu1  ;;  %v838_v1 = vmax.f32 %v774_v50, 0.0  ;;  %v706_v5 = vmul.f32 %v4406_v61, %v5690_v26  ;;  %v508_v7 = vpop.f32.mrb[33].mxu0 }
 0x11d   :  { %v1672_v2 = vmax.f32 %v1608_v53, 0.0  ;;  %v1546_v6 = vmul.f32 %v4506_v63, %v5690_v26  ;;  %v1354_v8 = vpop.f32.mrb[33].mxu1  ;;  %v837_v11 = vmax.f32 %v773_v57, 0.0  ;;  %v705_v14 = vmul.f32 %v5690_v26, %v508_v7 }
 0x11e   :  { %v1671_v12 = vmax.f32 %v1607_v58, 0.0  ;;  %v1545_v15 = vmul.f32 %v5690_v26, %v1354_v8  ;;  %v776_v19 = vadd.f32 %v5709_v31, %v706_v5 }
 0x11f   :  { %v6059_v18 = vmax.f32 %v838_v1, %v1672_v2  ;;  %v1610_v24 = vadd.f32 %v5709_v31, %v1546_v6  ;;  %v775_v30 = vadd.f32 %v5709_v31, %v705_v14  ;;  %v4409_v33 = vpop.f32.mrb[34].mxu0 }
 0x120   :  { %v6063_v27 = vmax.f32 %v837_v11, %v1671_v12  ;;  %v1609_v32 = vadd.f32 %v5709_v31, %v1545_v15  ;;  %v4509_v34 = vpop.f32.mrb[34].mxu1  ;;  %v840_v37 = vmax.f32 %v776_v19, 0.0  ;;  %v708_v40 = vmul.f32 %v4409_v33, %v5690_v26  ;;  %v518_v42 = vpop.f32.mrb[35].mxu0 }
 0x121   :  { %v1674_v38 = vmax.f32 %v1610_v24, 0.0  ;;  %v1548_v41 = vmul.f32 %v4509_v34, %v5690_v26  ;;  %v1364_v43 = vpop.f32.mrb[35].mxu1  ;;  %v839_v46 = vmax.f32 %v775_v30, 0.0  ;;  %v707_v50 = vmul.f32 %v5690_v26, %v518_v42 }
 0x122   :  { %v1673_v47 = vmax.f32 %v1609_v32, 0.0  ;;  %v1547_v53 = vmul.f32 %v5690_v26, %v1364_v43  ;;  %v778_v58 = vadd.f32 %v5709_v31, %v708_v40 }
 0x123   :  { %v6071_v57 = vmax.f32 %v840_v37, %v1674_v38  ;;  %v1612_v61 = vadd.f32 %v5709_v31, %v1548_v41  ;;  %v777_v1 = vadd.f32 %v5709_v31, %v707_v50  ;;  %v4412_v5 = vpop.f32.mrb[36].mxu0 }
 0x124   :  { %v6075_v63 = vmax.f32 %v839_v46, %v1673_v47  ;;  %v1611_v2 = vadd.f32 %v5709_v31, %v1547_v53  ;;  %v4512_v6 = vpop.f32.mrb[36].mxu1  ;;  %v842_v7 = vmax.f32 %v778_v58, 0.0  ;;  %v710_v11 = vmul.f32 %v4412_v5, %v5690_v26  ;;  %v528_v14 = vpop.f32.mrb[37].mxu0 }
 0x125   :  { %v1676_v8 = vmax.f32 %v1612_v61, 0.0  ;;  %v1550_v12 = vmul.f32 %v4512_v6, %v5690_v26  ;;  %v1374_v15 = vpop.f32.mrb[37].mxu1  ;;  %v841_v19 = vmax.f32 %v777_v1, 0.0  ;;  %v709_v30 = vmul.f32 %v5690_v26, %v528_v14 }
 0x126   :  { %v1675_v24 = vmax.f32 %v1611_v2, 0.0  ;;  %v1549_v32 = vmul.f32 %v5690_v26, %v1374_v15  ;;  %v780_v34 = vadd.f32 %v5709_v31, %v710_v11 }
 0x127   :  { %v6083_v33 = vmax.f32 %v842_v7, %v1676_v8  ;;  %v1614_v37 = vadd.f32 %v5709_v31, %v1550_v12  ;;  %v779_v40 = vadd.f32 %v5709_v31, %v709_v30  ;;  %v4415_v42 = vpop.f32.mrb[38].mxu0 }
 0x128   :  { %v6087_v38 = vmax.f32 %v841_v19, %v1675_v24  ;;  %v1613_v41 = vadd.f32 %v5709_v31, %v1549_v32  ;;  %v4515_v43 = vpop.f32.mrb[38].mxu1  ;;  %v844_v46 = vmax.f32 %v780_v34, 0.0  ;;  %v712_v50 = vmul.f32 %v4415_v42, %v5690_v26  ;;  %v538_v58 = vpop.f32.mrb[39].mxu0 }
 0x129   :  { %v1678_v47 = vmax.f32 %v1614_v37, 0.0  ;;  %v1552_v53 = vmul.f32 %v4515_v43, %v5690_v26  ;;  %v1384_v61 = vpop.f32.mrb[39].mxu1  ;;  %v843_v1 = vmax.f32 %v779_v40, 0.0  ;;  %v711_v5 = vmul.f32 %v5690_v26, %v538_v58 }
 0x12a   :  { %v1677_v2 = vmax.f32 %v1613_v41, 0.0  ;;  %v1551_v6 = vmul.f32 %v5690_v26, %v1384_v61  ;;  %v782_v8 = vadd.f32 %v5709_v31, %v712_v50 }
 0x12b   :  { %v6095_v7 = vmax.f32 %v844_v46, %v1678_v47  ;;  %v1616_v11 = vadd.f32 %v5709_v31, %v1552_v53  ;;  %v781_v14 = vadd.f32 %v5709_v31, %v711_v5  ;;  %v4418_v19 = vpop.f32.mrb[40].mxu0 }
 0x12c   :  { %v6099_v12 = vmax.f32 %v843_v1, %v1677_v2  ;;  %v1615_v15 = vadd.f32 %v5709_v31, %v1551_v6  ;;  %v4518_v24 = vpop.f32.mrb[40].mxu1  ;;  %v846_v30 = vmax.f32 %v782_v8, 0.0  ;;  %v714_v34 = vmul.f32 %v4418_v19, %v5690_v26  ;;  %v548_v40 = vpop.f32.mrb[41].mxu0 }
 0x12d   :  { %v1680_v32 = vmax.f32 %v1616_v11, 0.0  ;;  %v1554_v37 = vmul.f32 %v4518_v24, %v5690_v26  ;;  %v1394_v41 = vpop.f32.mrb[41].mxu1  ;;  %v845_v42 = vmax.f32 %v781_v14, 0.0  ;;  %v713_v46 = vmul.f32 %v5690_v26, %v548_v40 }
 0x12e   :  { %v1679_v43 = vmax.f32 %v1615_v15, 0.0  ;;  %v1553_v47 = vmul.f32 %v5690_v26, %v1394_v41  ;;  %v784_v53 = vadd.f32 %v5709_v31, %v714_v34 }
 0x12f   :  { %v6107_v50 = vmax.f32 %v846_v30, %v1680_v32  ;;  %v1618_v58 = vadd.f32 %v5709_v31, %v1554_v37  ;;  %v783_v1 = vadd.f32 %v5709_v31, %v713_v46  ;;  %v4421_v5 = vpop.f32.mrb[42].mxu0 }
 0x130   :  { %v6111_v61 = vmax.f32 %v845_v42, %v1679_v43  ;;  %v1617_v2 = vadd.f32 %v5709_v31, %v1553_v47  ;;  %v4521_v6 = vpop.f32.mrb[42].mxu1  ;;  %v848_v8 = vmax.f32 %v784_v53, 0.0  ;;  %v716_v14 = vmul.f32 %v4421_v5, %v5690_v26  ;;  %v558_v19 = vpop.f32.mrb[43].mxu0 }
 0x131   :  { %v1682_v11 = vmax.f32 %v1618_v58, 0.0  ;;  %v1556_v15 = vmul.f32 %v4521_v6, %v5690_v26  ;;  %v1404_v24 = vpop.f32.mrb[43].mxu1  ;;  %v847_v30 = vmax.f32 %v783_v1, 0.0  ;;  %v715_v34 = vmul.f32 %v5690_v26, %v558_v19 }
 0x132   :  { %v1681_v32 = vmax.f32 %v1617_v2, 0.0  ;;  %v1555_v37 = vmul.f32 %v5690_v26, %v1404_v24  ;;  %v786_v41 = vadd.f32 %v5709_v31, %v716_v14 }
 0x133   :  { %v6119_v40 = vmax.f32 %v848_v8, %v1682_v11  ;;  %v1620_v42 = vadd.f32 %v5709_v31, %v1556_v15  ;;  %v785_v46 = vadd.f32 %v5709_v31, %v715_v34  ;;  %v4424_v53 = vpop.f32.mrb[44].mxu0 }
 0x134   :  { %v6123_v43 = vmax.f32 %v847_v30, %v1681_v32  ;;  %v1619_v47 = vadd.f32 %v5709_v31, %v1555_v37  ;;  %v4524_v58 = vpop.f32.mrb[44].mxu1  ;;  %v850_v1 = vmax.f32 %v786_v41, 0.0  ;;  %v718_v5 = vmul.f32 %v4424_v53, %v5690_v26  ;;  %v568_v8 = vpop.f32.mrb[45].mxu0 }
 0x135   :  { %v1684_v2 = vmax.f32 %v1620_v42, 0.0  ;;  %v1558_v6 = vmul.f32 %v4524_v58, %v5690_v26  ;;  %v1414_v11 = vpop.f32.mrb[45].mxu1  ;;  %v849_v19 = vmax.f32 %v785_v46, 0.0  ;;  %v717_v15 = vmul.f32 %v5690_v26, %v568_v8 }
 0x136   :  { %6854 = vst [vmem:[#allocation2_spill] sm:$0xff] %v6123_v43  ;;  %v1683_v14 = vmax.f32 %v1619_v47, 0.0  ;;  %v1557_v24 = vmul.f32 %v5690_v26, %v1414_v11  ;;  %v788_v32 = vadd.f32 %v5709_v31, %v718_v5 }
 0x137   :  { %v6131_v30 = vmax.f32 %v850_v1, %v1684_v2  ;;  %v1622_v34 = vadd.f32 %v5709_v31, %v1558_v6  ;;  %v787_v41 = vadd.f32 %v5709_v31, %v717_v15  ;;  %v4427_v53 = vpop.f32.mrb[46].mxu0 }
 0x138   :  { %v6135_v37 = vmax.f32 %v849_v19, %v1683_v14  ;;  %v1621_v42 = vadd.f32 %v5709_v31, %v1557_v24  ;;  %v4527_v58 = vpop.f32.mrb[46].mxu1  ;;  %v852_v46 = vmax.f32 %v788_v32, 0.0  ;;  %v720_v8 = vmul.f32 %v4427_v53, %v5690_v26  ;;  %v578_v1 = vpop.f32.mrb[47].mxu0 }
 0x139   :  { %6855 = vst [vmem:[#allocation3_spill] sm:$0xff] %v6131_v30  ;;  %v1686_v47 = vmax.f32 %v1622_v34, 0.0  ;;  %v1560_v11 = vmul.f32 %v4527_v58, %v5690_v26  ;;  %v1424_v2 = vpop.f32.mrb[47].mxu1  ;;  %v851_v30 = vmax.f32 %v787_v41, 0.0  ;;  %v719_v6 = vmul.f32 %v5690_v26, %v578_v1 }
 0x13a   :  { %6856 = vst [vmem:[#allocation4_spill] sm:$0xff] %v6135_v37  ;;  %v1685_v5 = vmax.f32 %v1621_v42, 0.0  ;;  %v1559_v19 = vmul.f32 %v5690_v26, %v1424_v2  ;;  %v790_v15 = vadd.f32 %v5709_v31, %v720_v8  ;;  %v6154_v26 = vld [vmem:[%s6849_s2] ss:$0 sm:$0xff] }
 0x13b   :  { %v6143_v14 = vmax.f32 %v852_v46, %v1686_v47  ;;  %v1624_v24 = vadd.f32 %v5709_v31, %v1560_v11  ;;  %v789_v34 = vadd.f32 %v5709_v31, %v719_v6  ;;  %v4430_v58 = vpop.f32.mrb[48].mxu0  ;;  %v6165_v6 = vld [vmem:[%s6850_s3] ss:$0 sm:$0xff] }
 0x13c   :  { %v6147_v32 = vmax.f32 %v851_v30, %v1685_v5  ;;  %v1623_v53 = vadd.f32 %v5709_v31, %v1559_v19  ;;  %v4530_v37 = vpop.f32.mrb[48].mxu1  ;;  %v854_v41 = vmax.f32 %v790_v15, 0.0  ;;  %v722_v46 = vmul.f32 %v6154_v26, %v4430_v58  ;;  %v588_v8 = vpop.f32.mrb[49].mxu0 }
 0x13d   :  { %6857 = vst [vmem:[#allocation5_spill] sm:$0xff] %v6143_v14  ;;  %v1688_v42 = vmax.f32 %v1624_v24, 0.0  ;;  %v1562_v47 = vmul.f32 %v6154_v26, %v4530_v37  ;;  %v1434_v30 = vpop.f32.mrb[49].mxu1  ;;  %v853_v11 = vmax.f32 %v789_v34, 0.0  ;;  %v721_v2 = vmul.f32 %v6154_v26, %v588_v8 }
 0x13e   :  { %6858 = vst [vmem:[#allocation6_spill] sm:$0xff] %v6147_v32  ;;  %v1687_v1 = vmax.f32 %v1623_v53, 0.0  ;;  %v1561_v31 = vmul.f32 %v6154_v26, %v1434_v30  ;;  %v792_v19 = vadd.f32 %v6165_v6, %v722_v46 }
 0x13f   :  { %v6160_v5 = vmax.f32 %v854_v41, %v1688_v42  ;;  %v1626_v15 = vadd.f32 %v6165_v6, %v1562_v47  ;;  %v791_v24 = vadd.f32 %v6165_v6, %v721_v2  ;;  %v4433_v53 = vpop.f32.mrb[50].mxu0 }
 0x140   :  { %v6169_v37 = vmax.f32 %v853_v11, %v1687_v1  ;;  %v1625_v34 = vadd.f32 %v6165_v6, %v1561_v31  ;;  %v4533_v58 = vpop.f32.mrb[50].mxu1  ;;  %v856_v8 = vmax.f32 %v792_v19, 0.0  ;;  %v724_v42 = vmul.f32 %v6154_v26, %v4433_v53 }
 0x141   :  { %6859 = vst [vmem:[#allocation7_spill] sm:$0xff] %v6160_v5  ;;  %v1690_v41 = vmax.f32 %v1626_v15, 0.0  ;;  %v1564_v30 = vmul.f32 %v6154_v26, %v4533_v58  ;;  %v598_v5 = vpop.f32.mrb[51].mxu0  ;;  %v1444_v32 = vpop.f32.mrb[51].mxu1  ;;  %v855_v14 = vmax.f32 %v791_v24, 0.0 }
 0x142   :  { %6860 = vst [vmem:[#allocation8_spill] sm:$0xff] %v6169_v37  ;;  %v1689_v46 = vmax.f32 %v1625_v34, 0.0  ;;  %v723_v47 = vmul.f32 %v6154_v26, %v598_v5  ;;  %v1563_v11 = vmul.f32 %v6154_v26, %v1444_v32  ;;  %v794_v2 = vadd.f32 %v6165_v6, %v724_v42 }
 0x143   :  { %v6177_v1 = vmax.f32 %v856_v8, %v1690_v41  ;;  %v1628_v31 = vadd.f32 %v6165_v6, %v1564_v30  ;;  %v4436_v58 = vpop.f32.mrb[52].mxu0 }
 0x144   :  { %v6181_v19 = vmax.f32 %v855_v14, %v1689_v46  ;;  %v793_v15 = vadd.f32 %v6165_v6, %v723_v47  ;;  %v1627_v53 = vadd.f32 %v6165_v6, %v1563_v11  ;;  %v4536_v37 = vpop.f32.mrb[52].mxu1  ;;  %v858_v24 = vmax.f32 %v794_v2, 0.0  ;;  %v608_v8 = vpop.f32.mrb[53].mxu0 }
 0x145   :  { %6861 = vst [vmem:[#allocation9_spill] sm:$0xff] %v6177_v1  ;;  %v1692_v34 = vmax.f32 %v1628_v31, 0.0  ;;  %v726_v5 = vmul.f32 %v6154_v26, %v4436_v58  ;;  %v1566_v32 = vmul.f32 %v6154_v26, %v4536_v37  ;;  %v1454_v41 = vpop.f32.mrb[53].mxu1  ;;  %v725_v30 = vmul.f32 %v6154_v26, %v608_v8 }
 0x146   :  { %6862 = vst [vmem:[#allocation10_spill] sm:$0xff] %v6181_v19  ;;  %v857_v1 = vmax.f32 %v793_v15, 0.0  ;;  %v1691_v42 = vmax.f32 %v1627_v53, 0.0  ;;  %v1565_v14 = vmul.f32 %v6154_v26, %v1454_v41 }
 0x147   :  { %v6189_v46 = vmax.f32 %v858_v24, %v1692_v34  ;;  %v796_v47 = vadd.f32 %v6165_v6, %v726_v5  ;;  %v1630_v11 = vadd.f32 %v6165_v6, %v1566_v32  ;;  %v795_v31 = vadd.f32 %v6165_v6, %v725_v30  ;;  %v4439_v58 = vpop.f32.mrb[54].mxu0 }
 0x148   :  { %v6193_v2 = vmax.f32 %v857_v1, %v1691_v42  ;;  %v1629_v37 = vadd.f32 %v6165_v6, %v1565_v14  ;;  %v4539_v19 = vpop.f32.mrb[54].mxu1  ;;  %v728_v8 = vmul.f32 %v6154_v26, %v4439_v58  ;;  %v618_v24 = vpop.f32.mrb[55].mxu0 }
 0x149   :  { %6863 = vst [vmem:[#allocation11_spill] sm:$0xff] %v6189_v46  ;;  %v860_v15 = vmax.f32 %v796_v47, 0.0  ;;  %v1694_v53 = vmax.f32 %v1630_v11, 0.0  ;;  %v1568_v41 = vmul.f32 %v6154_v26, %v4539_v19  ;;  %v1464_v34 = vpop.f32.mrb[55].mxu1  ;;  %v859_v46 = vmax.f32 %v795_v31, 0.0 }
 0x14a   :  { %6864 = vst [vmem:[#allocation12_spill] sm:$0xff] %v6193_v2  ;;  %v1693_v5 = vmax.f32 %v1629_v37, 0.0  ;;  %v727_v32 = vmul.f32 %v6154_v26, %v618_v24  ;;  %v1567_v1 = vmul.f32 %v6154_v26, %v1464_v34  ;;  %v798_v30 = vadd.f32 %v6165_v6, %v728_v8 }
 0x14b   :  { %v6201_v42 = vmax.f32 %v860_v15, %v1694_v53  ;;  %v1632_v14 = vadd.f32 %v6165_v6, %v1568_v41  ;;  %v4442_v58 = vpop.f32.mrb[56].mxu0 }
 0x14c   :  { %v6205_v47 = vmax.f32 %v859_v46, %v1693_v5  ;;  %v797_v11 = vadd.f32 %v6165_v6, %v727_v32  ;;  %v1631_v19 = vadd.f32 %v6165_v6, %v1567_v1  ;;  %v4542_v2 = vpop.f32.mrb[56].mxu1  ;;  %v862_v31 = vmax.f32 %v798_v30, 0.0  ;;  %v628_v15 = vpop.f32.mrb[57].mxu0 }
 0x14d   :  { %6865 = vst [vmem:[#allocation13_spill] sm:$0xff] %v6201_v42  ;;  %v1696_v37 = vmax.f32 %v1632_v14, 0.0  ;;  %v730_v24 = vmul.f32 %v6154_v26, %v4442_v58  ;;  %v1570_v34 = vmul.f32 %v6154_v26, %v4542_v2  ;;  %v1474_v53 = vpop.f32.mrb[57].mxu1  ;;  %v729_v41 = vmul.f32 %v6154_v26, %v628_v15 }
 0x14e   :  { %6866 = vst [vmem:[#allocation14_spill] sm:$0xff] %v6205_v47  ;;  %v861_v42 = vmax.f32 %v797_v11, 0.0  ;;  %v1695_v8 = vmax.f32 %v1631_v19, 0.0  ;;  %v1569_v46 = vmul.f32 %v6154_v26, %v1474_v53 }
 0x14f   :  { %v6213_v5 = vmax.f32 %v862_v31, %v1696_v37  ;;  %v800_v32 = vadd.f32 %v6165_v6, %v730_v24  ;;  %v1634_v1 = vadd.f32 %v6165_v6, %v1570_v34  ;;  %v799_v14 = vadd.f32 %v6165_v6, %v729_v41  ;;  %v4445_v58 = vpop.f32.mrb[58].mxu0 }
 0x150   :  { %v6217_v30 = vmax.f32 %v861_v42, %v1695_v8  ;;  %v1633_v2 = vadd.f32 %v6165_v6, %v1569_v46  ;;  %v4545_v47 = vpop.f32.mrb[58].mxu1  ;;  %v732_v15 = vmul.f32 %v6154_v26, %v4445_v58  ;;  %v638_v31 = vpop.f32.mrb[59].mxu0 }
 0x151   :  { %6867 = vst [vmem:[#allocation15_spill] sm:$0xff] %v6213_v5  ;;  %v864_v11 = vmax.f32 %v800_v32, 0.0  ;;  %v1698_v19 = vmax.f32 %v1634_v1, 0.0  ;;  %v1572_v53 = vmul.f32 %v6154_v26, %v4545_v47  ;;  %v1484_v37 = vpop.f32.mrb[59].mxu1  ;;  %v863_v5 = vmax.f32 %v799_v14, 0.0 }
 0x152   :  { %6868 = vst [vmem:[#allocation16_spill] sm:$0xff] %v6217_v30  ;;  %v1697_v24 = vmax.f32 %v1633_v2, 0.0  ;;  %v731_v34 = vmul.f32 %v6154_v26, %v638_v31  ;;  %v1571_v42 = vmul.f32 %v6154_v26, %v1484_v37  ;;  %v802_v41 = vadd.f32 %v6165_v6, %v732_v15 }
 0x153   :  { %v6225_v8 = vmax.f32 %v864_v11, %v1698_v19  ;;  %v1636_v46 = vadd.f32 %v6165_v6, %v1572_v53  ;;  %v4448_v58 = vpop.f32.mrb[60].mxu0 }
 0x154   :  { %v6229_v32 = vmax.f32 %v863_v5, %v1697_v24  ;;  %v801_v1 = vadd.f32 %v6165_v6, %v731_v34  ;;  %v1635_v47 = vadd.f32 %v6165_v6, %v1571_v42  ;;  %v4548_v30 = vpop.f32.mrb[60].mxu1  ;;  %v866_v14 = vmax.f32 %v802_v41, 0.0  ;;  %v648_v11 = vpop.f32.mrb[61].mxu0 }
 0x155   :  { %6869 = vst [vmem:[#allocation17_spill] sm:$0xff] %v6225_v8  ;;  %v1700_v2 = vmax.f32 %v1636_v46, 0.0  ;;  %v734_v31 = vmul.f32 %v6154_v26, %v4448_v58  ;;  %v1574_v37 = vmul.f32 %v6154_v26, %v4548_v30  ;;  %v1494_v19 = vpop.f32.mrb[61].mxu1  ;;  %v733_v53 = vmul.f32 %v6154_v26, %v648_v11 }
 0x156   :  { %6870 = vst [vmem:[#allocation18_spill] sm:$0xff] %v6229_v32  ;;  %v865_v8 = vmax.f32 %v801_v1, 0.0  ;;  %v1699_v15 = vmax.f32 %v1635_v47, 0.0  ;;  %v1573_v5 = vmul.f32 %v6154_v26, %v1494_v19 }
 0x157   :  { %v6237_v24 = vmax.f32 %v866_v14, %v1700_v2  ;;  %v804_v34 = vadd.f32 %v6165_v6, %v734_v31  ;;  %v1638_v42 = vadd.f32 %v6165_v6, %v1574_v37  ;;  %v803_v46 = vadd.f32 %v6165_v6, %v733_v53  ;;  %v4451_v58 = vpop.f32.mrb[62].mxu0 }
 0x158   :  { %v6241_v41 = vmax.f32 %v865_v8, %v1699_v15  ;;  %v1637_v30 = vadd.f32 %v6165_v6, %v1573_v5  ;;  %v4551_v32 = vpop.f32.mrb[62].mxu1  ;;  %v736_v11 = vmul.f32 %v6154_v26, %v4451_v58  ;;  %v658_v14 = vpop.f32.mrb[63].mxu0 }
 0x159   :  { %6871 = vst [vmem:[#allocation19_spill] sm:$0xff] %v6237_v24  ;;  %v868_v1 = vmax.f32 %v804_v34, 0.0  ;;  %v1702_v47 = vmax.f32 %v1638_v42, 0.0  ;;  %v1576_v19 = vmul.f32 %v6154_v26, %v4551_v32  ;;  %v1504_v2 = vpop.f32.mrb[63].mxu1  ;;  %v867_v24 = vmax.f32 %v803_v46, 0.0 }
 0x15a   :  { %6872 = vst [vmem:[#allocation20_spill] sm:$0xff] %v6241_v41  ;;  %v1701_v31 = vmax.f32 %v1637_v30, 0.0  ;;  %v735_v37 = vmul.f32 %v6154_v26, %v658_v14  ;;  %v1575_v8 = vmul.f32 %v6154_v26, %v1504_v2  ;;  %v806_v53 = vadd.f32 %v6165_v6, %v736_v11 }
 0x15b   :  { %v6249_v15 = vmax.f32 %v868_v1, %v1702_v47  ;;  %v1640_v5 = vadd.f32 %v6165_v6, %v1576_v19  ;;  %v4558_v58 = vpop.f32.mrb[64].mxu0 }
 0x15c   :  { %v6253_v34 = vmax.f32 %v867_v24, %v1701_v31  ;;  %v805_v42 = vadd.f32 %v6165_v6, %v735_v37  ;;  %v1639_v32 = vadd.f32 %v6165_v6, %v1575_v8  ;;  %v4658_v41 = vpop.f32.mrb[64].mxu1  ;;  %v870_v46 = vmax.f32 %v806_v53, 0.0  ;;  %v2092_v1 = vpop.f32.mrb[65].mxu0 }
 0x15d   :  { %6873 = vst [vmem:[#allocation21_spill] sm:$0xff] %v6249_v15  ;;  %v1704_v30 = vmax.f32 %v1640_v5, 0.0  ;;  %v2412_v14 = vmul.f32 %v6154_v26, %v4558_v58  ;;  %v3246_v2 = vmul.f32 %v6154_v26, %v4658_v41  ;;  %v2926_v47 = vpop.f32.mrb[65].mxu1  ;;  %v2411_v19 = vmul.f32 %v6154_v26, %v2092_v1 }
 0x15e   :  { %6874 = vst [vmem:[#allocation22_spill] sm:$0xff] %v6253_v34  ;;  %v869_v15 = vmax.f32 %v805_v42, 0.0  ;;  %v1703_v11 = vmax.f32 %v1639_v32, 0.0  ;;  %v3245_v24 = vmul.f32 %v6154_v26, %v2926_v47 }
 0x15f   :  { %v6261_v31 = vmax.f32 %v870_v46, %v1704_v30  ;;  %v2476_v37 = vadd.f32 %v6165_v6, %v2412_v14  ;;  %v3310_v8 = vadd.f32 %v6165_v6, %v3246_v2  ;;  %v2475_v5 = vadd.f32 %v6165_v6, %v2411_v19  ;;  %v4561_v58 = vpop.f32.mrb[66].mxu0 }
 0x160   :  { %v6265_v53 = vmax.f32 %v869_v15, %v1703_v11  ;;  %v3309_v41 = vadd.f32 %v6165_v6, %v3245_v24  ;;  %v4661_v34 = vpop.f32.mrb[66].mxu1  ;;  %v2414_v1 = vmul.f32 %v6154_v26, %v4561_v58  ;;  %v2102_v46 = vpop.f32.mrb[67].mxu0 }
 0x161   :  { %6875 = vst [vmem:[#allocation23_spill] sm:$0xff] %v6261_v31  ;;  %v2540_v42 = vmax.f32 %v2476_v37, 0.0  ;;  %v3374_v32 = vmax.f32 %v3310_v8, 0.0  ;;  %v3248_v47 = vmul.f32 %v6154_v26, %v4661_v34  ;;  %v2936_v30 = vpop.f32.mrb[67].mxu1  ;;  %v2539_v31 = vmax.f32 %v2475_v5, 0.0 }
 0x162   :  { %6876 = vst [vmem:[#allocation24_spill] sm:$0xff] %v6265_v53  ;;  %v3373_v14 = vmax.f32 %v3309_v41, 0.0  ;;  %v2413_v2 = vmul.f32 %v6154_v26, %v2102_v46  ;;  %v3247_v15 = vmul.f32 %v6154_v26, %v2936_v30  ;;  %v2478_v19 = vadd.f32 %v6165_v6, %v2414_v1 }
 0x163   :  { %v3438_v11 = vmax.f32 %v2540_v42, %v3374_v32  ;;  %v3312_v24 = vadd.f32 %v6165_v6, %v3248_v47  ;;  %v4564_v34 = vpop.f32.mrb[68].mxu0 }
 0x164   :  { %v3437_v37 = vmax.f32 %v2539_v31, %v3373_v14  ;;  %v2477_v8 = vadd.f32 %v6165_v6, %v2413_v2  ;;  %v3311_v58 = vadd.f32 %v6165_v6, %v3247_v15  ;;  %v4664_v53 = vpop.f32.mrb[68].mxu1  ;;  %v2542_v41 = vmax.f32 %v2478_v19, 0.0  ;;  %v2112_v30 = vpop.f32.mrb[69].mxu0 }
 0x165   :  { %v3502_v5 = vmax.f32 %v5749_v62, %v3438_v11  ;;  %v3376_v43 = vmax.f32 %v3312_v24, 0.0  ;;  %v2416_v46 = vmul.f32 %v6154_v26, %v4564_v34  ;;  %v2946_v42 = vpop.f32.mrb[69].mxu1  ;;  %v3250_v31 = vmul.f32 %v6154_v26, %v4664_v53 }
 0x166   :  { %v3501_v32 = vmax.f32 %v5759_v3, %v3437_v37  ;;  %v2541_v1 = vmax.f32 %v2477_v8, 0.0  ;;  %v3375_v47 = vmax.f32 %v3311_v58, 0.0  ;;  %v2415_v2 = vmul.f32 %v6154_v26, %v2112_v30 }
 0x167   :  { %3567 = vst.msk [vmem:[%s6851_s4 + $0x8] sm:$0xff] %vm3565_vm4, %v3502_v5  ;;  %v3440_v14 = vmax.f32 %v2542_v41, %v3376_v43  ;;  %v2480_v62 = vadd.f32 %v6165_v6, %v2416_v46  ;;  %v3249_v15 = vmul.f32 %v6154_v26, %v2946_v42  ;;  %v3314_v53 = vadd.f32 %v6165_v6, %v3250_v31  ;;  %v4567_v11 = vpop.f32.mrb[70].mxu0 }
 0x168   :  { %3566 = vst.msk [vmem:[%s6851_s4] sm:$0xff] %vm3565_vm4, %v3501_v32  ;;  %v3439_v3 = vmax.f32 %v2541_v1, %v3375_v47  ;;  %v4667_v19 = vpop.f32.mrb[70].mxu1  ;;  %v2479_v43 = vadd.f32 %v6165_v6, %v2415_v2  ;;  %v2122_v58 = vpop.f32.mrb[71].mxu0  ;;  %v2418_v46 = vmul.f32 %v6154_v26, %v4567_v11 }
 0x169   :  { %v3504_v24 = vmax.f32 %v5777_v20, %v3440_v14  ;;  %v2544_v37 = vmax.f32 %v2480_v62, 0.0  ;;  %v3313_v8 = vadd.f32 %v6165_v6, %v3249_v15  ;;  %v2956_v34 = vpop.f32.mrb[71].mxu1  ;;  %v3378_v41 = vmax.f32 %v3314_v53, 0.0 }
 0x16a   :  { %v3503_v5 = vmax.f32 %v5787_v25, %v3439_v3  ;;  %v3252_v30 = vmul.f32 %v6154_v26, %v4667_v19  ;;  %v2543_v20 = vmax.f32 %v2479_v43, 0.0  ;;  %v2417_v32 = vmul.f32 %v6154_v26, %v2122_v58 }
 0x16b   :  { %3569 = vst.msk [vmem:[%s6851_s4 + $0x18] sm:$0xff] %vm3565_vm4, %v3504_v24  ;;  %v3377_v42 = vmax.f32 %v3313_v8, 0.0  ;;  %v3251_v1 = vmul.f32 %v6154_v26, %v2956_v34  ;;  %v3442_v25 = vmax.f32 %v2544_v37, %v3378_v41  ;;  %v2482_v47 = vadd.f32 %v6165_v6, %v2418_v46  ;;  %v4570_v14 = vpop.f32.mrb[72].mxu0 }
 0x16c   :  { %3568 = vst.msk [vmem:[%s6851_s4 + $0x10] sm:$0xff] %vm3565_vm4, %v3503_v5  ;;  %v3316_v31 = vadd.f32 %v6165_v6, %v3252_v30  ;;  %v4670_v62 = vpop.f32.mrb[72].mxu1  ;;  %v2481_v15 = vadd.f32 %v6165_v6, %v2417_v32  ;;  %v2420_v53 = vmul.f32 %v6154_v26, %v4570_v14  ;;  %v2132_v11 = vpop.f32.mrb[73].mxu0 }
 0x16d   :  { %v3441_v2 = vmax.f32 %v2543_v20, %v3377_v42  ;;  %v3315_v3 = vadd.f32 %v6165_v6, %v3251_v1  ;;  %v2966_v19 = vpop.f32.mrb[73].mxu1  ;;  %v3506_v24 = vmax.f32 %v5805_v44, %v3442_v25  ;;  %v2546_v43 = vmax.f32 %v2482_v47, 0.0 }
 0x16e   :  { %v3380_v8 = vmax.f32 %v3316_v31, 0.0  ;;  %v3254_v37 = vmul.f32 %v6154_v26, %v4670_v62  ;;  %v2545_v34 = vmax.f32 %v2481_v15, 0.0  ;;  %v2484_v41 = vadd.f32 %v6165_v6, %v2420_v53 }
 0x16f   :  { %v3505_v58 = vmax.f32 %v5815_v49, %v3441_v2  ;;  %v3379_v5 = vmax.f32 %v3315_v3, 0.0  ;;  %3571 = vst.msk [vmem:[%s6851_s4 + $0x28] sm:$0xff] %vm3565_vm4, %v3506_v24  ;;  %v2419_v44 = vmul.f32 %v6154_v26, %v2132_v11  ;;  %v3253_v20 = vmul.f32 %v6154_v26, %v2966_v19  ;;  %v4573_v42 = vpop.f32.mrb[74].mxu0 }
 0x170   :  { %v3444_v46 = vmax.f32 %v2546_v43, %v3380_v8  ;;  %v3318_v30 = vadd.f32 %v6165_v6, %v3254_v37  ;;  %v4673_v32 = vpop.f32.mrb[74].mxu1  ;;  %v2548_v1 = vmax.f32 %v2484_v41, 0.0  ;;  %v2422_v25 = vmul.f32 %v6154_v26, %v4573_v42  ;;  %v2142_v31 = vpop.f32.mrb[75].mxu0 }
 0x171   :  { %3570 = vst.msk [vmem:[%s6851_s4 + $0x20] sm:$0xff] %vm3565_vm4, %v3505_v58  ;;  %v3443_v49 = vmax.f32 %v2545_v34, %v3379_v5  ;;  %v3256_v47 = vmul.f32 %v6154_v26, %v4673_v32  ;;  %v2976_v14 = vpop.f32.mrb[75].mxu1  ;;  %v2483_v15 = vadd.f32 %v6165_v6, %v2419_v44  ;;  %v3317_v3 = vadd.f32 %v6165_v6, %v3253_v20 }
 0x172   :  { %v3508_v62 = vmax.f32 %v5833_v4, %v3444_v46  ;;  %v3382_v2 = vmax.f32 %v3318_v30, 0.0  ;;  %v2486_v11 = vadd.f32 %v6165_v6, %v2422_v25  ;;  %v2421_v24 = vmul.f32 %v6154_v26, %v2142_v31 }
 0x173   :  { %v3507_v53 = vmax.f32 %v5843_v9, %v3443_v49  ;;  %v3320_v19 = vadd.f32 %v6165_v6, %v3256_v47  ;;  %v2547_v4 = vmax.f32 %v2483_v15, 0.0  ;;  %v3381_v8 = vmax.f32 %v3317_v3, 0.0  ;;  %v4576_v58 = vpop.f32.mrb[76].mxu0 }
 0x174   :  { %3573 = vst.msk [vmem:[%s6851_s4 + $0x38] sm:$0xff] %vm3565_vm4, %v3508_v62  ;;  %v3446_v43 = vmax.f32 %v2548_v1, %v3382_v2  ;;  %v3255_v37 = vmul.f32 %v6154_v26, %v2976_v14  ;;  %v4676_v34 = vpop.f32.mrb[76].mxu1  ;;  %v2550_v9 = vmax.f32 %v2486_v11, 0.0  ;;  %v2485_v41 = vadd.f32 %v6165_v6, %v2421_v24  ;;  %v2152_v30 = vpop.f32.mrb[77].mxu0 }
 0x175   :  { %3572 = vst.msk [vmem:[%s6851_s4 + $0x30] sm:$0xff] %vm3565_vm4, %v3507_v53  ;;  %v3384_v5 = vmax.f32 %v3320_v19, 0.0  ;;  %v2424_v46 = vmul.f32 %v6154_v26, %v4576_v58  ;;  %v2986_v44 = vpop.f32.mrb[77].mxu1  ;;  %v3445_v42 = vmax.f32 %v2547_v4, %v3381_v8  ;;  %v3258_v49 = vmul.f32 %v6154_v26, %v4676_v34 }
 0x176   :  { %v3510_v20 = vmax.f32 %v5861_v29, %v3446_v43  ;;  %v3319_v32 = vadd.f32 %v6165_v6, %v3255_v37  ;;  %v2549_v25 = vmax.f32 %v2485_v41, 0.0  ;;  %v2423_v31 = vmul.f32 %v6154_v26, %v2152_v30 }
 0x177   :  { %v3448_v1 = vmax.f32 %v2550_v9, %v3384_v5  ;;  %v2488_v47 = vadd.f32 %v6165_v6, %v2424_v46  ;;  %v3509_v14 = vmax.f32 %v5871_v35, %v3445_v42  ;;  %v3322_v29 = vadd.f32 %v6165_v6, %v3258_v49  ;;  %v4579_v15 = vpop.f32.mrb[78].mxu0 }
 0x178   :  { %3575 = vst.msk [vmem:[%s6851_s4 + $0x48] sm:$0xff] %vm3565_vm4, %v3510_v20  ;;  %v3383_v62 = vmax.f32 %v3319_v32, 0.0  ;;  %v3257_v2 = vmul.f32 %v6154_v26, %v2986_v44  ;;  %v4679_v3 = vpop.f32.mrb[78].mxu1  ;;  %v2487_v19 = vadd.f32 %v6165_v6, %v2423_v31  ;;  %v2426_v24 = vmul.f32 %v6154_v26, %v4579_v15  ;;  %v2162_v43 = vpop.f32.mrb[79].mxu0 }
 0x179   :  { %v3512_v53 = vmax.f32 %v5889_v54, %v3448_v1  ;;  %v2552_v11 = vmax.f32 %v2488_v47, 0.0  ;;  %v2996_v4 = vpop.f32.mrb[79].mxu1  ;;  %3574 = vst.msk [vmem:[%s6851_s4 + $0x40] sm:$0xff] %vm3565_vm4, %v3509_v14  ;;  %v3386_v8 = vmax.f32 %v3322_v29, 0.0  ;;  %v3260_v58 = vmul.f32 %v6154_v26, %v4679_v3 }
 0x17a   :  { %v3447_v35 = vmax.f32 %v2549_v25, %v3383_v62  ;;  %v3321_v37 = vadd.f32 %v6165_v6, %v3257_v2  ;;  %v2551_v54 = vmax.f32 %v2487_v19, 0.0  ;;  %v2490_v34 = vadd.f32 %v6165_v6, %v2426_v24 }
 0x17b   :  { %3577 = vst.msk [vmem:[%s6851_s4 + $0x58] sm:$0xff] %vm3565_vm4, %v3512_v53  ;;  %v2425_v9 = vmul.f32 %v6154_v26, %v2162_v43  ;;  %v3259_v5 = vmul.f32 %v6154_v26, %v2996_v4  ;;  %v3450_v46 = vmax.f32 %v2552_v11, %v3386_v8  ;;  %v3324_v44 = vadd.f32 %v6165_v6, %v3260_v58  ;;  %v4582_v20 = vpop.f32.mrb[80].mxu0 }
 0x17c   :  { %v3511_v41 = vmax.f32 %v5899_v59, %v3447_v35  ;;  %v3385_v30 = vmax.f32 %v3321_v37, 0.0  ;;  %v4682_v42 = vpop.f32.mrb[80].mxu1  ;;  %v2554_v32 = vmax.f32 %v2490_v34, 0.0  ;;  %v2428_v25 = vmul.f32 %v6154_v26, %v4582_v20  ;;  %v2172_v47 = vpop.f32.mrb[81].mxu0 }
 0x17d   :  { %v2489_v49 = vadd.f32 %v6165_v6, %v2425_v9  ;;  %v3323_v1 = vadd.f32 %v6165_v6, %v3259_v5  ;;  %v3006_v31 = vpop.f32.mrb[81].mxu1  ;;  %v3514_v59 = vmax.f32 %v5917_v16, %v3450_v46  ;;  %v3388_v62 = vmax.f32 %v3324_v44, 0.0 }
 0x17e   :  { %3576 = vst.msk [vmem:[%s6851_s4 + $0x50] sm:$0xff] %vm3565_vm4, %v3511_v41  ;;  %v3449_v14 = vmax.f32 %v2551_v54, %v3385_v30  ;;  %v3262_v29 = vmul.f32 %v6154_v26, %v4682_v42  ;;  %v2492_v3 = vadd.f32 %v6165_v6, %v2428_v25  ;;  %v2427_v53 = vmul.f32 %v6154_v26, %v2172_v47 }
 0x17f   :  { %v2553_v2 = vmax.f32 %v2489_v49, 0.0  ;;  %v3387_v15 = vmax.f32 %v3323_v1, 0.0  ;;  %3579 = vst.msk [vmem:[%s6851_s4 + $0x68] sm:$0xff] %vm3565_vm4, %v3514_v59  ;;  %v3452_v19 = vmax.f32 %v2554_v32, %v3388_v62  ;;  %v3261_v24 = vmul.f32 %v6154_v26, %v3006_v31  ;;  %v4585_v43 = vpop.f32.mrb[82].mxu0 }
 0x180   :  { %v3513_v11 = vmax.f32 %v5927_v22, %v3449_v14  ;;  %v3326_v16 = vadd.f32 %v6165_v6, %v3262_v29  ;;  %v4685_v4 = vpop.f32.mrb[82].mxu1  ;;  %v2556_v8 = vmax.f32 %v2492_v3, 0.0  ;;  %v2491_v37 = vadd.f32 %v6165_v6, %v2427_v53  ;;  %v2182_v54 = vpop.f32.mrb[83].mxu0 }
 0x181   :  { %v3451_v35 = vmax.f32 %v2553_v2, %v3387_v15  ;;  %v2430_v58 = vmul.f32 %v6154_v26, %v4585_v43  ;;  %v3016_v34 = vpop.f32.mrb[83].mxu1  ;;  %v3516_v22 = vmax.f32 %v5945_v45, %v3452_v19  ;;  %v3325_v5 = vadd.f32 %v6165_v6, %v3261_v24 }
 0x182   :  { %3578 = vst.msk [vmem:[%s6851_s4 + $0x60] sm:$0xff] %vm3565_vm4, %v3513_v11  ;;  %v3390_v9 = vmax.f32 %v3326_v16, 0.0  ;;  %v3264_v41 = vmul.f32 %v6154_v26, %v4685_v4  ;;  %v2555_v30 = vmax.f32 %v2491_v37, 0.0  ;;  %v2429_v20 = vmul.f32 %v6154_v26, %v2182_v54 }
 0x183   :  { %v3515_v46 = vmax.f32 %v5955_v51, %v3451_v35  ;;  %v2494_v44 = vadd.f32 %v6165_v6, %v2430_v58  ;;  %3581 = vst.msk [vmem:[%s6851_s4 + $0x78] sm:$0xff] %vm3565_vm4, %v3516_v22  ;;  %v3389_v32 = vmax.f32 %v3325_v5, 0.0  ;;  %v3263_v49 = vmul.f32 %v6154_v26, %v3016_v34  ;;  %v4588_v1 = vpop.f32.mrb[84].mxu0 }
 0x184   :  { %v3454_v42 = vmax.f32 %v2556_v8, %v3390_v9  ;;  %v3328_v45 = vadd.f32 %v6165_v6, %v3264_v41  ;;  %v4688_v25 = vpop.f32.mrb[84].mxu1  ;;  %v2493_v47 = vadd.f32 %v6165_v6, %v2429_v20  ;;  %v2432_v31 = vmul.f32 %v6154_v26, %v4588_v1  ;;  %v2192_v14 = vpop.f32.mrb[85].mxu0 }
 0x185   :  { %3580 = vst.msk [vmem:[%s6851_s4 + $0x70] sm:$0xff] %vm3565_vm4, %v3515_v46  ;;  %v2558_v51 = vmax.f32 %v2494_v44, 0.0  ;;  %v3266_v59 = vmul.f32 %v6154_v26, %v4688_v25  ;;  %v3026_v62 = vpop.f32.mrb[85].mxu1  ;;  %v3453_v2 = vmax.f32 %v2555_v30, %v3389_v32  ;;  %v3327_v3 = vadd.f32 %v6165_v6, %v3263_v49 }
 0x186   :  { %v3518_v29 = vmax.f32 %v5973_v10, %v3454_v42  ;;  %v3392_v15 = vmax.f32 %v3328_v45, 0.0  ;;  %v2557_v53 = vmax.f32 %v2493_v47, 0.0  ;;  %v2496_v11 = vadd.f32 %v6165_v6, %v2432_v31 }
 0x187   :  { %v3330_v19 = vadd.f32 %v6165_v6, %v3266_v59  ;;  %v2431_v16 = vmul.f32 %v6154_v26, %v2192_v14  ;;  %v3517_v24 = vmax.f32 %v5977_v13, %v3453_v2  ;;  %v3391_v10 = vmax.f32 %v3327_v3, 0.0  ;;  %v4591_v35 = vpop.f32.mrb[86].mxu0 }
 0x188   :  { %3583 = vst.msk [vmem:[%s6851_s4 + $0x88] sm:$0xff] %vm3565_vm4, %v3518_v29  ;;  %v3456_v43 = vmax.f32 %v2558_v51, %v3392_v15  ;;  %v3265_v4 = vmul.f32 %v6154_v26, %v3026_v62  ;;  %v4691_v8 = vpop.f32.mrb[86].mxu1  ;;  %v2560_v37 = vmax.f32 %v2496_v11, 0.0  ;;  %v2434_v34 = vmul.f32 %v6154_v26, %v4591_v35  ;;  %v2202_v22 = vpop.f32.mrb[87].mxu0 }
 0x189   :  { %v3394_v58 = vmax.f32 %v3330_v19, 0.0  ;;  %v2495_v54 = vadd.f32 %v6165_v6, %v2431_v16  ;;  %v3036_v9 = vpop.f32.mrb[87].mxu1  ;;  %3582 = vst.msk [vmem:[%s6851_s4 + $0x80] sm:$0xff] %vm3565_vm4, %v3517_v24  ;;  %v3455_v5 = vmax.f32 %v2557_v53, %v3391_v10  ;;  %v3268_v46 = vmul.f32 %v6154_v26, %v4691_v8 }
 0x18a   :  { %v3520_v13 = vmax.f32 %v5987_v36, %v3456_v43  ;;  %v3329_v41 = vadd.f32 %v6165_v6, %v3265_v4  ;;  %v2498_v20 = vadd.f32 %v6165_v6, %v2434_v34  ;;  %v2433_v42 = vmul.f32 %v6154_v26, %v2202_v22 }
 0x18b   :  { %v3458_v30 = vmax.f32 %v2560_v37, %v3394_v58  ;;  %v2559_v44 = vmax.f32 %v2495_v54, 0.0  ;;  %v3519_v32 = vmax.f32 %v5991_v39, %v3455_v5  ;;  %v3332_v36 = vadd.f32 %v6165_v6, %v3268_v46  ;;  %v4594_v1 = vpop.f32.mrb[88].mxu0 }
 0x18c   :  { %3585 = vst.msk [vmem:[%s6851_s4 + $0x98] sm:$0xff] %vm3565_vm4, %v3520_v13  ;;  %v3393_v45 = vmax.f32 %v3329_v41, 0.0  ;;  %v3267_v49 = vmul.f32 %v6154_v26, %v3036_v9  ;;  %v4694_v25 = vpop.f32.mrb[88].mxu1  ;;  %v2562_v47 = vmax.f32 %v2498_v20, 0.0  ;;  %v2497_v31 = vadd.f32 %v6165_v6, %v2433_v42  ;;  %v2212_v14 = vpop.f32.mrb[89].mxu0 }
 0x18d   :  { %v3522_v51 = vmax.f32 %v5999_v60, %v3458_v30  ;;  %v2436_v59 = vmul.f32 %v6154_v26, %v4594_v1  ;;  %v3046_v62 = vpop.f32.mrb[89].mxu1  ;;  %3584 = vst.msk [vmem:[%s6851_s4 + $0x90] sm:$0xff] %vm3565_vm4, %v3519_v32  ;;  %v3396_v29 = vmax.f32 %v3332_v36, 0.0  ;;  %v3270_v15 = vmul.f32 %v6154_v26, %v4694_v25 }
 0x18e   :  { %v3457_v39 = vmax.f32 %v2559_v44, %v3393_v45  ;;  %v3331_v2 = vadd.f32 %v6165_v6, %v3267_v49  ;;  %v2561_v60 = vmax.f32 %v2497_v31, 0.0  ;;  %v2435_v53 = vmul.f32 %v6154_v26, %v2212_v14 }
 0x18f   :  { %3587 = vst.msk [vmem:[%s6851_s4 + $0xa8] sm:$0xff] %vm3565_vm4, %v3522_v51  ;;  %v2500_v3 = vadd.f32 %v6165_v6, %v2436_v59  ;;  %v3269_v11 = vmul.f32 %v6154_v26, %v3046_v62  ;;  %v3460_v16 = vmax.f32 %v2562_v47, %v3396_v29  ;;  %v3334_v43 = vadd.f32 %v6165_v6, %v3270_v15  ;;  %v4597_v10 = vpop.f32.mrb[90].mxu0 }
 0x190   :  { %v3521_v19 = vmax.f32 %v6003_v0, %v3457_v39  ;;  %v3395_v24 = vmax.f32 %v3331_v2, 0.0  ;;  %v4697_v4 = vpop.f32.mrb[90].mxu1  ;;  %v2499_v8 = vadd.f32 %v6165_v6, %v2435_v53  ;;  %v2438_v58 = vmul.f32 %v6154_v26, %v4597_v10  ;;  %v2222_v54 = vpop.f32.mrb[91].mxu0 }
 0x191   :  { %v2564_v35 = vmax.f32 %v2500_v3, 0.0  ;;  %v3333_v37 = vadd.f32 %v6165_v6, %v3269_v11  ;;  %v3056_v34 = vpop.f32.mrb[91].mxu1  ;;  %v3524_v0 = vmax.f32 %v6011_v23, %v3460_v16  ;;  %v3398_v9 = vmax.f32 %v3334_v43, 0.0 }
 0x192   :  { %3586 = vst.msk [vmem:[%s6851_s4 + $0xa0] sm:$0xff] %vm3565_vm4, %v3521_v19  ;;  %v3459_v22 = vmax.f32 %v2561_v60, %v3395_v24  ;;  %v3272_v13 = vmul.f32 %v6154_v26, %v4697_v4  ;;  %v2563_v5 = vmax.f32 %v2499_v8, 0.0  ;;  %v2502_v46 = vadd.f32 %v6165_v6, %v2438_v58 }
 0x193   :  { %v3397_v41 = vmax.f32 %v3333_v37, 0.0  ;;  %v2437_v30 = vmul.f32 %v6154_v26, %v2222_v54  ;;  %3589 = vst.msk [vmem:[%s6851_s4 + $0xb8] sm:$0xff] %vm3565_vm4, %v3524_v0  ;;  %v3462_v20 = vmax.f32 %v2564_v35, %v3398_v9  ;;  %v3271_v42 = vmul.f32 %v6154_v26, %v3056_v34  ;;  %v4600_v32 = vpop.f32.mrb[92].mxu0 }
 0x194   :  { %v3523_v44 = vmax.f32 %v6015_v28, %v3459_v22  ;;  %v3336_v23 = vadd.f32 %v6165_v6, %v3272_v13  ;;  %v4700_v45 = vpop.f32.mrb[92].mxu1  ;;  %v2566_v49 = vmax.f32 %v2502_v46, 0.0  ;;  %v2440_v25 = vmul.f32 %v6154_v26, %v4600_v32  ;;  %v2232_v51 = vpop.f32.mrb[93].mxu0 }
 0x195   :  { %v3461_v36 = vmax.f32 %v2563_v5, %v3397_v41  ;;  %v2501_v1 = vadd.f32 %v6165_v6, %v2437_v30  ;;  %v3066_v47 = vpop.f32.mrb[93].mxu1  ;;  %v3526_v28 = vmax.f32 %v6023_v52, %v3462_v20  ;;  %v3335_v59 = vadd.f32 %v6165_v6, %v3271_v42 }
 0x196   :  { %3588 = vst.msk [vmem:[%s6851_s4 + $0xb0] sm:$0xff] %vm3565_vm4, %v3523_v44  ;;  %v3400_v31 = vmax.f32 %v3336_v23, 0.0  ;;  %v3274_v14 = vmul.f32 %v6154_v26, %v4700_v45  ;;  %v2504_v29 = vadd.f32 %v6165_v6, %v2440_v25  ;;  %v2439_v2 = vmul.f32 %v6154_v26, %v2232_v51 }
 0x197   :  { %v3525_v62 = vmax.f32 %v6027_v56, %v3461_v36  ;;  %v2565_v39 = vmax.f32 %v2501_v1, 0.0  ;;  %3591 = vst.msk [vmem:[%s6851_s4 + $0xc8] sm:$0xff] %vm3565_vm4, %v3526_v28  ;;  %v3399_v60 = vmax.f32 %v3335_v59, 0.0  ;;  %v3273_v3 = vmul.f32 %v6154_v26, %v3066_v47  ;;  %v4603_v53 = vpop.f32.mrb[94].mxu0 }
 0x198   :  { %v3464_v15 = vmax.f32 %v2566_v49, %v3400_v31  ;;  %v3338_v52 = vadd.f32 %v6165_v6, %v3274_v14  ;;  %v4703_v11 = vpop.f32.mrb[94].mxu1  ;;  %v2568_v56 = vmax.f32 %v2504_v29, 0.0  ;;  %v2503_v19 = vadd.f32 %v6165_v6, %v2439_v2  ;;  %v2242_v43 = vpop.f32.mrb[95].mxu0 }
 0x199   :  { %3590 = vst.msk [vmem:[%s6851_s4 + $0xc0] sm:$0xff] %vm3565_vm4, %v3525_v62  ;;  %v2442_v16 = vmul.f32 %v6154_v26, %v4603_v53  ;;  %v3276_v24 = vmul.f32 %v6154_v26, %v4703_v11  ;;  %v3076_v10 = vpop.f32.mrb[95].mxu1  ;;  %v3463_v35 = vmax.f32 %v2565_v39, %v3399_v60  ;;  %v3337_v37 = vadd.f32 %v6165_v6, %v3273_v3 }
 0x19a   :  { %v3528_v4 = vmax.f32 %v6035_v17, %v3464_v15  ;;  %v3402_v8 = vmax.f32 %v3338_v52, 0.0  ;;  %v2567_v58 = vmax.f32 %v2503_v19, 0.0  ;;  %v2441_v0 = vmul.f32 %v6154_v26, %v2242_v43 }
 0x19b   :  { %v2506_v54 = vadd.f32 %v6165_v6, %v2442_v16  ;;  %v3340_v34 = vadd.f32 %v6165_v6, %v3276_v24  ;;  %v3527_v22 = vmax.f32 %v6039_v21, %v3463_v35  ;;  %v3401_v17 = vmax.f32 %v3337_v37, 0.0  ;;  %v4606_v5 = vpop.f32.mrb[96].mxu0 }
 0x19c   :  { %3593 = vst.msk [vmem:[%s6851_s4 + $0xd8] sm:$0xff] %vm3565_vm4, %v3528_v4  ;;  %v3466_v9 = vmax.f32 %v2568_v56, %v3402_v8  ;;  %v3275_v13 = vmul.f32 %v6154_v26, %v3076_v10  ;;  %v4706_v41 = vpop.f32.mrb[96].mxu1  ;;  %v2505_v44 = vadd.f32 %v6165_v6, %v2441_v0  ;;  %v2444_v20 = vmul.f32 %v6154_v26, %v4606_v5  ;;  %v2252_v23 = vpop.f32.mrb[97].mxu0  ;;  %v6566_v10 = vld [vmem:[%s6850_s3] ss:$0 sm:$0xff] }
 0x19d   :  { %v2570_v46 = vmax.f32 %v2506_v54, 0.0  ;;  %v3404_v30 = vmax.f32 %v3340_v34, 0.0  ;;  %v3086_v42 = vpop.f32.mrb[97].mxu1  ;;  %3592 = vst.msk [vmem:[%s6851_s4 + $0xd0] sm:$0xff] %vm3565_vm4, %v3527_v22  ;;  %v3465_v32 = vmax.f32 %v2567_v58, %v3401_v17  ;;  %v3278_v36 = vmul.f32 %v6154_v26, %v4706_v41 }
 0x19e   :  { %v3530_v21 = vmax.f32 %v6047_v48, %v3466_v9  ;;  %v3339_v45 = vadd.f32 %v6165_v6, %v3275_v13  ;;  %v2569_v1 = vmax.f32 %v2505_v44, 0.0  ;;  %v2508_v25 = vadd.f32 %v6165_v6, %v2444_v20 }
 0x19f   :  { %v3468_v49 = vmax.f32 %v2570_v46, %v3404_v30  ;;  %v2443_v51 = vmul.f32 %v6154_v26, %v2252_v23  ;;  %v3529_v47 = vmax.f32 %v6051_v55, %v3465_v32  ;;  %v3342_v48 = vadd.f32 %v6165_v6, %v3278_v36  ;;  %v4609_v59 = vpop.f32.mrb[98].mxu0 }
 0x1a0   :  { %3595 = vst.msk [vmem:[%s6851_s4 + $0xe8] sm:$0xff] %vm3565_vm4, %v3530_v21  ;;  %v3403_v28 = vmax.f32 %v3339_v45, 0.0  ;;  %v3277_v31 = vmul.f32 %v6154_v26, %v3086_v42  ;;  %v4709_v14 = vpop.f32.mrb[98].mxu1  ;;  %v2572_v39 = vmax.f32 %v2508_v25, 0.0  ;;  %v2446_v2 = vmul.f32 %v6154_v26, %v4609_v59  ;;  %v2262_v15 = vpop.f32.mrb[99].mxu0 }
 0x1a1   :  { %v3532_v62 = vmax.f32 %v6059_v18, %v3468_v49  ;;  %v2507_v29 = vadd.f32 %v6165_v6, %v2443_v51  ;;  %v3096_v60 = vpop.f32.mrb[99].mxu1  ;;  %3594 = vst.msk [vmem:[%s6851_s4 + $0xe0] sm:$0xff] %vm3565_vm4, %v3529_v47  ;;  %v3406_v52 = vmax.f32 %v3342_v48, 0.0  ;;  %v6552_v18 = vld [vmem:[%s6849_s2] ss:$0 sm:$0xff] }
 0x1a2   :  { %v3467_v55 = vmax.f32 %v2569_v1, %v3403_v28  ;;  %v3341_v3 = vadd.f32 %v6165_v6, %v3277_v31  ;;  %v3280_v53 = vmul.f32 %v6552_v18, %v4709_v14  ;;  %v2510_v11 = vadd.f32 %v6165_v6, %v2446_v2 }
 0x1a3   :  { %3597 = vst.msk [vmem:[%s6851_s4 + $0xf8] sm:$0xff] %vm3565_vm4, %v3532_v62  ;;  %v2571_v26 = vmax.f32 %v2507_v29, 0.0  ;;  %v2445_v56 = vmul.f32 %v6552_v18, %v2262_v15  ;;  %v3279_v19 = vmul.f32 %v6552_v18, %v3096_v60  ;;  %v3470_v24 = vmax.f32 %v2572_v39, %v3406_v52  ;;  %v4612_v35 = vpop.f32.mrb[100].mxu0 }
 0x1a4   :  { %v3531_v16 = vmax.f32 %v6063_v27, %v3467_v55  ;;  %v3405_v43 = vmax.f32 %v3341_v3, 0.0  ;;  %v3344_v4 = vadd.f32 %v6566_v10, %v3280_v53  ;;  %v4712_v8 = vpop.f32.mrb[100].mxu1  ;;  %v2574_v37 = vmax.f32 %v2510_v11, 0.0  ;;  %v2272_v34 = vpop.f32.mrb[101].mxu0 }
 0x1a5   :  { %v2509_v6 = vadd.f32 %v6566_v10, %v2445_v56  ;;  %v3343_v58 = vadd.f32 %v6566_v10, %v3279_v19  ;;  %v2448_v54 = vmul.f32 %v6552_v18, %v4612_v35  ;;  %v3106_v27 = vpop.f32.mrb[101].mxu1  ;;  %v3534_v0 = vmax.f32 %v6071_v57, %v3470_v24 }
 0x1a6   :  { %3596 = vst.msk [vmem:[%s6851_s4 + $0xf0] sm:$0xff] %vm3565_vm4, %v3531_v16  ;;  %v3469_v22 = vmax.f32 %v2571_v26, %v3405_v43  ;;  %v3408_v9 = vmax.f32 %v3344_v4, 0.0  ;;  %v3282_v17 = vmul.f32 %v6552_v18, %v4712_v8  ;;  %v2447_v46 = vmul.f32 %v6552_v18, %v2272_v34 }
 0x1a7   :  { %v2573_v13 = vmax.f32 %v2509_v6, 0.0  ;;  %v3407_v5 = vmax.f32 %v3343_v58, 0.0  ;;  %v2512_v41 = vadd.f32 %v6566_v10, %v2448_v54  ;;  %3599 = vst.msk [vmem:[%s6851_s4 + $0x108] sm:$0xff] %vm3565_vm4, %v3534_v0  ;;  %v3281_v20 = vmul.f32 %v6552_v18, %v3106_v27  ;;  %v4615_v23 = vpop.f32.mrb[102].mxu0 }
 0x1a8   :  { %v3533_v30 = vmax.f32 %v6075_v63, %v3469_v22  ;;  %v3472_v44 = vmax.f32 %v2574_v37, %v3408_v9  ;;  %v3346_v57 = vadd.f32 %v6566_v10, %v3282_v17  ;;  %v4715_v42 = vpop.f32.mrb[102].mxu1  ;;  %v2511_v45 = vadd.f32 %v6566_v10, %v2447_v46  ;;  %v2282_v49 = vpop.f32.mrb[103].mxu0 }
 0x1a9   :  { %v3471_v21 = vmax.f32 %v2573_v13, %v3407_v5  ;;  %v2576_v32 = vmax.f32 %v2512_v41, 0.0  ;;  %v2450_v36 = vmul.f32 %v6552_v18, %v4615_v23  ;;  %v3116_v1 = vpop.f32.mrb[103].mxu1  ;;  %v3345_v51 = vadd.f32 %v6566_v10, %v3281_v20 }
 0x1aa   :  { %3598 = vst.msk [vmem:[%s6851_s4 + $0x100] sm:$0xff] %vm3565_vm4, %v3533_v30  ;;  %v3536_v63 = vmax.f32 %v6083_v33, %v3472_v44  ;;  %v3410_v25 = vmax.f32 %v3346_v57, 0.0  ;;  %v3284_v47 = vmul.f32 %v6552_v18, %v4715_v42  ;;  %v2575_v48 = vmax.f32 %v2511_v45, 0.0 }
 0x1ab   :  { %v3535_v28 = vmax.f32 %v6087_v38, %v3471_v21  ;;  %v2514_v31 = vadd.f32 %v6566_v10, %v2450_v36  ;;  %v2449_v59 = vmul.f32 %v6552_v18, %v2282_v49  ;;  %v3409_v62 = vmax.f32 %v3345_v51, 0.0  ;;  %v4618_v29 = vpop.f32.mrb[104].mxu0 }
 0x1ac   :  { %3601 = vst.msk [vmem:[%s6851_s4 + $0x118] sm:$0xff] %vm3565_vm4, %v3536_v63  ;;  %v3474_v14 = vmax.f32 %v2576_v32, %v3410_v25  ;;  %v3348_v33 = vadd.f32 %v6566_v10, %v3284_v47  ;;  %v3283_v39 = vmul.f32 %v6552_v18, %v3116_v1  ;;  %v4718_v2 = vpop.f32.mrb[104].mxu1  ;;  %v2452_v60 = vmul.f32 %v6552_v18, %v4618_v29  ;;  %v2292_v52 = vpop.f32.mrb[105].mxu0 }
 0x1ad   :  { %3600 = vst.msk [vmem:[%s6851_s4 + $0x110] sm:$0xff] %vm3565_vm4, %v3535_v28  ;;  %v2578_v38 = vmax.f32 %v2514_v31, 0.0  ;;  %v2513_v15 = vadd.f32 %v6566_v10, %v2449_v59  ;;  %v3286_v55 = vmul.f32 %v6552_v18, %v4718_v2  ;;  %v3126_v3 = vpop.f32.mrb[105].mxu1  ;;  %v3473_v26 = vmax.f32 %v2575_v48, %v3409_v62  ;;  %v6877_v31 = vld [vmem:[#allocation2_spill] sm:$0xff] }
 0x1ae   :  { %v3538_v53 = vmax.f32 %v6095_v7, %v3474_v14  ;;  %v3412_v11 = vmax.f32 %v3348_v33, 0.0  ;;  %v3347_v56 = vadd.f32 %v6566_v10, %v3283_v39  ;;  %v2516_v16 = vadd.f32 %v6566_v10, %v2452_v60 }
 0x1af   :  { %v2577_v19 = vmax.f32 %v2513_v15, 0.0  ;;  %v3350_v24 = vadd.f32 %v6566_v10, %v3286_v55  ;;  %v2451_v43 = vmul.f32 %v6552_v18, %v2292_v52  ;;  %v3537_v4 = vmax.f32 %v6099_v12, %v3473_v26  ;;  %v4621_v37 = vpop.f32.mrb[106].mxu0 }
 0x1b0   :  { %3603 = vst.msk [vmem:[%s6851_s4 + $0x128] sm:$0xff] %vm3565_vm4, %v3538_v53  ;;  %v3476_v35 = vmax.f32 %v2578_v38, %v3412_v11  ;;  %v3411_v7 = vmax.f32 %v3347_v56, 0.0  ;;  %v3285_v8 = vmul.f32 %v6552_v18, %v3126_v3  ;;  %v4721_v6 = vpop.f32.mrb[106].mxu1  ;;  %v2580_v58 = vmax.f32 %v2516_v16, 0.0  ;;  %v2302_v0 = vpop.f32.mrb[107].mxu0  ;;  %v6878_v3 = vld [vmem:[#allocation3_spill] sm:$0xff] }
 0x1b1   :  { %v3414_v54 = vmax.f32 %v3350_v24, 0.0  ;;  %v2515_v34 = vadd.f32 %v6566_v10, %v2451_v43  ;;  %v2454_v27 = vmul.f32 %v6552_v18, %v4621_v37  ;;  %v3136_v22 = vpop.f32.mrb[107].mxu1  ;;  %3602 = vst.msk [vmem:[%s6851_s4 + $0x120] sm:$0xff] %vm3565_vm4, %v3537_v4  ;;  %v3288_v13 = vmul.f32 %v6552_v18, %v4721_v6  ;;  %v6879_v4 = vld [vmem:[#allocation4_spill] sm:$0xff] }
 0x1b2   :  { %v3540_v12 = vmax.f32 %v6107_v50, %v3476_v35  ;;  %v3475_v9 = vmax.f32 %v2577_v19, %v3411_v7  ;;  %v3349_v17 = vadd.f32 %v6566_v10, %v3285_v8  ;;  %v2453_v30 = vmul.f32 %v6552_v18, %v2302_v0 }
 0x1b3   :  { %v3478_v5 = vmax.f32 %v2580_v58, %v3414_v54  ;;  %v2579_v41 = vmax.f32 %v2515_v34, 0.0  ;;  %v2518_v46 = vadd.f32 %v6566_v10, %v2454_v27  ;;  %v3352_v50 = vadd.f32 %v6566_v10, %v3288_v13  ;;  %v4624_v23 = vpop.f32.mrb[108].mxu0 }
 0x1b4   :  { %3605 = vst.msk [vmem:[%s6851_s4 + $0x138] sm:$0xff] %vm3565_vm4, %v3540_v12  ;;  %v3539_v44 = vmax.f32 %v6111_v61, %v3475_v9  ;;  %v3413_v57 = vmax.f32 %v3349_v17, 0.0  ;;  %v3287_v20 = vmul.f32 %v6552_v18, %v3136_v22  ;;  %v4724_v42 = vpop.f32.mrb[108].mxu1  ;;  %v2517_v45 = vadd.f32 %v6566_v10, %v2453_v30  ;;  %v2312_v49 = vpop.f32.mrb[109].mxu0  ;;  %v6880_v9 = vld [vmem:[#allocation5_spill] sm:$0xff] }
 0x1b5   :  { %v3542_v21 = vmax.f32 %v6119_v40, %v3478_v5  ;;  %v2582_v32 = vmax.f32 %v2518_v46, 0.0  ;;  %v2456_v36 = vmul.f32 %v6552_v18, %v4624_v23  ;;  %v3146_v1 = vpop.f32.mrb[109].mxu1  ;;  %v3416_v63 = vmax.f32 %v3352_v50, 0.0  ;;  %v6881_v46 = vld [vmem:[#allocation6_spill] sm:$0xff] }
 0x1b6   :  { %3604 = vst.msk [vmem:[%s6851_s4 + $0x130] sm:$0xff] %vm3565_vm4, %v3539_v44  ;;  %v3477_v61 = vmax.f32 %v2579_v41, %v3413_v57  ;;  %v3351_v25 = vadd.f32 %v6566_v10, %v3287_v20  ;;  %v3290_v51 = vmul.f32 %v6552_v18, %v4724_v42  ;;  %v2581_v40 = vmax.f32 %v2517_v45, 0.0 }
 0x1b7   :  { %3607 = vst.msk [vmem:[%s6851_s4 + $0x148] sm:$0xff] %vm3565_vm4, %v3542_v21  ;;  %v2520_v47 = vadd.f32 %v6566_v10, %v2456_v36  ;;  %v2455_v28 = vmul.f32 %v6552_v18, %v2312_v49  ;;  %v3289_v48 = vmul.f32 %v6552_v18, %v3146_v1  ;;  %v3480_v14 = vmax.f32 %v2582_v32, %v3416_v63  ;;  %v4627_v39 = vpop.f32.mrb[110].mxu0 }
 0x1b8   :  { %v3541_v59 = vmax.f32 %v6877_v31, %v3477_v61  ;;  %v3415_v62 = vmax.f32 %v3351_v25, 0.0  ;;  %v3354_v33 = vadd.f32 %v6566_v10, %v3290_v51  ;;  %v4727_v29 = vpop.f32.mrb[110].mxu1  ;;  %v2458_v60 = vmul.f32 %v6552_v18, %v4627_v39  ;;  %v2322_v55 = vpop.f32.mrb[111].mxu0  ;;  %v6882_v51 = vld [vmem:[#allocation7_spill] sm:$0xff] }
 0x1b9   :  { %v2584_v2 = vmax.f32 %v2520_v47, 0.0  ;;  %v2519_v38 = vadd.f32 %v6566_v10, %v2455_v28  ;;  %v3353_v15 = vadd.f32 %v6566_v10, %v3289_v48  ;;  %v3156_v52 = vpop.f32.mrb[111].mxu1  ;;  %v3544_v53 = vmax.f32 %v6878_v3, %v3480_v14 }
 0x1ba   :  { %3606 = vst.msk [vmem:[%s6851_s4 + $0x140] sm:$0xff] %vm3565_vm4, %v3541_v59  ;;  %v3479_v26 = vmax.f32 %v2581_v40, %v3415_v62  ;;  %v3418_v11 = vmax.f32 %v3354_v33, 0.0  ;;  %v3292_v56 = vmul.f32 %v6552_v18, %v4727_v29  ;;  %v2522_v24 = vadd.f32 %v6566_v10, %v2458_v60  ;;  %v6883_v33 = vld [vmem:[#allocation8_spill] sm:$0xff] }
 0x1bb   :  { %v2583_v19 = vmax.f32 %v2519_v38, 0.0  ;;  %v3417_v16 = vmax.f32 %v3353_v15, 0.0  ;;  %v2457_v43 = vmul.f32 %v6552_v18, %v2322_v55  ;;  %3609 = vst.msk [vmem:[%s6851_s4 + $0x158] sm:$0xff] %vm3565_vm4, %v3544_v53  ;;  %v3291_v37 = vmul.f32 %v6552_v18, %v3156_v52  ;;  %v4630_v6 = vpop.f32.mrb[112].mxu0 }
 0x1bc   :  { %v3543_v35 = vmax.f32 %v6879_v4, %v3479_v26  ;;  %v3482_v7 = vmax.f32 %v2584_v2, %v3418_v11  ;;  %v3356_v8 = vadd.f32 %v6566_v10, %v3292_v56  ;;  %v4730_v58 = vpop.f32.mrb[112].mxu1  ;;  %v2586_v34 = vmax.f32 %v2522_v24, 0.0  ;;  %v2332_v22 = vpop.f32.mrb[113].mxu0  ;;  %v6884_v56 = vld [vmem:[#allocation9_spill] sm:$0xff] }
 0x1bd   :  { %v3481_v54 = vmax.f32 %v2583_v19, %v3417_v16  ;;  %v2521_v27 = vadd.f32 %v6566_v10, %v2457_v43  ;;  %v2460_v0 = vmul.f32 %v6552_v18, %v4630_v6  ;;  %v3166_v12 = vpop.f32.mrb[113].mxu1  ;;  %v3355_v5 = vadd.f32 %v6566_v10, %v3291_v37  ;;  %v6885_v37 = vld [vmem:[#allocation10_spill] sm:$0xff] }
 0x1be   :  { %3608 = vst.msk [vmem:[%s6851_s4 + $0x150] sm:$0xff] %vm3565_vm4, %v3543_v35  ;;  %v3546_v17 = vmax.f32 %v6880_v9, %v3482_v7  ;;  %v3420_v13 = vmax.f32 %v3356_v8, 0.0  ;;  %v3294_v41 = vmul.f32 %v6552_v18, %v4730_v58  ;;  %v2459_v50 = vmul.f32 %v6552_v18, %v2332_v22  ;;  %v6886_v22 = vld [vmem:[#allocation11_spill] sm:$0xff] }
 0x1bf   :  { %v3545_v30 = vmax.f32 %v6881_v46, %v3481_v54  ;;  %v2585_v44 = vmax.f32 %v2521_v27, 0.0  ;;  %v2524_v57 = vadd.f32 %v6566_v10, %v2460_v0  ;;  %v3419_v23 = vmax.f32 %v3355_v5, 0.0  ;;  %v4633_v32 = vpop.f32.mrb[114].mxu0 }
 0x1c0   :  { %3611 = vst.msk [vmem:[%s6851_s4 + $0x168] sm:$0xff] %vm3565_vm4, %v3546_v17  ;;  %v3484_v20 = vmax.f32 %v2586_v34, %v3420_v13  ;;  %v3358_v42 = vadd.f32 %v6566_v10, %v3294_v41  ;;  %v3293_v21 = vmul.f32 %v6552_v18, %v3166_v12  ;;  %v4733_v45 = vpop.f32.mrb[114].mxu1  ;;  %v2523_v49 = vadd.f32 %v6566_v10, %v2459_v50  ;;  %v2342_v63 = vpop.f32.mrb[115].mxu0 }
 0x1c1   :  { %3610 = vst.msk [vmem:[%s6851_s4 + $0x160] sm:$0xff] %vm3565_vm4, %v3545_v30  ;;  %v2588_v36 = vmax.f32 %v2524_v57, 0.0  ;;  %v2462_v1 = vmul.f32 %v6552_v18, %v4633_v32  ;;  %v3296_v61 = vmul.f32 %v6552_v18, %v4733_v45  ;;  %v3176_v25 = vpop.f32.mrb[115].mxu1  ;;  %v3483_v47 = vmax.f32 %v2585_v44, %v3419_v23 }
 0x1c2   :  { %v3548_v40 = vmax.f32 %v6882_v51, %v3484_v20  ;;  %v3422_v28 = vmax.f32 %v3358_v42, 0.0  ;;  %v3357_v48 = vadd.f32 %v6566_v10, %v3293_v21  ;;  %v2587_v31 = vmax.f32 %v2523_v49, 0.0  ;;  %v6887_v21 = vld [vmem:[#allocation12_spill] sm:$0xff] }
 0x1c3   :  { %v2526_v59 = vadd.f32 %v6566_v10, %v2462_v1  ;;  %v3360_v14 = vadd.f32 %v6566_v10, %v3296_v61  ;;  %v2461_v62 = vmul.f32 %v6552_v18, %v2342_v63  ;;  %v3547_v39 = vmax.f32 %v6883_v33, %v3483_v47  ;;  %v4636_v15 = vpop.f32.mrb[116].mxu0 }
 0x1c4   :  { %3613 = vst.msk [vmem:[%s6851_s4 + $0x178] sm:$0xff] %vm3565_vm4, %v3548_v40  ;;  %v3486_v29 = vmax.f32 %v2588_v36, %v3422_v28  ;;  %v3421_v2 = vmax.f32 %v3357_v48, 0.0  ;;  %v3295_v38 = vmul.f32 %v6552_v18, %v3176_v25  ;;  %v4736_v60 = vpop.f32.mrb[116].mxu1  ;;  %v2464_v53 = vmul.f32 %v6552_v18, %v4636_v15  ;;  %v2352_v26 = vpop.f32.mrb[117].mxu0  ;;  %v6888_v48 = vld [vmem:[#allocation13_spill] sm:$0xff] }
 0x1c5   :  { %v2590_v55 = vmax.f32 %v2526_v59, 0.0  ;;  %v3424_v52 = vmax.f32 %v3360_v14, 0.0  ;;  %v2525_v3 = vadd.f32 %v6566_v10, %v2461_v62  ;;  %v3186_v11 = vpop.f32.mrb[117].mxu1  ;;  %3612 = vst.msk [vmem:[%s6851_s4 + $0x170] sm:$0xff] %vm3565_vm4, %v3547_v39  ;;  %v3298_v43 = vmul.f32 %v6552_v18, %v4736_v60 }
 0x1c6   :  { %v3550_v19 = vmax.f32 %v6884_v56, %v3486_v29  ;;  %v3485_v16 = vmax.f32 %v2587_v31, %v3421_v2  ;;  %v3359_v24 = vadd.f32 %v6566_v10, %v3295_v38  ;;  %v2528_v7 = vadd.f32 %v6566_v10, %v2464_v53  ;;  %v6889_v38 = vld [vmem:[#allocation14_spill] sm:$0xff] }
 0x1c7   :  { %v3488_v4 = vmax.f32 %v2590_v55, %v3424_v52  ;;  %v2589_v35 = vmax.f32 %v2525_v3, 0.0  ;;  %v2463_v8 = vmul.f32 %v6552_v18, %v2352_v26  ;;  %v3362_v54 = vadd.f32 %v6566_v10, %v3298_v43  ;;  %v4639_v27 = vpop.f32.mrb[118].mxu0  ;;  %v6890_v43 = vld [vmem:[#allocation15_spill] sm:$0xff] }
 0x1c8   :  { %3615 = vst.msk [vmem:[%s6851_s4 + $0x188] sm:$0xff] %vm3565_vm4, %v3550_v19  ;;  %v3549_v6 = vmax.f32 %v6885_v37, %v3485_v16  ;;  %v3423_v58 = vmax.f32 %v3359_v24, 0.0  ;;  %v3297_v34 = vmul.f32 %v6552_v18, %v3186_v11  ;;  %v4739_v0 = vpop.f32.mrb[118].mxu1  ;;  %v2592_v9 = vmax.f32 %v2528_v7, 0.0  ;;  %v2362_v5 = vpop.f32.mrb[119].mxu0  ;;  %v6891_v37 = vld [vmem:[#allocation16_spill] sm:$0xff] }
 0x1c9   :  { %v3552_v12 = vmax.f32 %v6886_v22, %v3488_v4  ;;  %v2527_v17 = vadd.f32 %v6566_v10, %v2463_v8  ;;  %v2466_v13 = vmul.f32 %v6552_v18, %v4639_v27  ;;  %v3196_v41 = vpop.f32.mrb[119].mxu1  ;;  %v3426_v30 = vmax.f32 %v3362_v54, 0.0 }
 0x1ca   :  { %3614 = vst.msk [vmem:[%s6851_s4 + $0x180] sm:$0xff] %vm3565_vm4, %v3549_v6  ;;  %v3487_v46 = vmax.f32 %v2589_v35, %v3423_v58  ;;  %v3361_v44 = vadd.f32 %v6566_v10, %v3297_v34  ;;  %v3300_v57 = vmul.f32 %v6552_v18, %v4739_v0  ;;  %v2465_v23 = vmul.f32 %v6552_v18, %v2362_v5 }
 0x1cb   :  { %3617 = vst.msk [vmem:[%s6851_s4 + $0x198] sm:$0xff] %vm3565_vm4, %v3552_v12  ;;  %v2591_v50 = vmax.f32 %v2527_v17, 0.0  ;;  %v2530_v20 = vadd.f32 %v6566_v10, %v2466_v13  ;;  %v3299_v42 = vmul.f32 %v6552_v18, %v3196_v41  ;;  %v3490_v45 = vmax.f32 %v2592_v9, %v3426_v30  ;;  %v4642_v1 = vpop.f32.mrb[120].mxu0 }
 0x1cc   :  { %v3551_v32 = vmax.f32 %v6887_v21, %v3487_v46  ;;  %v3425_v36 = vmax.f32 %v3361_v44, 0.0  ;;  %v3364_v49 = vadd.f32 %v6566_v10, %v3300_v57  ;;  %v4742_v61 = vpop.f32.mrb[120].mxu1  ;;  %v2529_v25 = vadd.f32 %v6566_v10, %v2465_v23  ;;  %v2372_v47 = vpop.f32.mrb[121].mxu0  ;;  %v6892_v57 = vld [vmem:[#allocation17_spill] sm:$0xff] }
 0x1cd   :  { %v2594_v63 = vmax.f32 %v2530_v20, 0.0  ;;  %v3363_v51 = vadd.f32 %v6566_v10, %v3299_v42  ;;  %v2468_v40 = vmul.f32 %v6552_v18, %v4642_v1  ;;  %v3206_v28 = vpop.f32.mrb[121].mxu1  ;;  %v3554_v31 = vmax.f32 %v6888_v48, %v3490_v45 }
 0x1ce   :  { %3616 = vst.msk [vmem:[%s6851_s4 + $0x190] sm:$0xff] %vm3565_vm4, %v3551_v32  ;;  %v3489_v59 = vmax.f32 %v2591_v50, %v3425_v36  ;;  %v3428_v14 = vmax.f32 %v3364_v49, 0.0  ;;  %v3302_v62 = vmul.f32 %v6552_v18, %v4742_v61  ;;  %v2593_v33 = vmax.f32 %v2529_v25, 0.0  ;;  %v6893_v49 = vld [vmem:[#allocation18_spill] sm:$0xff] }
 0x1cf   :  { %v3427_v39 = vmax.f32 %v3363_v51, 0.0  ;;  %v2532_v29 = vadd.f32 %v6566_v10, %v2468_v40  ;;  %v2467_v2 = vmul.f32 %v6552_v18, %v2372_v47  ;;  %3619 = vst.msk [vmem:[%s6851_s4 + $0x1a8] sm:$0xff] %vm3565_vm4, %v3554_v31  ;;  %v3301_v52 = vmul.f32 %v6552_v18, %v3206_v28  ;;  %v4645_v3 = vpop.f32.mrb[122].mxu0 }
 0x1d0   :  { %v3553_v15 = vmax.f32 %v6889_v38, %v3489_v59  ;;  %v3492_v60 = vmax.f32 %v2594_v63, %v3428_v14  ;;  %v3366_v55 = vadd.f32 %v6566_v10, %v3302_v62  ;;  %v4745_v53 = vpop.f32.mrb[122].mxu1  ;;  %v2470_v19 = vmul.f32 %v6552_v18, %v4645_v3  ;;  %v2382_v16 = vpop.f32.mrb[123].mxu0  ;;  %v6894_v62 = vld [vmem:[#allocation19_spill] sm:$0xff] }
 0x1d1   :  { %v3491_v26 = vmax.f32 %v2593_v33, %v3427_v39  ;;  %v2596_v11 = vmax.f32 %v2532_v29, 0.0  ;;  %v2531_v56 = vadd.f32 %v6566_v10, %v2467_v2  ;;  %v3216_v24 = vpop.f32.mrb[123].mxu1  ;;  %v3365_v7 = vadd.f32 %v6566_v10, %v3301_v52  ;;  %v6895_v52 = vld [vmem:[#allocation20_spill] sm:$0xff] }
 0x1d2   :  { %3618 = vst.msk [vmem:[%s6851_s4 + $0x1a0] sm:$0xff] %vm3565_vm4, %v3553_v15  ;;  %v3556_v4 = vmax.f32 %v6890_v43, %v3492_v60  ;;  %v3430_v35 = vmax.f32 %v3366_v55, 0.0  ;;  %v3304_v8 = vmul.f32 %v6552_v18, %v4745_v53  ;;  %v2534_v54 = vadd.f32 %v6566_v10, %v2470_v19 }
 0x1d3   :  { %v3555_v6 = vmax.f32 %v6891_v37, %v3491_v26  ;;  %v2595_v58 = vmax.f32 %v2531_v56, 0.0  ;;  %v2469_v34 = vmul.f32 %v6552_v18, %v2382_v16  ;;  %v3429_v0 = vmax.f32 %v3365_v7, 0.0  ;;  %v4648_v9 = vpop.f32.mrb[124].mxu0  ;;  %v6896_v56 = vld [vmem:[#allocation21_spill] sm:$0xff]  ;;  %v6897_v7 = vld [vmem:[#allocation22_spill] sm:$0xff] }
 0x1d4   :  { %3621 = vst.msk [vmem:[%s6851_s4 + $0x1b8] sm:$0xff] %vm3565_vm4, %v3556_v4  ;;  %v3494_v27 = vmax.f32 %v2596_v11, %v3430_v35  ;;  %v3368_v22 = vadd.f32 %v6566_v10, %v3304_v8  ;;  %v3303_v12 = vmul.f32 %v6552_v18, %v3216_v24  ;;  %v4748_v17 = vpop.f32.mrb[124].mxu1  ;;  %v2598_v13 = vmax.f32 %v2534_v54, 0.0  ;;  %v2392_v30 = vpop.f32.mrb[125].mxu0 }
 0x1d5   :  { %3620 = vst.msk [vmem:[%s6851_s4 + $0x1b0] sm:$0xff] %vm3565_vm4, %v3555_v6  ;;  %v2533_v5 = vadd.f32 %v6566_v10, %v2469_v34  ;;  %v2472_v41 = vmul.f32 %v6552_v18, %v4648_v9  ;;  %v3306_v46 = vmul.f32 %v6552_v18, %v4748_v17  ;;  %v3226_v44 = vpop.f32.mrb[125].mxu1  ;;  %v3493_v20 = vmax.f32 %v2595_v58, %v3429_v0  ;;  %v6898_v58 = vld [vmem:[#allocation23_spill] sm:$0xff] }
 0x1d6   :  { %v3558_v50 = vmax.f32 %v6892_v57, %v3494_v27  ;;  %v3432_v23 = vmax.f32 %v3368_v22, 0.0  ;;  %v3367_v42 = vadd.f32 %v6566_v10, %v3303_v12  ;;  %v2471_v36 = vmul.f32 %v6552_v18, %v2392_v30 }
 0x1d7   :  { %v2597_v21 = vmax.f32 %v2533_v5, 0.0  ;;  %v2536_v32 = vadd.f32 %v6566_v10, %v2472_v41  ;;  %v3370_v45 = vadd.f32 %v6566_v10, %v3306_v46  ;;  %v3557_v1 = vmax.f32 %v6893_v49, %v3493_v20  ;;  %v4651_v51 = vpop.f32.mrb[126].mxu0 }
 0x1d8   :  { %3623 = vst.msk [vmem:[%s6851_s4 + $0x1c8] sm:$0xff] %vm3565_vm4, %v3558_v50  ;;  %v3496_v61 = vmax.f32 %v2598_v13, %v3432_v23  ;;  %v3431_v63 = vmax.f32 %v3367_v42, 0.0  ;;  %v3305_v25 = vmul.f32 %v6552_v18, %v3226_v44  ;;  %v4751_v40 = vpop.f32.mrb[126].mxu1  ;;  %v2535_v48 = vadd.f32 %v6566_v10, %v2471_v36  ;;  %v2402_v59 = vpop.f32.mrb[127].mxu0 }
 0x1d9   :  { %v2600_v47 = vmax.f32 %v2536_v32, 0.0  ;;  %v3434_v28 = vmax.f32 %v3370_v45, 0.0  ;;  %v2474_v31 = vmul.f32 %v6552_v18, %v4651_v51  ;;  %v3236_v14 = vpop.f32.mrb[127].mxu1  ;;  %3622 = vst.msk [vmem:[%s6851_s4 + $0x1c0] sm:$0xff] %vm3565_vm4, %v3557_v1  ;;  %v3308_v2 = vmul.f32 %v6552_v18, %v4751_v40 }
 0x1da   :  { %v3560_v33 = vmax.f32 %v6894_v62, %v3496_v61  ;;  %v3495_v39 = vmax.f32 %v2597_v21, %v3431_v63  ;;  %v3369_v29 = vadd.f32 %v6566_v10, %v3305_v25  ;;  %v2599_v15 = vmax.f32 %v2535_v48, 0.0 }
 0x1db   :  { %v3498_v38 = vmax.f32 %v2600_v47, %v3434_v28  ;;  %v2538_v60 = vadd.f32 %v6566_v10, %v2474_v31  ;;  %v2473_v55 = vmul.f32 %v6552_v18, %v2402_v59  ;;  %v3372_v26 = vadd.f32 %v6566_v10, %v3308_v2 }
 0x1dc   :  { %3625 = vst.msk [vmem:[%s6851_s4 + $0x1d8] sm:$0xff] %vm3565_vm4, %v3560_v33  ;;  %v3559_v3 = vmax.f32 %v6895_v52, %v3495_v39  ;;  %v3433_v53 = vmax.f32 %v3369_v29, 0.0  ;;  %v3307_v11 = vmul.f32 %v6552_v18, %v3236_v14 }
 0x1dd   :  { %v3562_v19 = vmax.f32 %v6896_v56, %v3498_v38  ;;  %v2602_v16 = vmax.f32 %v2538_v60, 0.0  ;;  %v2537_v24 = vadd.f32 %v6566_v10, %v2473_v55  ;;  %v3436_v4 = vmax.f32 %v3372_v26, 0.0 }
 0x1de   :  { %3624 = vst.msk [vmem:[%s6851_s4 + $0x1d0] sm:$0xff] %vm3565_vm4, %v3559_v3  ;;  %v3497_v43 = vmax.f32 %v2599_v15, %v3433_v53  ;;  %v3371_v35 = vadd.f32 %v6566_v10, %v3307_v11  ;;  %v6899_v10 = vld [vmem:[#allocation24_spill] sm:$0xff] }
 0x1df   :  { %3627 = vst.msk [vmem:[%s6851_s4 + $0x1e8] sm:$0xff] %vm3565_vm4, %v3562_v19  ;;  %v2601_v18 = vmax.f32 %v2537_v24, 0.0  ;;  %v3500_v37 = vmax.f32 %v2602_v16, %v3436_v4 }
 0x1e0   :  { %v3561_v8 = vmax.f32 %v6897_v7, %v3497_v43  ;;  %v3435_v6 = vmax.f32 %v3371_v35, 0.0 }
 0x1e1   :  { %v3564_v54 = vmax.f32 %v6898_v58, %v3500_v37 }
 0x1e2   :  { %3626 = vst.msk [vmem:[%s6851_s4 + $0x1e0] sm:$0xff] %vm3565_vm4, %v3561_v8  ;;  %v3499_v34 = vmax.f32 %v2601_v18, %v3435_v6 }
 0x1e3   :  { %3629 = vst.msk [vmem:[%s6851_s4 + $0x1f8] sm:$0xff] %vm3565_vm4, %v3564_v54 }
 0x1e4   :  { %v3563_v27 = vmax.f32 %v6899_v10, %v3499_v34 }
 0x1e6   :  { %3628 = vst.msk [vmem:[%s6851_s4 + $0x1f0] sm:$0xff] %vm3565_vm4, %v3563_v27 }

</bundles_post_ra>
